<compile_context>
chip_gen: v7x
topology: tpu7x:2x2x1
jax: 0.10.0
libtpu: 0.0.40
codegen_flags: <defaults>
</compile_context>

<pallas_src>
import jax
import jax.numpy as jnp
from jax.experimental import pallas as pl
from jax.experimental.pallas import tpu as pltpu

BN_EPS = 1e-5          # PyTorch BatchNorm2d default eps
LANES = 128            # TPU lane width
VMEM_LIMIT = 32 * 1024 * 1024


def _round_up(x, m):
    return (x + m - 1) // m * m


def _pick_tile_h(ho, wo, target_rows=1024):
    """Largest row-tile height that divides Ho and keeps the y tile sublane-aligned."""
    cap = max(1, min(ho, target_rows // max(wo, 1)))
    for th in range(cap, 0, -1):
        if ho % th == 0 and (th * wo) % 8 == 0:
            return th
    return None


def _pick_tile_m(m, cap=2048):
    """Largest multiple-of-8 divisor of m not exceeding cap (m itself if m <= cap)."""
    if m <= cap:
        return m
    for t in range(cap, 7, -8):
        if m % t == 0:
            return t
    return m


def conv_bn_forward(x_nchw, w_oihw, gamma, beta, *, stride=1, pad=1):
    """Equivalent of ConvBn.forward(x): x NCHW, weight OIHW -> NCHW (training-mode BN)."""
    assert stride == 1, "TODO(synk): only stride=1 (module default) implemented"
    N, Cin, H, W = x_nchw.shape
    Cout, _, KH, KW = w_oihw.shape
    Hp, Wp = H + 2 * pad, W + 2 * pad
    Ho, Wo = Hp - KH + 1, Wp - KW + 1
    M = N * Ho * Wo
    Cp = _round_up(Cout, LANES)                      # lane-dense output channels

    tile_h = _pick_tile_h(Ho, Wo)
    assert tile_h is not None, "TODO(synk): odd spatial sizes need a padded-row path"
    T = Ho // tile_h

    # ---- glue (pure data movement, stays in XLA) ----
    x_nhwc = jnp.transpose(x_nchw, (0, 2, 3, 1)).astype(jnp.bfloat16)
    xp = jnp.pad(x_nhwc, ((0, 0), (pad, pad), (pad, pad), (0, 0)))        # (N,Hp,Wp,Cin)
    # (Cout,Cin,KH,KW) -> (KH,KW,Cin,Cp): zero-padded channels, bf16 MXU operand.
    wk = jnp.transpose(w_oihw, (2, 3, 1, 0)).astype(jnp.bfloat16)
    wk = jnp.pad(wk, ((0, 0), (0, 0), (0, 0), (0, Cp - Cout)))

    # ---- pass 1: conv (9 shifted matmuls / output row) + per-tile sum / sumsq ----
    def conv_stats_kernel(xp_ref, w_ref, y_ref, stats_ref):
        t = pl.program_id(1)
        row0 = t * tile_h
        # Hoist the 9 (Cin, Cp) weight taps out of the row loop (resident block).
        w_taps = [w_ref[kh, kw] for kh in range(KH) for kw in range(KW)]
        for r in range(tile_h):                       # static unroll over rows in tile
            acc = jnp.zeros((Wo, Cp), jnp.float32)
            for kh in range(KH):
                for kw in range(KW):
                    row = xp_ref[0, row0 + r + kh, kw:kw + Wo, :]   # (Wo, Cin) bf16
                    acc = acc + jnp.dot(row, w_taps[kh * KW + kw],
                                        preferred_element_type=jnp.float32)
            y_ref[r * Wo:(r + 1) * Wo, :] = acc
        # Per-tile BN partials in f32 (globally reduced outside the kernel).
        y = y_ref[...]
        stats_ref[0] = jnp.concatenate(
            [jnp.sum(y, axis=0, keepdims=True),
             jnp.sum(y * y, axis=0, keepdims=True)], axis=0)

    flops1 = 2 * M * KH * KW * Cin * Cp
    bytes1 = (N * Hp * Wp * Cin * 2 + KH * KW * Cin * Cp * 2
              + M * Cp * 4 + N * T * 2 * Cp * 4)
    y_flat, stats = pl.pallas_call(
        conv_stats_kernel,
        out_shape=(jax.ShapeDtypeStruct((M, Cp), jnp.float32),
                   jax.ShapeDtypeStruct((N * T, 2, Cp), jnp.float32)),
        grid=(N, T),
        in_specs=[
            pl.BlockSpec((1, Hp, Wp, Cin), lambda n, t: (n, 0, 0, 0)),   # image resident
            pl.BlockSpec((KH, KW, Cin, Cp), lambda n, t: (0, 0, 0, 0)),  # weight resident
        ],
        out_specs=(
            pl.BlockSpec((tile_h * Wo, Cp), lambda n, t: (n * T + t, 0)),
            pl.BlockSpec((1, 2, Cp), lambda n, t: (n * T + t, 0, 0)),
        ),
        compiler_params=pltpu.CompilerParams(
            dimension_semantics=("parallel", "parallel"),
            vmem_limit_bytes=VMEM_LIMIT),
        cost_estimate=pl.CostEstimate(flops=flops1, transcendentals=0,
                                      bytes_accessed=bytes1),
    )(xp, wk)

    # ---- global BN statistics (tiny: (num_tiles, 2, Cp) -> (2, Cp)) ----
    tot = jnp.sum(stats, axis=0)                      # f32 partials -> global sums
    mean = tot[0] / M
    var = jnp.maximum(tot[1] / M - mean * mean, 0.0)  # biased variance (training mode)
    inv = jax.lax.rsqrt(var + BN_EPS)
    gamma_p = jnp.pad(gamma.astype(jnp.float32), (0, Cp - Cout))
    beta_p = jnp.pad(beta.astype(jnp.float32), (0, Cp - Cout))
    scale = (gamma_p * inv).reshape(1, Cp)
    shift = (beta_p - mean * gamma_p * inv).reshape(1, Cp)

    # ---- pass 2: y * scale + shift (single FMA per element, lane-dense tiles) ----
    def bn_apply_kernel(y_ref, scale_ref, shift_ref, out_ref):
        out_ref[...] = y_ref[...] * scale_ref[...] + shift_ref[...]

    tile_m = _pick_tile_m(M)
    out_flat = pl.pallas_call(
        bn_apply_kernel,
        out_shape=jax.ShapeDtypeStruct((M, Cp), jnp.float32),
        grid=(M // tile_m,),
        in_specs=[pl.BlockSpec((tile_m, Cp), lambda i: (i, 0)),
                  pl.BlockSpec((1, Cp), lambda i: (0, 0)),
                  pl.BlockSpec((1, Cp), lambda i: (0, 0))],
        out_specs=pl.BlockSpec((tile_m, Cp), lambda i: (i, 0)),
        compiler_params=pltpu.CompilerParams(
            dimension_semantics=("parallel",),
            vmem_limit_bytes=VMEM_LIMIT),
        cost_estimate=pl.CostEstimate(
            flops=2 * M * Cp, transcendentals=0,
            bytes_accessed=2 * M * Cp * 4 + 2 * Cp * 4),
    )(y_flat, scale, shift)

    # Back to NCHW.  Kernels keep Cout on lanes for dense stores; the final transpose
    # stays in XLA.  TODO(synk): BatchNorm running_mean/running_var are not updated.
    out = out_flat[:, :Cout].reshape(N, Ho, Wo, Cout)
    return jnp.transpose(out, (0, 3, 1, 2))


def orthogonal_conv_weight(key, out_channels, in_channels, kh, kw):
    """Deterministic stand-in for torch.nn.init.orthogonal on a Conv2d weight."""
    rows = out_channels
    cols = in_channels * kh * kw
    a = jax.random.normal(key, (max(rows, cols), min(rows, cols)), jnp.float32)
    q, r = jnp.linalg.qr(a)
    q = q * jnp.sign(jnp.diag(r))[None, :]
    if rows < cols:
        q = q.T
    return q.reshape(out_channels, in_channels, kh, kw)


def _reference(x_nchw, w_oihw, gamma, beta, pad=1):
    y = jax.lax.conv_general_dilated(
        x_nchw, w_oihw, window_strides=(1, 1), padding=((pad, pad), (pad, pad)),
        dimension_numbers=("NCHW", "OIHW", "NCHW"))
    mean = jnp.mean(y, axis=(0, 2, 3), keepdims=True)
    var = jnp.mean((y - mean) ** 2, axis=(0, 2, 3), keepdims=True)
    yhat = (y - mean) / jnp.sqrt(var + BN_EPS)
    return yhat * gamma.reshape(1, -1, 1, 1) + beta.reshape(1, -1, 1, 1)


if __name__ == "__main__":
    key = jax.random.PRNGKey(0)
    k_x, k_w = jax.random.split(key)

    N, Cin, Cout, H, W = 2, 4, 8, 16, 16
    x = jax.random.normal(k_x, (N, Cin, H, W), jnp.float32)
    w = orthogonal_conv_weight(k_w, Cout, Cin, 3, 3)
    gamma = jnp.ones((Cout,), jnp.float32)   # BatchNorm2d default weight init
    beta = jnp.zeros((Cout,), jnp.float32)   # BatchNorm2d default bias init

    fwd = jax.jit(conv_bn_forward)
    out = jax.block_until_ready(fwd(x, w, gamma, beta))

    ref = _reference(x, w, gamma, beta)
    assert out.shape == (N, Cout, H, W), out.shape
    assert jnp.all(jnp.isfinite(out))
    assert jnp.allclose(out, ref, atol=2e-2, rtol=2e-2), float(jnp.max(jnp.abs(out - ref)))

    print("KERNEL_OK")
</pallas_src>

<mosaic_0001>
module attributes {stable_mosaic.version = 11 : i64} {
  func.func @bn_apply_kernel(%arg0: i32, %arg1: memref<512x128xf32, #tpu.memory_space<vmem>>, %arg2: memref<1x128xf32, #tpu.memory_space<vmem>>, %arg3: memref<1x128xf32, #tpu.memory_space<vmem>>, %arg4: memref<512x128xf32, #tpu.memory_space<vmem>>) attributes {dimension_semantics = [#tpu.dimension_semantics<parallel>], iteration_bounds = array<i64: 1>, scalar_prefetch = 0 : i64, scratch_operands = 0 : i64, tpu.core_type = #tpu.core_type<tc>, window_params = [{transform_indices = @transform_0, window_bounds = array<i64: 512, 128>}, {pipeline_mode = #tpu.pipeline_mode<synchronous>, transform_indices = @transform_1, window_bounds = array<i64: 1, 128>}, {pipeline_mode = #tpu.pipeline_mode<synchronous>, transform_indices = @transform_2, window_bounds = array<i64: 1, 128>}, {transform_indices = @transform_3, window_bounds = array<i64: 512, 128>}]} {
    %c0 = arith.constant 0 : index
    %c0_0 = arith.constant 0 : index
    %0 = vector.load %arg1[%c0, %c0_0] : memref<512x128xf32, #tpu.memory_space<vmem>>, vector<512x128xf32>
    %c0_1 = arith.constant 0 : index
    %c0_2 = arith.constant 0 : index
    %1 = vector.load %arg2[%c0_1, %c0_2] : memref<1x128xf32, #tpu.memory_space<vmem>>, vector<1x128xf32>
    %2 = vector.broadcast %1 : vector<1x128xf32> to vector<512x128xf32>
    %3 = arith.mulf %0, %2 : vector<512x128xf32>
    %c0_3 = arith.constant 0 : index
    %c0_4 = arith.constant 0 : index
    %4 = vector.load %arg3[%c0_3, %c0_4] : memref<1x128xf32, #tpu.memory_space<vmem>>, vector<1x128xf32>
    %5 = vector.broadcast %4 : vector<1x128xf32> to vector<512x128xf32>
    %6 = arith.addf %3, %5 : vector<512x128xf32>
    %c0_5 = arith.constant 0 : index
    %c0_6 = arith.constant 0 : index
    %7 = vector.load %arg4[%c0_5, %c0_6] : memref<512x128xf32, #tpu.memory_space<vmem>>, vector<512x128xf32>
    tpu.vector_store %arg4[%c0_5, %c0_6], %6 {strides = array<i32>} : memref<512x128xf32, #tpu.memory_space<vmem>>, vector<512x128xf32>,
    return
  }
  func.func @transform_0(%arg0: i32) -> (i32, i32) {
    %c0_i32 = arith.constant 0 : i32
    %c0_i32_0 = arith.constant 0 : i32
    return %arg0, %c0_i32 : i32, i32
  }
  func.func @transform_1(%arg0: i32) -> (i32, i32) {
    %c0_i32 = arith.constant 0 : i32
    %c0_i32_0 = arith.constant 0 : i32
    %c0_i32_1 = arith.constant 0 : i32
    return %c0_i32, %c0_i32_0 : i32, i32
  }
  func.func @transform_2(%arg0: i32) -> (i32, i32) {
    %c0_i32 = arith.constant 0 : i32
    %c0_i32_0 = arith.constant 0 : i32
    %c0_i32_1 = arith.constant 0 : i32
    return %c0_i32, %c0_i32_0 : i32, i32
  }
  func.func @transform_3(%arg0: i32) -> (i32, i32) {
    %c0_i32 = arith.constant 0 : i32
    %c0_i32_0 = arith.constant 0 : i32
    return %arg0, %c0_i32 : i32, i32
  }
}

module attributes {stable_mosaic.version = 11 : i64} {
  func.func @conv_stats_kernel(%arg0: i32, %arg1: i32, %arg2: memref<1x18x18x4xbf16, #tpu.memory_space<vmem>>, %arg3: memref<3x3x4x128xbf16, #tpu.memory_space<vmem>>, %arg4: memref<256x128xf32, #tpu.memory_space<vmem>>, %arg5: memref<1x2x128xf32, #tpu.memory_space<vmem>>) attributes {dimension_semantics = [#tpu.dimension_semantics<parallel>, #tpu.dimension_semantics<parallel>], iteration_bounds = array<i64: 2, 1>, scalar_prefetch = 0 : i64, scratch_operands = 0 : i64, tpu.core_type = #tpu.core_type<tc>, window_params = [{transform_indices = @transform_0, window_bounds = array<i64: 1, 18, 18, 4>}, {pipeline_mode = #tpu.pipeline_mode<synchronous>, transform_indices = @transform_1, window_bounds = array<i64: 3, 3, 4, 128>}, {transform_indices = @transform_2, window_bounds = array<i64: 256, 128>}, {transform_indices = @transform_3, window_bounds = array<i64: 1, 2, 128>}]} {
    %c16_i32 = arith.constant 16 : i32
    %0 = arith.muli %arg1, %c16_i32 : i32
    %c0 = arith.constant 0 : index
    %c0_0 = arith.constant 0 : index
    %c0_1 = arith.constant 0 : index
    %c0_2 = arith.constant 0 : index
    %1 = vector.load %arg3[%c0, %c0_0, %c0_1, %c0_2] : memref<3x3x4x128xbf16, #tpu.memory_space<vmem>>, vector<1x1x4x128xbf16>
    %2 = vector.shape_cast %1 : vector<1x1x4x128xbf16> to vector<4x128xbf16>
    %c0_3 = arith.constant 0 : index
    %c1 = arith.constant 1 : index
    %c0_4 = arith.constant 0 : index
    %c0_5 = arith.constant 0 : index
    %3 = vector.load %arg3[%c0_3, %c1, %c0_4, %c0_5] : memref<3x3x4x128xbf16, #tpu.memory_space<vmem>>, vector<1x1x4x128xbf16>
    %4 = vector.shape_cast %3 : vector<1x1x4x128xbf16> to vector<4x128xbf16>
    %c0_6 = arith.constant 0 : index
    %c2 = arith.constant 2 : index
    %c0_7 = arith.constant 0 : index
    %c0_8 = arith.constant 0 : index
    %5 = vector.load %arg3[%c0_6, %c2, %c0_7, %c0_8] : memref<3x3x4x128xbf16, #tpu.memory_space<vmem>>, vector<1x1x4x128xbf16>
    %6 = vector.shape_cast %5 : vector<1x1x4x128xbf16> to vector<4x128xbf16>
    %c1_9 = arith.constant 1 : index
    %c0_10 = arith.constant 0 : index
    %c0_11 = arith.constant 0 : index
    %c0_12 = arith.constant 0 : index
    %7 = vector.load %arg3[%c1_9, %c0_10, %c0_11, %c0_12] : memref<3x3x4x128xbf16, #tpu.memory_space<vmem>>, vector<1x1x4x128xbf16>
    %8 = vector.shape_cast %7 : vector<1x1x4x128xbf16> to vector<4x128xbf16>
    %c1_13 = arith.constant 1 : index
    %c1_14 = arith.constant 1 : index
    %c0_15 = arith.constant 0 : index
    %c0_16 = arith.constant 0 : index
    %9 = vector.load %arg3[%c1_13, %c1_14, %c0_15, %c0_16] : memref<3x3x4x128xbf16, #tpu.memory_space<vmem>>, vector<1x1x4x128xbf16>
    %10 = vector.shape_cast %9 : vector<1x1x4x128xbf16> to vector<4x128xbf16>
    %c1_17 = arith.constant 1 : index
    %c2_18 = arith.constant 2 : index
    %c0_19 = arith.constant 0 : index
    %c0_20 = arith.constant 0 : index
    %11 = vector.load %arg3[%c1_17, %c2_18, %c0_19, %c0_20] : memref<3x3x4x128xbf16, #tpu.memory_space<vmem>>, vector<1x1x4x128xbf16>
    %12 = vector.shape_cast %11 : vector<1x1x4x128xbf16> to vector<4x128xbf16>
    %c2_21 = arith.constant 2 : index
    %c0_22 = arith.constant 0 : index
    %c0_23 = arith.constant 0 : index
    %c0_24 = arith.constant 0 : index
    %13 = vector.load %arg3[%c2_21, %c0_22, %c0_23, %c0_24] : memref<3x3x4x128xbf16, #tpu.memory_space<vmem>>, vector<1x1x4x128xbf16>
    %14 = vector.shape_cast %13 : vector<1x1x4x128xbf16> to vector<4x128xbf16>
    %c2_25 = arith.constant 2 : index
    %c1_26 = arith.constant 1 : index
    %c0_27 = arith.constant 0 : index
    %c0_28 = arith.constant 0 : index
    %15 = vector.load %arg3[%c2_25, %c1_26, %c0_27, %c0_28] : memref<3x3x4x128xbf16, #tpu.memory_space<vmem>>, vector<1x1x4x128xbf16>
    %16 = vector.shape_cast %15 : vector<1x1x4x128xbf16> to vector<4x128xbf16>
    %c2_29 = arith.constant 2 : index
    %c2_30 = arith.constant 2 : index
    %c0_31 = arith.constant 0 : index
    %c0_32 = arith.constant 0 : index
    %17 = vector.load %arg3[%c2_29, %c2_30, %c0_31, %c0_32] : memref<3x3x4x128xbf16, #tpu.memory_space<vmem>>, vector<1x1x4x128xbf16>
    %18 = vector.shape_cast %17 : vector<1x1x4x128xbf16> to vector<4x128xbf16>
    %cst = arith.constant 0.000000e+00 : f32
    %19 = vector.broadcast %cst : f32 to vector<16x128xf32>
    %c0_i32 = arith.constant 0 : i32
    %20 = arith.addi %0, %c0_i32 : i32
    %c0_i32_33 = arith.constant 0 : i32
    %21 = arith.addi %20, %c0_i32_33 : i32
    %c0_34 = arith.constant 0 : index
    %22 = arith.index_cast %21 : i32 to index
    %c0_35 = arith.constant 0 : index
    %c0_36 = arith.constant 0 : index
    %23 = vector.load %arg2[%c0_34, %22, %c0_35, %c0_36] : memref<1x18x18x4xbf16, #tpu.memory_space<vmem>>, vector<1x1x16x4xbf16>
    %24 = vector.shape_cast %23 : vector<1x1x16x4xbf16> to vector<16x4xbf16>
    %cst_37 = arith.constant dense<0.000000e+00> : vector<16x128xf32>
    %25 = tpu.matmul %24, %2, %cst_37 {dimension_numbers = #tpu.dot_dimension_numbers<[1], [0], [0], [1], [0, 0, 1, 1], [], []>} : vector<16x4xbf16>, vector<4x128xbf16>, vector<16x128xf32> -> vector<16x128xf32>
    %26 = arith.addf %19, %25 : vector<16x128xf32>
    %c0_i32_38 = arith.constant 0 : i32
    %27 = arith.addi %0, %c0_i32_38 : i32
    %c0_i32_39 = arith.constant 0 : i32
    %28 = arith.addi %27, %c0_i32_39 : i32
    %c0_40 = arith.constant 0 : index
    %29 = arith.index_cast %28 : i32 to index
    %c1_41 = arith.constant 1 : index
    %c0_42 = arith.constant 0 : index
    %30 = vector.load %arg2[%c0_40, %29, %c1_41, %c0_42] : memref<1x18x18x4xbf16, #tpu.memory_space<vmem>>, vector<1x1x16x4xbf16>
    %31 = vector.shape_cast %30 : vector<1x1x16x4xbf16> to vector<16x4xbf16>
    %cst_43 = arith.constant dense<0.000000e+00> : vector<16x128xf32>
    %32 = tpu.matmul %31, %4, %cst_43 {dimension_numbers = #tpu.dot_dimension_numbers<[1], [0], [0], [1], [0, 0, 1, 1], [], []>} : vector<16x4xbf16>, vector<4x128xbf16>, vector<16x128xf32> -> vector<16x128xf32>
    %33 = arith.addf %26, %32 : vector<16x128xf32>
    %c0_i32_44 = arith.constant 0 : i32
    %34 = arith.addi %0, %c0_i32_44 : i32
    %c0_i32_45 = arith.constant 0 : i32
    %35 = arith.addi %34, %c0_i32_45 : i32
    %c0_46 = arith.constant 0 : index
    %36 = arith.index_cast %35 : i32 to index
    %c2_47 = arith.constant 2 : index
    %c0_48 = arith.constant 0 : index
    %37 = vector.load %arg2[%c0_46, %36, %c2_47, %c0_48] : memref<1x18x18x4xbf16, #tpu.memory_space<vmem>>, vector<1x1x16x4xbf16>
    %38 = vector.shape_cast %37 : vector<1x1x16x4xbf16> to vector<16x4xbf16>
    %cst_49 = arith.constant dense<0.000000e+00> : vector<16x128xf32>
    %39 = tpu.matmul %38, %6, %cst_49 {dimension_numbers = #tpu.dot_dimension_numbers<[1], [0], [0], [1], [0, 0, 1, 1], [], []>} : vector<16x4xbf16>, vector<4x128xbf16>, vector<16x128xf32> -> vector<16x128xf32>
    %40 = arith.addf %33, %39 : vector<16x128xf32>
    %c0_i32_50 = arith.constant 0 : i32
    %41 = arith.addi %0, %c0_i32_50 : i32
    %c1_i32 = arith.constant 1 : i32
    %42 = arith.addi %41, %c1_i32 : i32
    %c0_51 = arith.constant 0 : index
    %43 = arith.index_cast %42 : i32 to index
    %c0_52 = arith.constant 0 : index
    %c0_53 = arith.constant 0 : index
    %44 = vector.load %arg2[%c0_51, %43, %c0_52, %c0_53] : memref<1x18x18x4xbf16, #tpu.memory_space<vmem>>, vector<1x1x16x4xbf16>
    %45 = vector.shape_cast %44 : vector<1x1x16x4xbf16> to vector<16x4xbf16>
    %cst_54 = arith.constant dense<0.000000e+00> : vector<16x128xf32>
    %46 = tpu.matmul %45, %8, %cst_54 {dimension_numbers = #tpu.dot_dimension_numbers<[1], [0], [0], [1], [0, 0, 1, 1], [], []>} : vector<16x4xbf16>, vector<4x128xbf16>, vector<16x128xf32> -> vector<16x128xf32>
    %47 = arith.addf %40, %46 : vector<16x128xf32>
    %c0_i32_55 = arith.constant 0 : i32
    %48 = arith.addi %0, %c0_i32_55 : i32
    %c1_i32_56 = arith.constant 1 : i32
    %49 = arith.addi %48, %c1_i32_56 : i32
    %c0_57 = arith.constant 0 : index
    %50 = arith.index_cast %49 : i32 to index
    %c1_58 = arith.constant 1 : index
    %c0_59 = arith.constant 0 : index
    %51 = vector.load %arg2[%c0_57, %50, %c1_58, %c0_59] : memref<1x18x18x4xbf16, #tpu.memory_space<vmem>>, vector<1x1x16x4xbf16>
    %52 = vector.shape_cast %51 : vector<1x1x16x4xbf16> to vector<16x4xbf16>
    %cst_60 = arith.constant dense<0.000000e+00> : vector<16x128xf32>
    %53 = tpu.matmul %52, %10, %cst_60 {dimension_numbers = #tpu.dot_dimension_numbers<[1], [0], [0], [1], [0, 0, 1, 1], [], []>} : vector<16x4xbf16>, vector<4x128xbf16>, vector<16x128xf32> -> vector<16x128xf32>
    %54 = arith.addf %47, %53 : vector<16x128xf32>
    %c0_i32_61 = arith.constant 0 : i32
    %55 = arith.addi %0, %c0_i32_61 : i32
    %c1_i32_62 = arith.constant 1 : i32
    %56 = arith.addi %55, %c1_i32_62 : i32
    %c0_63 = arith.constant 0 : index
    %57 = arith.index_cast %56 : i32 to index
    %c2_64 = arith.constant 2 : index
    %c0_65 = arith.constant 0 : index
    %58 = vector.load %arg2[%c0_63, %57, %c2_64, %c0_65] : memref<1x18x18x4xbf16, #tpu.memory_space<vmem>>, vector<1x1x16x4xbf16>
    %59 = vector.shape_cast %58 : vector<1x1x16x4xbf16> to vector<16x4xbf16>
    %cst_66 = arith.constant dense<0.000000e+00> : vector<16x128xf32>
    %60 = tpu.matmul %59, %12, %cst_66 {dimension_numbers = #tpu.dot_dimension_numbers<[1], [0], [0], [1], [0, 0, 1, 1], [], []>} : vector<16x4xbf16>, vector<4x128xbf16>, vector<16x128xf32> -> vector<16x128xf32>
    %61 = arith.addf %54, %60 : vector<16x128xf32>
    %c0_i32_67 = arith.constant 0 : i32
    %62 = arith.addi %0, %c0_i32_67 : i32
    %c2_i32 = arith.constant 2 : i32
    %63 = arith.addi %62, %c2_i32 : i32
    %c0_68 = arith.constant 0 : index
    %64 = arith.index_cast %63 : i32 to index
    %c0_69 = arith.constant 0 : index
    %c0_70 = arith.constant 0 : index
    %65 = vector.load %arg2[%c0_68, %64, %c0_69, %c0_70] : memref<1x18x18x4xbf16, #tpu.memory_space<vmem>>, vector<1x1x16x4xbf16>
    %66 = vector.shape_cast %65 : vector<1x1x16x4xbf16> to vector<16x4xbf16>
    %cst_71 = arith.constant dense<0.000000e+00> : vector<16x128xf32>
    %67 = tpu.matmul %66, %14, %cst_71 {dimension_numbers = #tpu.dot_dimension_numbers<[1], [0], [0], [1], [0, 0, 1, 1], [], []>} : vector<16x4xbf16>, vector<4x128xbf16>, vector<16x128xf32> -> vector<16x128xf32>
    %68 = arith.addf %61, %67 : vector<16x128xf32>
    %c0_i32_72 = arith.constant 0 : i32
    %69 = arith.addi %0, %c0_i32_72 : i32
    %c2_i32_73 = arith.constant 2 : i32
    %70 = arith.addi %69, %c2_i32_73 : i32
    %c0_74 = arith.constant 0 : index
    %71 = arith.index_cast %70 : i32 to index
    %c1_75 = arith.constant 1 : index
    %c0_76 = arith.constant 0 : index
    %72 = vector.load %arg2[%c0_74, %71, %c1_75, %c0_76] : memref<1x18x18x4xbf16, #tpu.memory_space<vmem>>, vector<1x1x16x4xbf16>
    %73 = vector.shape_cast %72 : vector<1x1x16x4xbf16> to vector<16x4xbf16>
    %cst_77 = arith.constant dense<0.000000e+00> : vector<16x128xf32>
    %74 = tpu.matmul %73, %16, %cst_77 {dimension_numbers = #tpu.dot_dimension_numbers<[1], [0], [0], [1], [0, 0, 1, 1], [], []>} : vector<16x4xbf16>, vector<4x128xbf16>, vector<16x128xf32> -> vector<16x128xf32>
    %75 = arith.addf %68, %74 : vector<16x128xf32>
    %c0_i32_78 = arith.constant 0 : i32
    %76 = arith.addi %0, %c0_i32_78 : i32
    %c2_i32_79 = arith.constant 2 : i32
    %77 = arith.addi %76, %c2_i32_79 : i32
    %c0_80 = arith.constant 0 : index
    %78 = arith.index_cast %77 : i32 to index
    %c2_81 = arith.constant 2 : index
    %c0_82 = arith.constant 0 : index
    %79 = vector.load %arg2[%c0_80, %78, %c2_81, %c0_82] : memref<1x18x18x4xbf16, #tpu.memory_space<vmem>>, vector<1x1x16x4xbf16>
    %80 = vector.shape_cast %79 : vector<1x1x16x4xbf16> to vector<16x4xbf16>
    %cst_83 = arith.constant dense<0.000000e+00> : vector<16x128xf32>
    %81 = tpu.matmul %80, %18, %cst_83 {dimension_numbers = #tpu.dot_dimension_numbers<[1], [0], [0], [1], [0, 0, 1, 1], [], []>} : vector<16x4xbf16>, vector<4x128xbf16>, vector<16x128xf32> -> vector<16x128xf32>
    %82 = arith.addf %75, %81 : vector<16x128xf32>
    %c0_84 = arith.constant 0 : index
    %c0_85 = arith.constant 0 : index
    %83 = vector.load %arg4[%c0_84, %c0_85] : memref<256x128xf32, #tpu.memory_space<vmem>>, vector<16x128xf32>
    tpu.vector_store %arg4[%c0_84, %c0_85], %82 {strides = array<i32>} : memref<256x128xf32, #tpu.memory_space<vmem>>, vector<16x128xf32>,
    %cst_86 = arith.constant 0.000000e+00 : f32
    %84 = vector.broadcast %cst_86 : f32 to vector<16x128xf32>
    %c1_i32_87 = arith.constant 1 : i32
    %85 = arith.addi %0, %c1_i32_87 : i32
    %c0_i32_88 = arith.constant 0 : i32
    %86 = arith.addi %85, %c0_i32_88 : i32
    %c0_89 = arith.constant 0 : index
    %87 = arith.index_cast %86 : i32 to index
    %c0_90 = arith.constant 0 : index
    %c0_91 = arith.constant 0 : index
    %88 = vector.load %arg2[%c0_89, %87, %c0_90, %c0_91] : memref<1x18x18x4xbf16, #tpu.memory_space<vmem>>, vector<1x1x16x4xbf16>
    %89 = vector.shape_cast %88 : vector<1x1x16x4xbf16> to vector<16x4xbf16>
    %cst_92 = arith.constant dense<0.000000e+00> : vector<16x128xf32>
    %90 = tpu.matmul %89, %2, %cst_92 {dimension_numbers = #tpu.dot_dimension_numbers<[1], [0], [0], [1], [0, 0, 1, 1], [], []>} : vector<16x4xbf16>, vector<4x128xbf16>, vector<16x128xf32> -> vector<16x128xf32>
    %91 = arith.addf %84, %90 : vector<16x128xf32>
    %c1_i32_93 = arith.constant 1 : i32
    %92 = arith.addi %0, %c1_i32_93 : i32
    %c0_i32_94 = arith.constant 0 : i32
    %93 = arith.addi %92, %c0_i32_94 : i32
    %c0_95 = arith.constant 0 : index
    %94 = arith.index_cast %93 : i32 to index
    %c1_96 = arith.constant 1 : index
    %c0_97 = arith.constant 0 : index
    %95 = vector.load %arg2[%c0_95, %94, %c1_96, %c0_97] : memref<1x18x18x4xbf16, #tpu.memory_space<vmem>>, vector<1x1x16x4xbf16>
    %96 = vector.shape_cast %95 : vector<1x1x16x4xbf16> to vector<16x4xbf16>
    %cst_98 = arith.constant dense<0.000000e+00> : vector<16x128xf32>
    %97 = tpu.matmul %96, %4, %cst_98 {dimension_numbers = #tpu.dot_dimension_numbers<[1], [0], [0], [1], [0, 0, 1, 1], [], []>} : vector<16x4xbf16>, vector<4x128xbf16>, vector<16x128xf32> -> vector<16x128xf32>
    %98 = arith.addf %91, %97 : vector<16x128xf32>
    %c1_i32_99 = arith.constant 1 : i32
    %99 = arith.addi %0, %c1_i32_99 : i32
    %c0_i32_100 = arith.constant 0 : i32
    %100 = arith.addi %99, %c0_i32_100 : i32
    %c0_101 = arith.constant 0 : index
    %101 = arith.index_cast %100 : i32 to index
    %c2_102 = arith.constant 2 : index
    %c0_103 = arith.constant 0 : index
    %102 = vector.load %arg2[%c0_101, %101, %c2_102, %c0_103] : memref<1x18x18x4xbf16, #tpu.memory_space<vmem>>, vector<1x1x16x4xbf16>
    %103 = vector.shape_cast %102 : vector<1x1x16x4xbf16> to vector<16x4xbf16>
    %cst_104 = arith.constant dense<0.000000e+00> : vector<16x128xf32>
    %104 = tpu.matmul %103, %6, %cst_104 {dimension_numbers = #tpu.dot_dimension_numbers<[1], [0], [0], [1], [0, 0, 1, 1], [], []>} : vector<16x4xbf16>, vector<4x128xbf16>, vector<16x128xf32> -> vector<16x128xf32>
    %105 = arith.addf %98, %104 : vector<16x128xf32>
    %c1_i32_105 = arith.constant 1 : i32
    %106 = arith.addi %0, %c1_i32_105 : i32
    %c1_i32_106 = arith.constant 1 : i32
    %107 = arith.addi %106, %c1_i32_106 : i32
    %c0_107 = arith.constant 0 : index
    %108 = arith.index_cast %107 : i32 to index
    %c0_108 = arith.constant 0 : index
    %c0_109 = arith.constant 0 : index
    %109 = vector.load %arg2[%c0_107, %108, %c0_108, %c0_109] : memref<1x18x18x4xbf16, #tpu.memory_space<vmem>>, vector<1x1x16x4xbf16>
    %110 = vector.shape_cast %109 : vector<1x1x16x4xbf16> to vector<16x4xbf16>
    %cst_110 = arith.constant dense<0.000000e+00> : vector<16x128xf32>
    %111 = tpu.matmul %110, %8, %cst_110 {dimension_numbers = #tpu.dot_dimension_numbers<[1], [0], [0], [1], [0, 0, 1, 1], [], []>} : vector<16x4xbf16>, vector<4x128xbf16>, vector<16x128xf32> -> vector<16x128xf32>
    %112 = arith.addf %105, %111 : vector<16x128xf32>
    %c1_i32_111 = arith.constant 1 : i32
    %113 = arith.addi %0, %c1_i32_111 : i32
    %c1_i32_112 = arith.constant 1 : i32
    %114 = arith.addi %113, %c1_i32_112 : i32
    %c0_113 = arith.constant 0 : index
    %115 = arith.index_cast %114 : i32 to index
    %c1_114 = arith.constant 1 : index
    %c0_115 = arith.constant 0 : index
    %116 = vector.load %arg2[%c0_113, %115, %c1_114, %c0_115] : memref<1x18x18x4xbf16, #tpu.memory_space<vmem>>, vector<1x1x16x4xbf16>
    %117 = vector.shape_cast %116 : vector<1x1x16x4xbf16> to vector<16x4xbf16>
    %cst_116 = arith.constant dense<0.000000e+00> : vector<16x128xf32>
    %118 = tpu.matmul %117, %10, %cst_116 {dimension_numbers = #tpu.dot_dimension_numbers<[1], [0], [0], [1], [0, 0, 1, 1], [], []>} : vector<16x4xbf16>, vector<4x128xbf16>, vector<16x128xf32> -> vector<16x128xf32>
    %119 = arith.addf %112, %118 : vector<16x128xf32>
    %c1_i32_117 = arith.constant 1 : i32
    %120 = arith.addi %0, %c1_i32_117 : i32
    %c1_i32_118 = arith.constant 1 : i32
    %121 = arith.addi %120, %c1_i32_118 : i32
    %c0_119 = arith.constant 0 : index
    %122 = arith.index_cast %121 : i32 to index
    %c2_120 = arith.constant 2 : index
    %c0_121 = arith.constant 0 : index
    %123 = vector.load %arg2[%c0_119, %122, %c2_120, %c0_121] : memref<1x18x18x4xbf16, #tpu.memory_space<vmem>>, vector<1x1x16x4xbf16>
    %124 = vector.shape_cast %123 : vector<1x1x16x4xbf16> to vector<16x4xbf16>
    %cst_122 = arith.constant dense<0.000000e+00> : vector<16x128xf32>
    %125 = tpu.matmul %124, %12, %cst_122 {dimension_numbers = #tpu.dot_dimension_numbers<[1], [0], [0], [1], [0, 0, 1, 1], [], []>} : vector<16x4xbf16>, vector<4x128xbf16>, vector<16x128xf32> -> vector<16x128xf32>
    %126 = arith.addf %119, %125 : vector<16x128xf32>
    %c1_i32_123 = arith.constant 1 : i32
    %127 = arith.addi %0, %c1_i32_123 : i32
    %c2_i32_124 = arith.constant 2 : i32
    %128 = arith.addi %127, %c2_i32_124 : i32
    %c0_125 = arith.constant 0 : index
    %129 = arith.index_cast %128 : i32 to index
    %c0_126 = arith.constant 0 : index
    %c0_127 = arith.constant 0 : index
    %130 = vector.load %arg2[%c0_125, %129, %c0_126, %c0_127] : memref<1x18x18x4xbf16, #tpu.memory_space<vmem>>, vector<1x1x16x4xbf16>
    %131 = vector.shape_cast %130 : vector<1x1x16x4xbf16> to vector<16x4xbf16>
    %cst_128 = arith.constant dense<0.000000e+00> : vector<16x128xf32>
    %132 = tpu.matmul %131, %14, %cst_128 {dimension_numbers = #tpu.dot_dimension_numbers<[1], [0], [0], [1], [0, 0, 1, 1], [], []>} : vector<16x4xbf16>, vector<4x128xbf16>, vector<16x128xf32> -> vector<16x128xf32>
    %133 = arith.addf %126, %132 : vector<16x128xf32>
    %c1_i32_129 = arith.constant 1 : i32
    %134 = arith.addi %0, %c1_i32_129 : i32
    %c2_i32_130 = arith.constant 2 : i32
    %135 = arith.addi %134, %c2_i32_130 : i32
    %c0_131 = arith.constant 0 : index
    %136 = arith.index_cast %135 : i32 to index
    %c1_132 = arith.constant 1 : index
    %c0_133 = arith.constant 0 : index
    %137 = vector.load %arg2[%c0_131, %136, %c1_132, %c0_133] : memref<1x18x18x4xbf16, #tpu.memory_space<vmem>>, vector<1x1x16x4xbf16>
    %138 = vector.shape_cast %137 : vector<1x1x16x4xbf16> to vector<16x4xbf16>
    %cst_134 = arith.constant dense<0.000000e+00> : vector<16x128xf32>
    %139 = tpu.matmul %138, %16, %cst_134 {dimension_numbers = #tpu.dot_dimension_numbers<[1], [0], [0], [1], [0, 0, 1, 1], [], []>} : vector<16x4xbf16>, vector<4x128xbf16>, vector<16x128xf32> -> vector<16x128xf32>
    %140 = arith.addf %133, %139 : vector<16x128xf32>
    %c1_i32_135 = arith.constant 1 : i32
    %141 = arith.addi %0, %c1_i32_135 : i32
    %c2_i32_136 = arith.constant 2 : i32
    %142 = arith.addi %141, %c2_i32_136 : i32
    %c0_137 = arith.constant 0 : index
    %143 = arith.index_cast %142 : i32 to index
    %c2_138 = arith.constant 2 : index
    %c0_139 = arith.constant 0 : index
    %144 = vector.load %arg2[%c0_137, %143, %c2_138, %c0_139] : memref<1x18x18x4xbf16, #tpu.memory_space<vmem>>, vector<1x1x16x4xbf16>
    %145 = vector.shape_cast %144 : vector<1x1x16x4xbf16> to vector<16x4xbf16>
    %cst_140 = arith.constant dense<0.000000e+00> : vector<16x128xf32>
    %146 = tpu.matmul %145, %18, %cst_140 {dimension_numbers = #tpu.dot_dimension_numbers<[1], [0], [0], [1], [0, 0, 1, 1], [], []>} : vector<16x4xbf16>, vector<4x128xbf16>, vector<16x128xf32> -> vector<16x128xf32>
    %147 = arith.addf %140, %146 : vector<16x128xf32>
    %c16 = arith.constant 16 : index
    %c0_141 = arith.constant 0 : index
    %148 = vector.load %arg4[%c16, %c0_141] : memref<256x128xf32, #tpu.memory_space<vmem>>, vector<16x128xf32>
    tpu.vector_store %arg4[%c16, %c0_141], %147 {strides = array<i32>} : memref<256x128xf32, #tpu.memory_space<vmem>>, vector<16x128xf32>,
    %cst_142 = arith.constant 0.000000e+00 : f32
    %149 = vector.broadcast %cst_142 : f32 to vector<16x128xf32>
    %c2_i32_143 = arith.constant 2 : i32
    %150 = arith.addi %0, %c2_i32_143 : i32
    %c0_i32_144 = arith.constant 0 : i32
    %151 = arith.addi %150, %c0_i32_144 : i32
    %c0_145 = arith.constant 0 : index
    %152 = arith.index_cast %151 : i32 to index
    %c0_146 = arith.constant 0 : index
    %c0_147 = arith.constant 0 : index
    %153 = vector.load %arg2[%c0_145, %152, %c0_146, %c0_147] : memref<1x18x18x4xbf16, #tpu.memory_space<vmem>>, vector<1x1x16x4xbf16>
    %154 = vector.shape_cast %153 : vector<1x1x16x4xbf16> to vector<16x4xbf16>
    %cst_148 = arith.constant dense<0.000000e+00> : vector<16x128xf32>
    %155 = tpu.matmul %154, %2, %cst_148 {dimension_numbers = #tpu.dot_dimension_numbers<[1], [0], [0], [1], [0, 0, 1, 1], [], []>} : vector<16x4xbf16>, vector<4x128xbf16>, vector<16x128xf32> -> vector<16x128xf32>
    %156 = arith.addf %149, %155 : vector<16x128xf32>
    %c2_i32_149 = arith.constant 2 : i32
    %157 = arith.addi %0, %c2_i32_149 : i32
    %c0_i32_150 = arith.constant 0 : i32
    %158 = arith.addi %157, %c0_i32_150 : i32
    %c0_151 = arith.constant 0 : index
    %159 = arith.index_cast %158 : i32 to index
    %c1_152 = arith.constant 1 : index
    %c0_153 = arith.constant 0 : index
    %160 = vector.load %arg2[%c0_151, %159, %c1_152, %c0_153] : memref<1x18x18x4xbf16, #tpu.memory_space<vmem>>, vector<1x1x16x4xbf16>
    %161 = vector.shape_cast %160 : vector<1x1x16x4xbf16> to vector<16x4xbf16>
    %cst_154 = arith.constant dense<0.000000e+00> : vector<16x128xf32>
    %162 = tpu.matmul %161, %4, %cst_154 {dimension_numbers = #tpu.dot_dimension_numbers<[1], [0], [0], [1], [0, 0, 1, 1], [], []>} : vector<16x4xbf16>, vector<4x128xbf16>, vector<16x128xf32> -> vector<16x128xf32>
    %163 = arith.addf %156, %162 : vector<16x128xf32>
    %c2_i32_155 = arith.constant 2 : i32
    %164 = arith.addi %0, %c2_i32_155 : i32
    %c0_i32_156 = arith.constant 0 : i32
    %165 = arith.addi %164, %c0_i32_156 : i32
    %c0_157 = arith.constant 0 : index
    %166 = arith.index_cast %165 : i32 to index
    %c2_158 = arith.constant 2 : index
    %c0_159 = arith.constant 0 : index
    %167 = vector.load %arg2[%c0_157, %166, %c2_158, %c0_159] : memref<1x18x18x4xbf16, #tpu.memory_space<vmem>>, vector<1x1x16x4xbf16>
    %168 = vector.shape_cast %167 : vector<1x1x16x4xbf16> to vector<16x4xbf16>
    %cst_160 = arith.constant dense<0.000000e+00> : vector<16x128xf32>
    %169 = tpu.matmul %168, %6, %cst_160 {dimension_numbers = #tpu.dot_dimension_numbers<[1], [0], [0], [1], [0, 0, 1, 1], [], []>} : vector<16x4xbf16>, vector<4x128xbf16>, vector<16x128xf32> -> vector<16x128xf32>
    %170 = arith.addf %163, %169 : vector<16x128xf32>
    %c2_i32_161 = arith.constant 2 : i32
    %171 = arith.addi %0, %c2_i32_161 : i32
    %c1_i32_162 = arith.constant 1 : i32
    %172 = arith.addi %171, %c1_i32_162 : i32
    %c0_163 = arith.constant 0 : index
    %173 = arith.index_cast %172 : i32 to index
    %c0_164 = arith.constant 0 : index
    %c0_165 = arith.constant 0 : index
    %174 = vector.load %arg2[%c0_163, %173, %c0_164, %c0_165] : memref<1x18x18x4xbf16, #tpu.memory_space<vmem>>, vector<1x1x16x4xbf16>
    %175 = vector.shape_cast %174 : vector<1x1x16x4xbf16> to vector<16x4xbf16>
    %cst_166 = arith.constant dense<0.000000e+00> : vector<16x128xf32>
    %176 = tpu.matmul %175, %8, %cst_166 {dimension_numbers = #tpu.dot_dimension_numbers<[1], [0], [0], [1], [0, 0, 1, 1], [], []>} : vector<16x4xbf16>, vector<4x128xbf16>, vector<16x128xf32> -> vector<16x128xf32>
    %177 = arith.addf %170, %176 : vector<16x128xf32>
    %c2_i32_167 = arith.constant 2 : i32
    %178 = arith.addi %0, %c2_i32_167 : i32
    %c1_i32_168 = arith.constant 1 : i32
    %179 = arith.addi %178, %c1_i32_168 : i32
    %c0_169 = arith.constant 0 : index
    %180 = arith.index_cast %179 : i32 to index
    %c1_170 = arith.constant 1 : index
    %c0_171 = arith.constant 0 : index
    %181 = vector.load %arg2[%c0_169, %180, %c1_170, %c0_171] : memref<1x18x18x4xbf16, #tpu.memory_space<vmem>>, vector<1x1x16x4xbf16>
    %182 = vector.shape_cast %181 : vector<1x1x16x4xbf16> to vector<16x4xbf16>
    %cst_172 = arith.constant dense<0.000000e+00> : vector<16x128xf32>
    %183 = tpu.matmul %182, %10, %cst_172 {dimension_numbers = #tpu.dot_dimension_numbers<[1], [0], [0], [1], [0, 0, 1, 1], [], []>} : vector<16x4xbf16>, vector<4x128xbf16>, vector<16x128xf32> -> vector<16x128xf32>
    %184 = arith.addf %177, %183 : vector<16x128xf32>
    %c2_i32_173 = arith.constant 2 : i32
    %185 = arith.addi %0, %c2_i32_173 : i32
    %c1_i32_174 = arith.constant 1 : i32
    %186 = arith.addi %185, %c1_i32_174 : i32
    %c0_175 = arith.constant 0 : index
    %187 = arith.index_cast %186 : i32 to index
    %c2_176 = arith.constant 2 : index
    %c0_177 = arith.constant 0 : index
    %188 = vector.load %arg2[%c0_175, %187, %c2_176, %c0_177] : memref<1x18x18x4xbf16, #tpu.memory_space<vmem>>, vector<1x1x16x4xbf16>
    %189 = vector.shape_cast %188 : vector<1x1x16x4xbf16> to vector<16x4xbf16>
    %cst_178 = arith.constant dense<0.000000e+00> : vector<16x128xf32>
    %190 = tpu.matmul %189, %12, %cst_178 {dimension_numbers = #tpu.dot_dimension_numbers<[1], [0], [0], [1], [0, 0, 1, 1], [], []>} : vector<16x4xbf16>, vector<4x128xbf16>, vector<16x128xf32> -> vector<16x128xf32>
    %191 = arith.addf %184, %190 : vector<16x128xf32>
    %c2_i32_179 = arith.constant 2 : i32
    %192 = arith.addi %0, %c2_i32_179 : i32
    %c2_i32_180 = arith.constant 2 : i32
    %193 = arith.addi %192, %c2_i32_180 : i32
    %c0_181 = arith.constant 0 : index
    %194 = arith.index_cast %193 : i32 to index
    %c0_182 = arith.constant 0 : index
    %c0_183 = arith.constant 0 : index
    %195 = vector.load %arg2[%c0_181, %194, %c0_182, %c0_183] : memref<1x18x18x4xbf16, #tpu.memory_space<vmem>>, vector<1x1x16x4xbf16>
    %196 = vector.shape_cast %195 : vector<1x1x16x4xbf16> to vector<16x4xbf16>
    %cst_184 = arith.constant dense<0.000000e+00> : vector<16x128xf32>
    %197 = tpu.matmul %196, %14, %cst_184 {dimension_numbers = #tpu.dot_dimension_numbers<[1], [0], [0], [1], [0, 0, 1, 1], [], []>} : vector<16x4xbf16>, vector<4x128xbf16>, vector<16x128xf32> -> vector<16x128xf32>
    %198 = arith.addf %191, %197 : vector<16x128xf32>
    %c2_i32_185 = arith.constant 2 : i32
    %199 = arith.addi %0, %c2_i32_185 : i32
    %c2_i32_186 = arith.constant 2 : i32
    %200 = arith.addi %199, %c2_i32_186 : i32
    %c0_187 = arith.constant 0 : index
    %201 = arith.index_cast %200 : i32 to index
    %c1_188 = arith.constant 1 : index
    %c0_189 = arith.constant 0 : index
    %202 = vector.load %arg2[%c0_187, %201, %c1_188, %c0_189] : memref<1x18x18x4xbf16, #tpu.memory_space<vmem>>, vector<1x1x16x4xbf16>
    %203 = vector.shape_cast %202 : vector<1x1x16x4xbf16> to vector<16x4xbf16>
    %cst_190 = arith.constant dense<0.000000e+00> : vector<16x128xf32>
    %204 = tpu.matmul %203, %16, %cst_190 {dimension_numbers = #tpu.dot_dimension_numbers<[1], [0], [0], [1], [0, 0, 1, 1], [], []>} : vector<16x4xbf16>, vector<4x128xbf16>, vector<16x128xf32> -> vector<16x128xf32>
    %205 = arith.addf %198, %204 : vector<16x128xf32>
    %c2_i32_191 = arith.constant 2 : i32
    %206 = arith.addi %0, %c2_i32_191 : i32
    %c2_i32_192 = arith.constant 2 : i32
    %207 = arith.addi %206, %c2_i32_192 : i32
    %c0_193 = arith.constant 0 : index
    %208 = arith.index_cast %207 : i32 to index
    %c2_194 = arith.constant 2 : index
    %c0_195 = arith.constant 0 : index
    %209 = vector.load %arg2[%c0_193, %208, %c2_194, %c0_195] : memref<1x18x18x4xbf16, #tpu.memory_space<vmem>>, vector<1x1x16x4xbf16>
    %210 = vector.shape_cast %209 : vector<1x1x16x4xbf16> to vector<16x4xbf16>
    %cst_196 = arith.constant dense<0.000000e+00> : vector<16x128xf32>
    %211 = tpu.matmul %210, %18, %cst_196 {dimension_numbers = #tpu.dot_dimension_numbers<[1], [0], [0], [1], [0, 0, 1, 1], [], []>} : vector<16x4xbf16>, vector<4x128xbf16>, vector<16x128xf32> -> vector<16x128xf32>
    %212 = arith.addf %205, %211 : vector<16x128xf32>
    %c32 = arith.constant 32 : index
    %c0_197 = arith.constant 0 : index
    %213 = vector.load %arg4[%c32, %c0_197] : memref<256x128xf32, #tpu.memory_space<vmem>>, vector<16x128xf32>
    tpu.vector_store %arg4[%c32, %c0_197], %212 {strides = array<i32>} : memref<256x128xf32, #tpu.memory_space<vmem>>, vector<16x128xf32>,
    %cst_198 = arith.constant 0.000000e+00 : f32
    %214 = vector.broadcast %cst_198 : f32 to vector<16x128xf32>
    %c3_i32 = arith.constant 3 : i32
    %215 = arith.addi %0, %c3_i32 : i32
    %c0_i32_199 = arith.constant 0 : i32
    %216 = arith.addi %215, %c0_i32_199 : i32
    %c0_200 = arith.constant 0 : index
    %217 = arith.index_cast %216 : i32 to index
    %c0_201 = arith.constant 0 : index
    %c0_202 = arith.constant 0 : index
    %218 = vector.load %arg2[%c0_200, %217, %c0_201, %c0_202] : memref<1x18x18x4xbf16, #tpu.memory_space<vmem>>, vector<1x1x16x4xbf16>
    %219 = vector.shape_cast %218 : vector<1x1x16x4xbf16> to vector<16x4xbf16>
    %cst_203 = arith.constant dense<0.000000e+00> : vector<16x128xf32>
    %220 = tpu.matmul %219, %2, %cst_203 {dimension_numbers = #tpu.dot_dimension_numbers<[1], [0], [0], [1], [0, 0, 1, 1], [], []>} : vector<16x4xbf16>, vector<4x128xbf16>, vector<16x128xf32> -> vector<16x128xf32>
    %221 = arith.addf %214, %220 : vector<16x128xf32>
    %c3_i32_204 = arith.constant 3 : i32
    %222 = arith.addi %0, %c3_i32_204 : i32
    %c0_i32_205 = arith.constant 0 : i32
    %223 = arith.addi %222, %c0_i32_205 : i32
    %c0_206 = arith.constant 0 : index
    %224 = arith.index_cast %223 : i32 to index
    %c1_207 = arith.constant 1 : index
    %c0_208 = arith.constant 0 : index
    %225 = vector.load %arg2[%c0_206, %224, %c1_207, %c0_208] : memref<1x18x18x4xbf16, #tpu.memory_space<vmem>>, vector<1x1x16x4xbf16>
    %226 = vector.shape_cast %225 : vector<1x1x16x4xbf16> to vector<16x4xbf16>
    %cst_209 = arith.constant dense<0.000000e+00> : vector<16x128xf32>
    %227 = tpu.matmul %226, %4, %cst_209 {dimension_numbers = #tpu.dot_dimension_numbers<[1], [0], [0], [1], [0, 0, 1, 1], [], []>} : vector<16x4xbf16>, vector<4x128xbf16>, vector<16x128xf32> -> vector<16x128xf32>
    %228 = arith.addf %221, %227 : vector<16x128xf32>
    %c3_i32_210 = arith.constant 3 : i32
    %229 = arith.addi %0, %c3_i32_210 : i32
    %c0_i32_211 = arith.constant 0 : i32
    %230 = arith.addi %229, %c0_i32_211 : i32
    %c0_212 = arith.constant 0 : index
    %231 = arith.index_cast %230 : i32 to index
    %c2_213 = arith.constant 2 : index
    %c0_214 = arith.constant 0 : index
    %232 = vector.load %arg2[%c0_212, %231, %c2_213, %c0_214] : memref<1x18x18x4xbf16, #tpu.memory_space<vmem>>, vector<1x1x16x4xbf16>
    %233 = vector.shape_cast %232 : vector<1x1x16x4xbf16> to vector<16x4xbf16>
    %cst_215 = arith.constant dense<0.000000e+00> : vector<16x128xf32>
    %234 = tpu.matmul %233, %6, %cst_215 {dimension_numbers = #tpu.dot_dimension_numbers<[1], [0], [0], [1], [0, 0, 1, 1], [], []>} : vector<16x4xbf16>, vector<4x128xbf16>, vector<16x128xf32> -> vector<16x128xf32>
    %235 = arith.addf %228, %234 : vector<16x128xf32>
    %c3_i32_216 = arith.constant 3 : i32
    %236 = arith.addi %0, %c3_i32_216 : i32
    %c1_i32_217 = arith.constant 1 : i32
    %237 = arith.addi %236, %c1_i32_217 : i32
    %c0_218 = arith.constant 0 : index
    %238 = arith.index_cast %237 : i32 to index
    %c0_219 = arith.constant 0 : index
    %c0_220 = arith.constant 0 : index
    %239 = vector.load %arg2[%c0_218, %238, %c0_219, %c0_220] : memref<1x18x18x4xbf16, #tpu.memory_space<vmem>>, vector<1x1x16x4xbf16>
    %240 = vector.shape_cast %239 : vector<1x1x16x4xbf16> to vector<16x4xbf16>
    %cst_221 = arith.constant dense<0.000000e+00> : vector<16x128xf32>
    %241 = tpu.matmul %240, %8, %cst_221 {dimension_numbers = #tpu.dot_dimension_numbers<[1], [0], [0], [1], [0, 0, 1, 1], [], []>} : vector<16x4xbf16>, vector<4x128xbf16>, vector<16x128xf32> -> vector<16x128xf32>
    %242 = arith.addf %235, %241 : vector<16x128xf32>
    %c3_i32_222 = arith.constant 3 : i32
    %243 = arith.addi %0, %c3_i32_222 : i32
    %c1_i32_223 = arith.constant 1 : i32
    %244 = arith.addi %243, %c1_i32_223 : i32
    %c0_224 = arith.constant 0 : index
    %245 = arith.index_cast %244 : i32 to index
    %c1_225 = arith.constant 1 : index
    %c0_226 = arith.constant 0 : index
    %246 = vector.load %arg2[%c0_224, %245, %c1_225, %c0_226] : memref<1x18x18x4xbf16, #tpu.memory_space<vmem>>, vector<1x1x16x4xbf16>
    %247 = vector.shape_cast %246 : vector<1x1x16x4xbf16> to vector<16x4xbf16>
    %cst_227 = arith.constant dense<0.000000e+00> : vector<16x128xf32>
    %248 = tpu.matmul %247, %10, %cst_227 {dimension_numbers = #tpu.dot_dimension_numbers<[1], [0], [0], [1], [0, 0, 1, 1], [], []>} : vector<16x4xbf16>, vector<4x128xbf16>, vector<16x128xf32> -> vector<16x128xf32>
    %249 = arith.addf %242, %248 : vector<16x128xf32>
    %c3_i32_228 = arith.constant 3 : i32
    %250 = arith.addi %0, %c3_i32_228 : i32
    %c1_i32_229 = arith.constant 1 : i32
    %251 = arith.addi %250, %c1_i32_229 : i32
    %c0_230 = arith.constant 0 : index
    %252 = arith.index_cast %251 : i32 to index
    %c2_231 = arith.constant 2 : index
    %c0_232 = arith.constant 0 : index
    %253 = vector.load %arg2[%c0_230, %252, %c2_231, %c0_232] : memref<1x18x18x4xbf16, #tpu.memory_space<vmem>>, vector<1x1x16x4xbf16>
    %254 = vector.shape_cast %253 : vector<1x1x16x4xbf16> to vector<16x4xbf16>
    %cst_233 = arith.constant dense<0.000000e+00> : vector<16x128xf32>
    %255 = tpu.matmul %254, %12, %cst_233 {dimension_numbers = #tpu.dot_dimension_numbers<[1], [0], [0], [1], [0, 0, 1, 1], [], []>} : vector<16x4xbf16>, vector<4x128xbf16>, vector<16x128xf32> -> vector<16x128xf32>
    %256 = arith.addf %249, %255 : vector<16x128xf32>
    %c3_i32_234 = arith.constant 3 : i32
    %257 = arith.addi %0, %c3_i32_234 : i32
    %c2_i32_235 = arith.constant 2 : i32
    %258 = arith.addi %257, %c2_i32_235 : i32
    %c0_236 = arith.constant 0 : index
    %259 = arith.index_cast %258 : i32 to index
    %c0_237 = arith.constant 0 : index
    %c0_238 = arith.constant 0 : index
    %260 = vector.load %arg2[%c0_236, %259, %c0_237, %c0_238] : memref<1x18x18x4xbf16, #tpu.memory_space<vmem>>, vector<1x1x16x4xbf16>
    %261 = vector.shape_cast %260 : vector<1x1x16x4xbf16> to vector<16x4xbf16>
    %cst_239 = arith.constant dense<0.000000e+00> : vector<16x128xf32>
    %262 = tpu.matmul %261, %14, %cst_239 {dimension_numbers = #tpu.dot_dimension_numbers<[1], [0], [0], [1], [0, 0, 1, 1], [], []>} : vector<16x4xbf16>, vector<4x128xbf16>, vector<16x128xf32> -> vector<16x128xf32>
    %263 = arith.addf %256, %262 : vector<16x128xf32>
    %c3_i32_240 = arith.constant 3 : i32
    %264 = arith.addi %0, %c3_i32_240 : i32
    %c2_i32_241 = arith.constant 2 : i32
    %265 = arith.addi %264, %c2_i32_241 : i32
    %c0_242 = arith.constant 0 : index
    %266 = arith.index_cast %265 : i32 to index
    %c1_243 = arith.constant 1 : index
    %c0_244 = arith.constant 0 : index
    %267 = vector.load %arg2[%c0_242, %266, %c1_243, %c0_244] : memref<1x18x18x4xbf16, #tpu.memory_space<vmem>>, vector<1x1x16x4xbf16>
    %268 = vector.shape_cast %267 : vector<1x1x16x4xbf16> to vector<16x4xbf16>
    %cst_245 = arith.constant dense<0.000000e+00> : vector<16x128xf32>
    %269 = tpu.matmul %268, %16, %cst_245 {dimension_numbers = #tpu.dot_dimension_numbers<[1], [0], [0], [1], [0, 0, 1, 1], [], []>} : vector<16x4xbf16>, vector<4x128xbf16>, vector<16x128xf32> -> vector<16x128xf32>
    %270 = arith.addf %263, %269 : vector<16x128xf32>
    %c3_i32_246 = arith.constant 3 : i32
    %271 = arith.addi %0, %c3_i32_246 : i32
    %c2_i32_247 = arith.constant 2 : i32
    %272 = arith.addi %271, %c2_i32_247 : i32
    %c0_248 = arith.constant 0 : index
    %273 = arith.index_cast %272 : i32 to index
    %c2_249 = arith.constant 2 : index
    %c0_250 = arith.constant 0 : index
    %274 = vector.load %arg2[%c0_248, %273, %c2_249, %c0_250] : memref<1x18x18x4xbf16, #tpu.memory_space<vmem>>, vector<1x1x16x4xbf16>
    %275 = vector.shape_cast %274 : vector<1x1x16x4xbf16> to vector<16x4xbf16>
    %cst_251 = arith.constant dense<0.000000e+00> : vector<16x128xf32>
    %276 = tpu.matmul %275, %18, %cst_251 {dimension_numbers = #tpu.dot_dimension_numbers<[1], [0], [0], [1], [0, 0, 1, 1], [], []>} : vector<16x4xbf16>, vector<4x128xbf16>, vector<16x128xf32> -> vector<16x128xf32>
    %277 = arith.addf %270, %276 : vector<16x128xf32>
    %c48 = arith.constant 48 : index
    %c0_252 = arith.constant 0 : index
    %278 = vector.load %arg4[%c48, %c0_252] : memref<256x128xf32, #tpu.memory_space<vmem>>, vector<16x128xf32>
    tpu.vector_store %arg4[%c48, %c0_252], %277 {strides = array<i32>} : memref<256x128xf32, #tpu.memory_space<vmem>>, vector<16x128xf32>,
    %cst_253 = arith.constant 0.000000e+00 : f32
    %279 = vector.broadcast %cst_253 : f32 to vector<16x128xf32>
    %c4_i32 = arith.constant 4 : i32
    %280 = arith.addi %0, %c4_i32 : i32
    %c0_i32_254 = arith.constant 0 : i32
    %281 = arith.addi %280, %c0_i32_254 : i32
    %c0_255 = arith.constant 0 : index
    %282 = arith.index_cast %281 : i32 to index
    %c0_256 = arith.constant 0 : index
    %c0_257 = arith.constant 0 : index
    %283 = vector.load %arg2[%c0_255, %282, %c0_256, %c0_257] : memref<1x18x18x4xbf16, #tpu.memory_space<vmem>>, vector<1x1x16x4xbf16>
    %284 = vector.shape_cast %283 : vector<1x1x16x4xbf16> to vector<16x4xbf16>
    %cst_258 = arith.constant dense<0.000000e+00> : vector<16x128xf32>
    %285 = tpu.matmul %284, %2, %cst_258 {dimension_numbers = #tpu.dot_dimension_numbers<[1], [0], [0], [1], [0, 0, 1, 1], [], []>} : vector<16x4xbf16>, vector<4x128xbf16>, vector<16x128xf32> -> vector<16x128xf32>
    %286 = arith.addf %279, %285 : vector<16x128xf32>
    %c4_i32_259 = arith.constant 4 : i32
    %287 = arith.addi %0, %c4_i32_259 : i32
    %c0_i32_260 = arith.constant 0 : i32
    %288 = arith.addi %287, %c0_i32_260 : i32
    %c0_261 = arith.constant 0 : index
    %289 = arith.index_cast %288 : i32 to index
    %c1_262 = arith.constant 1 : index
    %c0_263 = arith.constant 0 : index
    %290 = vector.load %arg2[%c0_261, %289, %c1_262, %c0_263] : memref<1x18x18x4xbf16, #tpu.memory_space<vmem>>, vector<1x1x16x4xbf16>
    %291 = vector.shape_cast %290 : vector<1x1x16x4xbf16> to vector<16x4xbf16>
    %cst_264 = arith.constant dense<0.000000e+00> : vector<16x128xf32>
    %292 = tpu.matmul %291, %4, %cst_264 {dimension_numbers = #tpu.dot_dimension_numbers<[1], [0], [0], [1], [0, 0, 1, 1], [], []>} : vector<16x4xbf16>, vector<4x128xbf16>, vector<16x128xf32> -> vector<16x128xf32>
    %293 = arith.addf %286, %292 : vector<16x128xf32>
    %c4_i32_265 = arith.constant 4 : i32
    %294 = arith.addi %0, %c4_i32_265 : i32
    %c0_i32_266 = arith.constant 0 : i32
    %295 = arith.addi %294, %c0_i32_266 : i32
    %c0_267 = arith.constant 0 : index
    %296 = arith.index_cast %295 : i32 to index
    %c2_268 = arith.constant 2 : index
    %c0_269 = arith.constant 0 : index
    %297 = vector.load %arg2[%c0_267, %296, %c2_268, %c0_269] : memref<1x18x18x4xbf16, #tpu.memory_space<vmem>>, vector<1x1x16x4xbf16>
    %298 = vector.shape_cast %297 : vector<1x1x16x4xbf16> to vector<16x4xbf16>
    %cst_270 = arith.constant dense<0.000000e+00> : vector<16x128xf32>
    %299 = tpu.matmul %298, %6, %cst_270 {dimension_numbers = #tpu.dot_dimension_numbers<[1], [0], [0], [1], [0, 0, 1, 1], [], []>} : vector<16x4xbf16>, vector<4x128xbf16>, vector<16x128xf32> -> vector<16x128xf32>
    %300 = arith.addf %293, %299 : vector<16x128xf32>
    %c4_i32_271 = arith.constant 4 : i32
    %301 = arith.addi %0, %c4_i32_271 : i32
    %c1_i32_272 = arith.constant 1 : i32
    %302 = arith.addi %301, %c1_i32_272 : i32
    %c0_273 = arith.constant 0 : index
    %303 = arith.index_cast %302 : i32 to index
    %c0_274 = arith.constant 0 : index
    %c0_275 = arith.constant 0 : index
    %304 = vector.load %arg2[%c0_273, %303, %c0_274, %c0_275] : memref<1x18x18x4xbf16, #tpu.memory_space<vmem>>, vector<1x1x16x4xbf16>
    %305 = vector.shape_cast %304 : vector<1x1x16x4xbf16> to vector<16x4xbf16>
    %cst_276 = arith.constant dense<0.000000e+00> : vector<16x128xf32>
    %306 = tpu.matmul %305, %8, %cst_276 {dimension_numbers = #tpu.dot_dimension_numbers<[1], [0], [0], [1], [0, 0, 1, 1], [], []>} : vector<16x4xbf16>, vector<4x128xbf16>, vector<16x128xf32> -> vector<16x128xf32>
    %307 = arith.addf %300, %306 : vector<16x128xf32>
    %c4_i32_277 = arith.constant 4 : i32
    %308 = arith.addi %0, %c4_i32_277 : i32
    %c1_i32_278 = arith.constant 1 : i32
    %309 = arith.addi %308, %c1_i32_278 : i32
    %c0_279 = arith.constant 0 : index
    %310 = arith.index_cast %309 : i32 to index
    %c1_280 = arith.constant 1 : index
    %c0_281 = arith.constant 0 : index
    %311 = vector.load %arg2[%c0_279, %310, %c1_280, %c0_281] : memref<1x18x18x4xbf16, #tpu.memory_space<vmem>>, vector<1x1x16x4xbf16>
    %312 = vector.shape_cast %311 : vector<1x1x16x4xbf16> to vector<16x4xbf16>
    %cst_282 = arith.constant dense<0.000000e+00> : vector<16x128xf32>
    %313 = tpu.matmul %312, %10, %cst_282 {dimension_numbers = #tpu.dot_dimension_numbers<[1], [0], [0], [1], [0, 0, 1, 1], [], []>} : vector<16x4xbf16>, vector<4x128xbf16>, vector<16x128xf32> -> vector<16x128xf32>
    %314 = arith.addf %307, %313 : vector<16x128xf32>
    %c4_i32_283 = arith.constant 4 : i32
    %315 = arith.addi %0, %c4_i32_283 : i32
    %c1_i32_284 = arith.constant 1 : i32
    %316 = arith.addi %315, %c1_i32_284 : i32
    %c0_285 = arith.constant 0 : index
    %317 = arith.index_cast %316 : i32 to index
    %c2_286 = arith.constant 2 : index
    %c0_287 = arith.constant 0 : index
    %318 = vector.load %arg2[%c0_285, %317, %c2_286, %c0_287] : memref<1x18x18x4xbf16, #tpu.memory_space<vmem>>, vector<1x1x16x4xbf16>
    %319 = vector.shape_cast %318 : vector<1x1x16x4xbf16> to vector<16x4xbf16>
    %cst_288 = arith.constant dense<0.000000e+00> : vector<16x128xf32>
    %320 = tpu.matmul %319, %12, %cst_288 {dimension_numbers = #tpu.dot_dimension_numbers<[1], [0], [0], [1], [0, 0, 1, 1], [], []>} : vector<16x4xbf16>, vector<4x128xbf16>, vector<16x128xf32> -> vector<16x128xf32>
    %321 = arith.addf %314, %320 : vector<16x128xf32>
    %c4_i32_289 = arith.constant 4 : i32
    %322 = arith.addi %0, %c4_i32_289 : i32
    %c2_i32_290 = arith.constant 2 : i32
    %323 = arith.addi %322, %c2_i32_290 : i32
    %c0_291 = arith.constant 0 : index
    %324 = arith.index_cast %323 : i32 to index
    %c0_292 = arith.constant 0 : index
    %c0_293 = arith.constant 0 : index
    %325 = vector.load %arg2[%c0_291, %324, %c0_292, %c0_293] : memref<1x18x18x4xbf16, #tpu.memory_space<vmem>>, vector<1x1x16x4xbf16>
    %326 = vector.shape_cast %325 : vector<1x1x16x4xbf16> to vector<16x4xbf16>
    %cst_294 = arith.constant dense<0.000000e+00> : vector<16x128xf32>
    %327 = tpu.matmul %326, %14, %cst_294 {dimension_numbers = #tpu.dot_dimension_numbers<[1], [0], [0], [1], [0, 0, 1, 1], [], []>} : vector<16x4xbf16>, vector<4x128xbf16>, vector<16x128xf32> -> vector<16x128xf32>
    %328 = arith.addf %321, %327 : vector<16x128xf32>
    %c4_i32_295 = arith.constant 4 : i32
    %329 = arith.addi %0, %c4_i32_295 : i32
    %c2_i32_296 = arith.constant 2 : i32
    %330 = arith.addi %329, %c2_i32_296 : i32
    %c0_297 = arith.constant 0 : index
    %331 = arith.index_cast %330 : i32 to index
    %c1_298 = arith.constant 1 : index
    %c0_299 = arith.constant 0 : index
    %332 = vector.load %arg2[%c0_297, %331, %c1_298, %c0_299] : memref<1x18x18x4xbf16, #tpu.memory_space<vmem>>, vector<1x1x16x4xbf16>
    %333 = vector.shape_cast %332 : vector<1x1x16x4xbf16> to vector<16x4xbf16>
    %cst_300 = arith.constant dense<0.000000e+00> : vector<16x128xf32>
    %334 = tpu.matmul %333, %16, %cst_300 {dimension_numbers = #tpu.dot_dimension_numbers<[1], [0], [0], [1], [0, 0, 1, 1], [], []>} : vector<16x4xbf16>, vector<4x128xbf16>, vector<16x128xf32> -> vector<16x128xf32>
    %335 = arith.addf %328, %334 : vector<16x128xf32>
    %c4_i32_301 = arith.constant 4 : i32
    %336 = arith.addi %0, %c4_i32_301 : i32
    %c2_i32_302 = arith.constant 2 : i32
    %337 = arith.addi %336, %c2_i32_302 : i32
    %c0_303 = arith.constant 0 : index
    %338 = arith.index_cast %337 : i32 to index
    %c2_304 = arith.constant 2 : index
    %c0_305 = arith.constant 0 : index
    %339 = vector.load %arg2[%c0_303, %338, %c2_304, %c0_305] : memref<1x18x18x4xbf16, #tpu.memory_space<vmem>>, vector<1x1x16x4xbf16>
    %340 = vector.shape_cast %339 : vector<1x1x16x4xbf16> to vector<16x4xbf16>
    %cst_306 = arith.constant dense<0.000000e+00> : vector<16x128xf32>
    %341 = tpu.matmul %340, %18, %cst_306 {dimension_numbers = #tpu.dot_dimension_numbers<[1], [0], [0], [1], [0, 0, 1, 1], [], []>} : vector<16x4xbf16>, vector<4x128xbf16>, vector<16x128xf32> -> vector<16x128xf32>
    %342 = arith.addf %335, %341 : vector<16x128xf32>
    %c64 = arith.constant 64 : index
    %c0_307 = arith.constant 0 : index
    %343 = vector.load %arg4[%c64, %c0_307] : memref<256x128xf32, #tpu.memory_space<vmem>>, vector<16x128xf32>
    tpu.vector_store %arg4[%c64, %c0_307], %342 {strides = array<i32>} : memref<256x128xf32, #tpu.memory_space<vmem>>, vector<16x128xf32>,
    %cst_308 = arith.constant 0.000000e+00 : f32
    %344 = vector.broadcast %cst_308 : f32 to vector<16x128xf32>
    %c5_i32 = arith.constant 5 : i32
    %345 = arith.addi %0, %c5_i32 : i32
    %c0_i32_309 = arith.constant 0 : i32
    %346 = arith.addi %345, %c0_i32_309 : i32
    %c0_310 = arith.constant 0 : index
    %347 = arith.index_cast %346 : i32 to index
    %c0_311 = arith.constant 0 : index
    %c0_312 = arith.constant 0 : index
    %348 = vector.load %arg2[%c0_310, %347, %c0_311, %c0_312] : memref<1x18x18x4xbf16, #tpu.memory_space<vmem>>, vector<1x1x16x4xbf16>
    %349 = vector.shape_cast %348 : vector<1x1x16x4xbf16> to vector<16x4xbf16>
    %cst_313 = arith.constant dense<0.000000e+00> : vector<16x128xf32>
    %350 = tpu.matmul %349, %2, %cst_313 {dimension_numbers = #tpu.dot_dimension_numbers<[1], [0], [0], [1], [0, 0, 1, 1], [], []>} : vector<16x4xbf16>, vector<4x128xbf16>, vector<16x128xf32> -> vector<16x128xf32>
    %351 = arith.addf %344, %350 : vector<16x128xf32>
    %c5_i32_314 = arith.constant 5 : i32
    %352 = arith.addi %0, %c5_i32_314 : i32
    %c0_i32_315 = arith.constant 0 : i32
    %353 = arith.addi %352, %c0_i32_315 : i32
    %c0_316 = arith.constant 0 : index
    %354 = arith.index_cast %353 : i32 to index
    %c1_317 = arith.constant 1 : index
    %c0_318 = arith.constant 0 : index
    %355 = vector.load %arg2[%c0_316, %354, %c1_317, %c0_318] : memref<1x18x18x4xbf16, #tpu.memory_space<vmem>>, vector<1x1x16x4xbf16>
    %356 = vector.shape_cast %355 : vector<1x1x16x4xbf16> to vector<16x4xbf16>
    %cst_319 = arith.constant dense<0.000000e+00> : vector<16x128xf32>
    %357 = tpu.matmul %356, %4, %cst_319 {dimension_numbers = #tpu.dot_dimension_numbers<[1], [0], [0], [1], [0, 0, 1, 1], [], []>} : vector<16x4xbf16>, vector<4x128xbf16>, vector<16x128xf32> -> vector<16x128xf32>
    %358 = arith.addf %351, %357 : vector<16x128xf32>
    %c5_i32_320 = arith.constant 5 : i32
    %359 = arith.addi %0, %c5_i32_320 : i32
    %c0_i32_321 = arith.constant 0 : i32
    %360 = arith.addi %359, %c0_i32_321 : i32
    %c0_322 = arith.constant 0 : index
    %361 = arith.index_cast %360 : i32 to index
    %c2_323 = arith.constant 2 : index
    %c0_324 = arith.constant 0 : index
    %362 = vector.load %arg2[%c0_322, %361, %c2_323, %c0_324] : memref<1x18x18x4xbf16, #tpu.memory_space<vmem>>, vector<1x1x16x4xbf16>
    %363 = vector.shape_cast %362 : vector<1x1x16x4xbf16> to vector<16x4xbf16>
    %cst_325 = arith.constant dense<0.000000e+00> : vector<16x128xf32>
    %364 = tpu.matmul %363, %6, %cst_325 {dimension_numbers = #tpu.dot_dimension_numbers<[1], [0], [0], [1], [0, 0, 1, 1], [], []>} : vector<16x4xbf16>, vector<4x128xbf16>, vector<16x128xf32> -> vector<16x128xf32>
    %365 = arith.addf %358, %364 : vector<16x128xf32>
    %c5_i32_326 = arith.constant 5 : i32
    %366 = arith.addi %0, %c5_i32_326 : i32
    %c1_i32_327 = arith.constant 1 : i32
    %367 = arith.addi %366, %c1_i32_327 : i32
    %c0_328 = arith.constant 0 : index
    %368 = arith.index_cast %367 : i32 to index
    %c0_329 = arith.constant 0 : index
    %c0_330 = arith.constant 0 : index
    %369 = vector.load %arg2[%c0_328, %368, %c0_329, %c0_330] : memref<1x18x18x4xbf16, #tpu.memory_space<vmem>>, vector<1x1x16x4xbf16>
    %370 = vector.shape_cast %369 : vector<1x1x16x4xbf16> to vector<16x4xbf16>
    %cst_331 = arith.constant dense<0.000000e+00> : vector<16x128xf32>
    %371 = tpu.matmul %370, %8, %cst_331 {dimension_numbers = #tpu.dot_dimension_numbers<[1], [0], [0], [1], [0, 0, 1, 1], [], []>} : vector<16x4xbf16>, vector<4x128xbf16>, vector<16x128xf32> -> vector<16x128xf32>
    %372 = arith.addf %365, %371 : vector<16x128xf32>
    %c5_i32_332 = arith.constant 5 : i32
    %373 = arith.addi %0, %c5_i32_332 : i32
    %c1_i32_333 = arith.constant 1 : i32
    %374 = arith.addi %373, %c1_i32_333 : i32
    %c0_334 = arith.constant 0 : index
    %375 = arith.index_cast %374 : i32 to index
    %c1_335 = arith.constant 1 : index
    %c0_336 = arith.constant 0 : index
    %376 = vector.load %arg2[%c0_334, %375, %c1_335, %c0_336] : memref<1x18x18x4xbf16, #tpu.memory_space<vmem>>, vector<1x1x16x4xbf16>
    %377 = vector.shape_cast %376 : vector<1x1x16x4xbf16> to vector<16x4xbf16>
    %cst_337 = arith.constant dense<0.000000e+00> : vector<16x128xf32>
    %378 = tpu.matmul %377, %10, %cst_337 {dimension_numbers = #tpu.dot_dimension_numbers<[1], [0], [0], [1], [0, 0, 1, 1], [], []>} : vector<16x4xbf16>, vector<4x128xbf16>, vector<16x128xf32> -> vector<16x128xf32>
    %379 = arith.addf %372, %378 : vector<16x128xf32>
    %c5_i32_338 = arith.constant 5 : i32
    %380 = arith.addi %0, %c5_i32_338 : i32
    %c1_i32_339 = arith.constant 1 : i32
    %381 = arith.addi %380, %c1_i32_339 : i32
    %c0_340 = arith.constant 0 : index
    %382 = arith.index_cast %381 : i32 to index
    %c2_341 = arith.constant 2 : index
    %c0_342 = arith.constant 0 : index
    %383 = vector.load %arg2[%c0_340, %382, %c2_341, %c0_342] : memref<1x18x18x4xbf16, #tpu.memory_space<vmem>>, vector<1x1x16x4xbf16>
    %384 = vector.shape_cast %383 : vector<1x1x16x4xbf16> to vector<16x4xbf16>
    %cst_343 = arith.constant dense<0.000000e+00> : vector<16x128xf32>
    %385 = tpu.matmul %384, %12, %cst_343 {dimension_numbers = #tpu.dot_dimension_numbers<[1], [0], [0], [1], [0, 0, 1, 1], [], []>} : vector<16x4xbf16>, vector<4x128xbf16>, vector<16x128xf32> -> vector<16x128xf32>
    %386 = arith.addf %379, %385 : vector<16x128xf32>
    %c5_i32_344 = arith.constant 5 : i32
    %387 = arith.addi %0, %c5_i32_344 : i32
    %c2_i32_345 = arith.constant 2 : i32
    %388 = arith.addi %387, %c2_i32_345 : i32
    %c0_346 = arith.constant 0 : index
    %389 = arith.index_cast %388 : i32 to index
    %c0_347 = arith.constant 0 : index
    %c0_348 = arith.constant 0 : index
    %390 = vector.load %arg2[%c0_346, %389, %c0_347, %c0_348] : memref<1x18x18x4xbf16, #tpu.memory_space<vmem>>, vector<1x1x16x4xbf16>
    %391 = vector.shape_cast %390 : vector<1x1x16x4xbf16> to vector<16x4xbf16>
    %cst_349 = arith.constant dense<0.000000e+00> : vector<16x128xf32>
    %392 = tpu.matmul %391, %14, %cst_349 {dimension_numbers = #tpu.dot_dimension_numbers<[1], [0], [0], [1], [0, 0, 1, 1], [], []>} : vector<16x4xbf16>, vector<4x128xbf16>, vector<16x128xf32> -> vector<16x128xf32>
    %393 = arith.addf %386, %392 : vector<16x128xf32>
    %c5_i32_350 = arith.constant 5 : i32
    %394 = arith.addi %0, %c5_i32_350 : i32
    %c2_i32_351 = arith.constant 2 : i32
    %395 = arith.addi %394, %c2_i32_351 : i32
    %c0_352 = arith.constant 0 : index
    %396 = arith.index_cast %395 : i32 to index
    %c1_353 = arith.constant 1 : index
    %c0_354 = arith.constant 0 : index
    %397 = vector.load %arg2[%c0_352, %396, %c1_353, %c0_354] : memref<1x18x18x4xbf16, #tpu.memory_space<vmem>>, vector<1x1x16x4xbf16>
    %398 = vector.shape_cast %397 : vector<1x1x16x4xbf16> to vector<16x4xbf16>
    %cst_355 = arith.constant dense<0.000000e+00> : vector<16x128xf32>
    %399 = tpu.matmul %398, %16, %cst_355 {dimension_numbers = #tpu.dot_dimension_numbers<[1], [0], [0], [1], [0, 0, 1, 1], [], []>} : vector<16x4xbf16>, vector<4x128xbf16>, vector<16x128xf32> -> vector<16x128xf32>
    %400 = arith.addf %393, %399 : vector<16x128xf32>
    %c5_i32_356 = arith.constant 5 : i32
    %401 = arith.addi %0, %c5_i32_356 : i32
    %c2_i32_357 = arith.constant 2 : i32
    %402 = arith.addi %401, %c2_i32_357 : i32
    %c0_358 = arith.constant 0 : index
    %403 = arith.index_cast %402 : i32 to index
    %c2_359 = arith.constant 2 : index
    %c0_360 = arith.constant 0 : index
    %404 = vector.load %arg2[%c0_358, %403, %c2_359, %c0_360] : memref<1x18x18x4xbf16, #tpu.memory_space<vmem>>, vector<1x1x16x4xbf16>
    %405 = vector.shape_cast %404 : vector<1x1x16x4xbf16> to vector<16x4xbf16>
    %cst_361 = arith.constant dense<0.000000e+00> : vector<16x128xf32>
    %406 = tpu.matmul %405, %18, %cst_361 {dimension_numbers = #tpu.dot_dimension_numbers<[1], [0], [0], [1], [0, 0, 1, 1], [], []>} : vector<16x4xbf16>, vector<4x128xbf16>, vector<16x128xf32> -> vector<16x128xf32>
    %407 = arith.addf %400, %406 : vector<16x128xf32>
    %c80 = arith.constant 80 : index
    %c0_362 = arith.constant 0 : index
    %408 = vector.load %arg4[%c80, %c0_362] : memref<256x128xf32, #tpu.memory_space<vmem>>, vector<16x128xf32>
    tpu.vector_store %arg4[%c80, %c0_362], %407 {strides = array<i32>} : memref<256x128xf32, #tpu.memory_space<vmem>>, vector<16x128xf32>,
    %cst_363 = arith.constant 0.000000e+00 : f32
    %409 = vector.broadcast %cst_363 : f32 to vector<16x128xf32>
    %c6_i32 = arith.constant 6 : i32
    %410 = arith.addi %0, %c6_i32 : i32
    %c0_i32_364 = arith.constant 0 : i32
    %411 = arith.addi %410, %c0_i32_364 : i32
    %c0_365 = arith.constant 0 : index
    %412 = arith.index_cast %411 : i32 to index
    %c0_366 = arith.constant 0 : index
    %c0_367 = arith.constant 0 : index
    %413 = vector.load %arg2[%c0_365, %412, %c0_366, %c0_367] : memref<1x18x18x4xbf16, #tpu.memory_space<vmem>>, vector<1x1x16x4xbf16>
    %414 = vector.shape_cast %413 : vector<1x1x16x4xbf16> to vector<16x4xbf16>
    %cst_368 = arith.constant dense<0.000000e+00> : vector<16x128xf32>
    %415 = tpu.matmul %414, %2, %cst_368 {dimension_numbers = #tpu.dot_dimension_numbers<[1], [0], [0], [1], [0, 0, 1, 1], [], []>} : vector<16x4xbf16>, vector<4x128xbf16>, vector<16x128xf32> -> vector<16x128xf32>
    %416 = arith.addf %409, %415 : vector<16x128xf32>
    %c6_i32_369 = arith.constant 6 : i32
    %417 = arith.addi %0, %c6_i32_369 : i32
    %c0_i32_370 = arith.constant 0 : i32
    %418 = arith.addi %417, %c0_i32_370 : i32
    %c0_371 = arith.constant 0 : index
    %419 = arith.index_cast %418 : i32 to index
    %c1_372 = arith.constant 1 : index
    %c0_373 = arith.constant 0 : index
    %420 = vector.load %arg2[%c0_371, %419, %c1_372, %c0_373] : memref<1x18x18x4xbf16, #tpu.memory_space<vmem>>, vector<1x1x16x4xbf16>
    %421 = vector.shape_cast %420 : vector<1x1x16x4xbf16> to vector<16x4xbf16>
    %cst_374 = arith.constant dense<0.000000e+00> : vector<16x128xf32>
    %422 = tpu.matmul %421, %4, %cst_374 {dimension_numbers = #tpu.dot_dimension_numbers<[1], [0], [0], [1], [0, 0, 1, 1], [], []>} : vector<16x4xbf16>, vector<4x128xbf16>, vector<16x128xf32> -> vector<16x128xf32>
    %423 = arith.addf %416, %422 : vector<16x128xf32>
    %c6_i32_375 = arith.constant 6 : i32
    %424 = arith.addi %0, %c6_i32_375 : i32
    %c0_i32_376 = arith.constant 0 : i32
    %425 = arith.addi %424, %c0_i32_376 : i32
    %c0_377 = arith.constant 0 : index
    %426 = arith.index_cast %425 : i32 to index
    %c2_378 = arith.constant 2 : index
    %c0_379 = arith.constant 0 : index
    %427 = vector.load %arg2[%c0_377, %426, %c2_378, %c0_379] : memref<1x18x18x4xbf16, #tpu.memory_space<vmem>>, vector<1x1x16x4xbf16>
    %428 = vector.shape_cast %427 : vector<1x1x16x4xbf16> to vector<16x4xbf16>
    %cst_380 = arith.constant dense<0.000000e+00> : vector<16x128xf32>
    %429 = tpu.matmul %428, %6, %cst_380 {dimension_numbers = #tpu.dot_dimension_numbers<[1], [0], [0], [1], [0, 0, 1, 1], [], []>} : vector<16x4xbf16>, vector<4x128xbf16>, vector<16x128xf32> -> vector<16x128xf32>
    %430 = arith.addf %423, %429 : vector<16x128xf32>
    %c6_i32_381 = arith.constant 6 : i32
    %431 = arith.addi %0, %c6_i32_381 : i32
    %c1_i32_382 = arith.constant 1 : i32
    %432 = arith.addi %431, %c1_i32_382 : i32
    %c0_383 = arith.constant 0 : index
    %433 = arith.index_cast %432 : i32 to index
    %c0_384 = arith.constant 0 : index
    %c0_385 = arith.constant 0 : index
    %434 = vector.load %arg2[%c0_383, %433, %c0_384, %c0_385] : memref<1x18x18x4xbf16, #tpu.memory_space<vmem>>, vector<1x1x16x4xbf16>
    %435 = vector.shape_cast %434 : vector<1x1x16x4xbf16> to vector<16x4xbf16>
    %cst_386 = arith.constant dense<0.000000e+00> : vector<16x128xf32>
    %436 = tpu.matmul %435, %8, %cst_386 {dimension_numbers = #tpu.dot_dimension_numbers<[1], [0], [0], [1], [0, 0, 1, 1], [], []>} : vector<16x4xbf16>, vector<4x128xbf16>, vector<16x128xf32> -> vector<16x128xf32>
    %437 = arith.addf %430, %436 : vector<16x128xf32>
    %c6_i32_387 = arith.constant 6 : i32
    %438 = arith.addi %0, %c6_i32_387 : i32
    %c1_i32_388 = arith.constant 1 : i32
    %439 = arith.addi %438, %c1_i32_388 : i32
    %c0_389 = arith.constant 0 : index
    %440 = arith.index_cast %439 : i32 to index
    %c1_390 = arith.constant 1 : index
    %c0_391 = arith.constant 0 : index
    %441 = vector.load %arg2[%c0_389, %440, %c1_390, %c0_391] : memref<1x18x18x4xbf16, #tpu.memory_space<vmem>>, vector<1x1x16x4xbf16>
    %442 = vector.shape_cast %441 : vector<1x1x16x4xbf16> to vector<16x4xbf16>
    %cst_392 = arith.constant dense<0.000000e+00> : vector<16x128xf32>
    %443 = tpu.matmul %442, %10, %cst_392 {dimension_numbers = #tpu.dot_dimension_numbers<[1], [0], [0], [1], [0, 0, 1, 1], [], []>} : vector<16x4xbf16>, vector<4x128xbf16>, vector<16x128xf32> -> vector<16x128xf32>
    %444 = arith.addf %437, %443 : vector<16x128xf32>
    %c6_i32_393 = arith.constant 6 : i32
    %445 = arith.addi %0, %c6_i32_393 : i32
    %c1_i32_394 = arith.constant 1 : i32
    %446 = arith.addi %445, %c1_i32_394 : i32
    %c0_395 = arith.constant 0 : index
    %447 = arith.index_cast %446 : i32 to index
    %c2_396 = arith.constant 2 : index
    %c0_397 = arith.constant 0 : index
    %448 = vector.load %arg2[%c0_395, %447, %c2_396, %c0_397] : memref<1x18x18x4xbf16, #tpu.memory_space<vmem>>, vector<1x1x16x4xbf16>
    %449 = vector.shape_cast %448 : vector<1x1x16x4xbf16> to vector<16x4xbf16>
    %cst_398 = arith.constant dense<0.000000e+00> : vector<16x128xf32>
    %450 = tpu.matmul %449, %12, %cst_398 {dimension_numbers = #tpu.dot_dimension_numbers<[1], [0], [0], [1], [0, 0, 1, 1], [], []>} : vector<16x4xbf16>, vector<4x128xbf16>, vector<16x128xf32> -> vector<16x128xf32>
    %451 = arith.addf %444, %450 : vector<16x128xf32>
    %c6_i32_399 = arith.constant 6 : i32
    %452 = arith.addi %0, %c6_i32_399 : i32
    %c2_i32_400 = arith.constant 2 : i32
    %453 = arith.addi %452, %c2_i32_400 : i32
    %c0_401 = arith.constant 0 : index
    %454 = arith.index_cast %453 : i32 to index
    %c0_402 = arith.constant 0 : index
    %c0_403 = arith.constant 0 : index
    %455 = vector.load %arg2[%c0_401, %454, %c0_402, %c0_403] : memref<1x18x18x4xbf16, #tpu.memory_space<vmem>>, vector<1x1x16x4xbf16>
    %456 = vector.shape_cast %455 : vector<1x1x16x4xbf16> to vector<16x4xbf16>
    %cst_404 = arith.constant dense<0.000000e+00> : vector<16x128xf32>
    %457 = tpu.matmul %456, %14, %cst_404 {dimension_numbers = #tpu.dot_dimension_numbers<[1], [0], [0], [1], [0, 0, 1, 1], [], []>} : vector<16x4xbf16>, vector<4x128xbf16>, vector<16x128xf32> -> vector<16x128xf32>
    %458 = arith.addf %451, %457 : vector<16x128xf32>
    %c6_i32_405 = arith.constant 6 : i32
    %459 = arith.addi %0, %c6_i32_405 : i32
    %c2_i32_406 = arith.constant 2 : i32
    %460 = arith.addi %459, %c2_i32_406 : i32
    %c0_407 = arith.constant 0 : index
    %461 = arith.index_cast %460 : i32 to index
    %c1_408 = arith.constant 1 : index
    %c0_409 = arith.constant 0 : index
    %462 = vector.load %arg2[%c0_407, %461, %c1_408, %c0_409] : memref<1x18x18x4xbf16, #tpu.memory_space<vmem>>, vector<1x1x16x4xbf16>
    %463 = vector.shape_cast %462 : vector<1x1x16x4xbf16> to vector<16x4xbf16>
    %cst_410 = arith.constant dense<0.000000e+00> : vector<16x128xf32>
    %464 = tpu.matmul %463, %16, %cst_410 {dimension_numbers = #tpu.dot_dimension_numbers<[1], [0], [0], [1], [0, 0, 1, 1], [], []>} : vector<16x4xbf16>, vector<4x128xbf16>, vector<16x128xf32> -> vector<16x128xf32>
    %465 = arith.addf %458, %464 : vector<16x128xf32>
    %c6_i32_411 = arith.constant 6 : i32
    %466 = arith.addi %0, %c6_i32_411 : i32
    %c2_i32_412 = arith.constant 2 : i32
    %467 = arith.addi %466, %c2_i32_412 : i32
    %c0_413 = arith.constant 0 : index
    %468 = arith.index_cast %467 : i32 to index
    %c2_414 = arith.constant 2 : index
    %c0_415 = arith.constant 0 : index
    %469 = vector.load %arg2[%c0_413, %468, %c2_414, %c0_415] : memref<1x18x18x4xbf16, #tpu.memory_space<vmem>>, vector<1x1x16x4xbf16>
    %470 = vector.shape_cast %469 : vector<1x1x16x4xbf16> to vector<16x4xbf16>
    %cst_416 = arith.constant dense<0.000000e+00> : vector<16x128xf32>
    %471 = tpu.matmul %470, %18, %cst_416 {dimension_numbers = #tpu.dot_dimension_numbers<[1], [0], [0], [1], [0, 0, 1, 1], [], []>} : vector<16x4xbf16>, vector<4x128xbf16>, vector<16x128xf32> -> vector<16x128xf32>
    %472 = arith.addf %465, %471 : vector<16x128xf32>
    %c96 = arith.constant 96 : index
    %c0_417 = arith.constant 0 : index
    %473 = vector.load %arg4[%c96, %c0_417] : memref<256x128xf32, #tpu.memory_space<vmem>>, vector<16x128xf32>
    tpu.vector_store %arg4[%c96, %c0_417], %472 {strides = array<i32>} : memref<256x128xf32, #tpu.memory_space<vmem>>, vector<16x128xf32>,
    %cst_418 = arith.constant 0.000000e+00 : f32
    %474 = vector.broadcast %cst_418 : f32 to vector<16x128xf32>
    %c7_i32 = arith.constant 7 : i32
    %475 = arith.addi %0, %c7_i32 : i32
    %c0_i32_419 = arith.constant 0 : i32
    %476 = arith.addi %475, %c0_i32_419 : i32
    %c0_420 = arith.constant 0 : index
    %477 = arith.index_cast %476 : i32 to index
    %c0_421 = arith.constant 0 : index
    %c0_422 = arith.constant 0 : index
    %478 = vector.load %arg2[%c0_420, %477, %c0_421, %c0_422] : memref<1x18x18x4xbf16, #tpu.memory_space<vmem>>, vector<1x1x16x4xbf16>
    %479 = vector.shape_cast %478 : vector<1x1x16x4xbf16> to vector<16x4xbf16>
    %cst_423 = arith.constant dense<0.000000e+00> : vector<16x128xf32>
    %480 = tpu.matmul %479, %2, %cst_423 {dimension_numbers = #tpu.dot_dimension_numbers<[1], [0], [0], [1], [0, 0, 1, 1], [], []>} : vector<16x4xbf16>, vector<4x128xbf16>, vector<16x128xf32> -> vector<16x128xf32>
    %481 = arith.addf %474, %480 : vector<16x128xf32>
    %c7_i32_424 = arith.constant 7 : i32
    %482 = arith.addi %0, %c7_i32_424 : i32
    %c0_i32_425 = arith.constant 0 : i32
    %483 = arith.addi %482, %c0_i32_425 : i32
    %c0_426 = arith.constant 0 : index
    %484 = arith.index_cast %483 : i32 to index
    %c1_427 = arith.constant 1 : index
    %c0_428 = arith.constant 0 : index
    %485 = vector.load %arg2[%c0_426, %484, %c1_427, %c0_428] : memref<1x18x18x4xbf16, #tpu.memory_space<vmem>>, vector<1x1x16x4xbf16>
    %486 = vector.shape_cast %485 : vector<1x1x16x4xbf16> to vector<16x4xbf16>
    %cst_429 = arith.constant dense<0.000000e+00> : vector<16x128xf32>
    %487 = tpu.matmul %486, %4, %cst_429 {dimension_numbers = #tpu.dot_dimension_numbers<[1], [0], [0], [1], [0, 0, 1, 1], [], []>} : vector<16x4xbf16>, vector<4x128xbf16>, vector<16x128xf32> -> vector<16x128xf32>
    %488 = arith.addf %481, %487 : vector<16x128xf32>
    %c7_i32_430 = arith.constant 7 : i32
    %489 = arith.addi %0, %c7_i32_430 : i32
    %c0_i32_431 = arith.constant 0 : i32
    %490 = arith.addi %489, %c0_i32_431 : i32
    %c0_432 = arith.constant 0 : index
    %491 = arith.index_cast %490 : i32 to index
    %c2_433 = arith.constant 2 : index
    %c0_434 = arith.constant 0 : index
    %492 = vector.load %arg2[%c0_432, %491, %c2_433, %c0_434] : memref<1x18x18x4xbf16, #tpu.memory_space<vmem>>, vector<1x1x16x4xbf16>
    %493 = vector.shape_cast %492 : vector<1x1x16x4xbf16> to vector<16x4xbf16>
    %cst_435 = arith.constant dense<0.000000e+00> : vector<16x128xf32>
    %494 = tpu.matmul %493, %6, %cst_435 {dimension_numbers = #tpu.dot_dimension_numbers<[1], [0], [0], [1], [0, 0, 1, 1], [], []>} : vector<16x4xbf16>, vector<4x128xbf16>, vector<16x128xf32> -> vector<16x128xf32>
    %495 = arith.addf %488, %494 : vector<16x128xf32>
    %c7_i32_436 = arith.constant 7 : i32
    %496 = arith.addi %0, %c7_i32_436 : i32
    %c1_i32_437 = arith.constant 1 : i32
    %497 = arith.addi %496, %c1_i32_437 : i32
    %c0_438 = arith.constant 0 : index
    %498 = arith.index_cast %497 : i32 to index
    %c0_439 = arith.constant 0 : index
    %c0_440 = arith.constant 0 : index
    %499 = vector.load %arg2[%c0_438, %498, %c0_439, %c0_440] : memref<1x18x18x4xbf16, #tpu.memory_space<vmem>>, vector<1x1x16x4xbf16>
    %500 = vector.shape_cast %499 : vector<1x1x16x4xbf16> to vector<16x4xbf16>
    %cst_441 = arith.constant dense<0.000000e+00> : vector<16x128xf32>
    %501 = tpu.matmul %500, %8, %cst_441 {dimension_numbers = #tpu.dot_dimension_numbers<[1], [0], [0], [1], [0, 0, 1, 1], [], []>} : vector<16x4xbf16>, vector<4x128xbf16>, vector<16x128xf32> -> vector<16x128xf32>
    %502 = arith.addf %495, %501 : vector<16x128xf32>
    %c7_i32_442 = arith.constant 7 : i32
    %503 = arith.addi %0, %c7_i32_442 : i32
    %c1_i32_443 = arith.constant 1 : i32
    %504 = arith.addi %503, %c1_i32_443 : i32
    %c0_444 = arith.constant 0 : index
    %505 = arith.index_cast %504 : i32 to index
    %c1_445 = arith.constant 1 : index
    %c0_446 = arith.constant 0 : index
    %506 = vector.load %arg2[%c0_444, %505, %c1_445, %c0_446] : memref<1x18x18x4xbf16, #tpu.memory_space<vmem>>, vector<1x1x16x4xbf16>
    %507 = vector.shape_cast %506 : vector<1x1x16x4xbf16> to vector<16x4xbf16>
    %cst_447 = arith.constant dense<0.000000e+00> : vector<16x128xf32>
    %508 = tpu.matmul %507, %10, %cst_447 {dimension_numbers = #tpu.dot_dimension_numbers<[1], [0], [0], [1], [0, 0, 1, 1], [], []>} : vector<16x4xbf16>, vector<4x128xbf16>, vector<16x128xf32> -> vector<16x128xf32>
    %509 = arith.addf %502, %508 : vector<16x128xf32>
    %c7_i32_448 = arith.constant 7 : i32
    %510 = arith.addi %0, %c7_i32_448 : i32
    %c1_i32_449 = arith.constant 1 : i32
    %511 = arith.addi %510, %c1_i32_449 : i32
    %c0_450 = arith.constant 0 : index
    %512 = arith.index_cast %511 : i32 to index
    %c2_451 = arith.constant 2 : index
    %c0_452 = arith.constant 0 : index
    %513 = vector.load %arg2[%c0_450, %512, %c2_451, %c0_452] : memref<1x18x18x4xbf16, #tpu.memory_space<vmem>>, vector<1x1x16x4xbf16>
    %514 = vector.shape_cast %513 : vector<1x1x16x4xbf16> to vector<16x4xbf16>
    %cst_453 = arith.constant dense<0.000000e+00> : vector<16x128xf32>
    %515 = tpu.matmul %514, %12, %cst_453 {dimension_numbers = #tpu.dot_dimension_numbers<[1], [0], [0], [1], [0, 0, 1, 1], [], []>} : vector<16x4xbf16>, vector<4x128xbf16>, vector<16x128xf32> -> vector<16x128xf32>
    %516 = arith.addf %509, %515 : vector<16x128xf32>
    %c7_i32_454 = arith.constant 7 : i32
    %517 = arith.addi %0, %c7_i32_454 : i32
    %c2_i32_455 = arith.constant 2 : i32
    %518 = arith.addi %517, %c2_i32_455 : i32
    %c0_456 = arith.constant 0 : index
    %519 = arith.index_cast %518 : i32 to index
    %c0_457 = arith.constant 0 : index
    %c0_458 = arith.constant 0 : index
    %520 = vector.load %arg2[%c0_456, %519, %c0_457, %c0_458] : memref<1x18x18x4xbf16, #tpu.memory_space<vmem>>, vector<1x1x16x4xbf16>
    %521 = vector.shape_cast %520 : vector<1x1x16x4xbf16> to vector<16x4xbf16>
    %cst_459 = arith.constant dense<0.000000e+00> : vector<16x128xf32>
    %522 = tpu.matmul %521, %14, %cst_459 {dimension_numbers = #tpu.dot_dimension_numbers<[1], [0], [0], [1], [0, 0, 1, 1], [], []>} : vector<16x4xbf16>, vector<4x128xbf16>, vector<16x128xf32> -> vector<16x128xf32>
    %523 = arith.addf %516, %522 : vector<16x128xf32>
    %c7_i32_460 = arith.constant 7 : i32
    %524 = arith.addi %0, %c7_i32_460 : i32
    %c2_i32_461 = arith.constant 2 : i32
    %525 = arith.addi %524, %c2_i32_461 : i32
    %c0_462 = arith.constant 0 : index
    %526 = arith.index_cast %525 : i32 to index
    %c1_463 = arith.constant 1 : index
    %c0_464 = arith.constant 0 : index
    %527 = vector.load %arg2[%c0_462, %526, %c1_463, %c0_464] : memref<1x18x18x4xbf16, #tpu.memory_space<vmem>>, vector<1x1x16x4xbf16>
    %528 = vector.shape_cast %527 : vector<1x1x16x4xbf16> to vector<16x4xbf16>
    %cst_465 = arith.constant dense<0.000000e+00> : vector<16x128xf32>
    %529 = tpu.matmul %528, %16, %cst_465 {dimension_numbers = #tpu.dot_dimension_numbers<[1], [0], [0], [1], [0, 0, 1, 1], [], []>} : vector<16x4xbf16>, vector<4x128xbf16>, vector<16x128xf32> -> vector<16x128xf32>
    %530 = arith.addf %523, %529 : vector<16x128xf32>
    %c7_i32_466 = arith.constant 7 : i32
    %531 = arith.addi %0, %c7_i32_466 : i32
    %c2_i32_467 = arith.constant 2 : i32
    %532 = arith.addi %531, %c2_i32_467 : i32
    %c0_468 = arith.constant 0 : index
    %533 = arith.index_cast %532 : i32 to index
    %c2_469 = arith.constant 2 : index
    %c0_470 = arith.constant 0 : index
    %534 = vector.load %arg2[%c0_468, %533, %c2_469, %c0_470] : memref<1x18x18x4xbf16, #tpu.memory_space<vmem>>, vector<1x1x16x4xbf16>
    %535 = vector.shape_cast %534 : vector<1x1x16x4xbf16> to vector<16x4xbf16>
    %cst_471 = arith.constant dense<0.000000e+00> : vector<16x128xf32>
    %536 = tpu.matmul %535, %18, %cst_471 {dimension_numbers = #tpu.dot_dimension_numbers<[1], [0], [0], [1], [0, 0, 1, 1], [], []>} : vector<16x4xbf16>, vector<4x128xbf16>, vector<16x128xf32> -> vector<16x128xf32>
    %537 = arith.addf %530, %536 : vector<16x128xf32>
    %c112 = arith.constant 112 : index
    %c0_472 = arith.constant 0 : index
    %538 = vector.load %arg4[%c112, %c0_472] : memref<256x128xf32, #tpu.memory_space<vmem>>, vector<16x128xf32>
    tpu.vector_store %arg4[%c112, %c0_472], %537 {strides = array<i32>} : memref<256x128xf32, #tpu.memory_space<vmem>>, vector<16x128xf32>,
    %cst_473 = arith.constant 0.000000e+00 : f32
    %539 = vector.broadcast %cst_473 : f32 to vector<16x128xf32>
    %c8_i32 = arith.constant 8 : i32
    %540 = arith.addi %0, %c8_i32 : i32
    %c0_i32_474 = arith.constant 0 : i32
    %541 = arith.addi %540, %c0_i32_474 : i32
    %c0_475 = arith.constant 0 : index
    %542 = arith.index_cast %541 : i32 to index
    %c0_476 = arith.constant 0 : index
    %c0_477 = arith.constant 0 : index
    %543 = vector.load %arg2[%c0_475, %542, %c0_476, %c0_477] : memref<1x18x18x4xbf16, #tpu.memory_space<vmem>>, vector<1x1x16x4xbf16>
    %544 = vector.shape_cast %543 : vector<1x1x16x4xbf16> to vector<16x4xbf16>
    %cst_478 = arith.constant dense<0.000000e+00> : vector<16x128xf32>
    %545 = tpu.matmul %544, %2, %cst_478 {dimension_numbers = #tpu.dot_dimension_numbers<[1], [0], [0], [1], [0, 0, 1, 1], [], []>} : vector<16x4xbf16>, vector<4x128xbf16>, vector<16x128xf32> -> vector<16x128xf32>
    %546 = arith.addf %539, %545 : vector<16x128xf32>
    %c8_i32_479 = arith.constant 8 : i32
    %547 = arith.addi %0, %c8_i32_479 : i32
    %c0_i32_480 = arith.constant 0 : i32
    %548 = arith.addi %547, %c0_i32_480 : i32
    %c0_481 = arith.constant 0 : index
    %549 = arith.index_cast %548 : i32 to index
    %c1_482 = arith.constant 1 : index
    %c0_483 = arith.constant 0 : index
    %550 = vector.load %arg2[%c0_481, %549, %c1_482, %c0_483] : memref<1x18x18x4xbf16, #tpu.memory_space<vmem>>, vector<1x1x16x4xbf16>
    %551 = vector.shape_cast %550 : vector<1x1x16x4xbf16> to vector<16x4xbf16>
    %cst_484 = arith.constant dense<0.000000e+00> : vector<16x128xf32>
    %552 = tpu.matmul %551, %4, %cst_484 {dimension_numbers = #tpu.dot_dimension_numbers<[1], [0], [0], [1], [0, 0, 1, 1], [], []>} : vector<16x4xbf16>, vector<4x128xbf16>, vector<16x128xf32> -> vector<16x128xf32>
    %553 = arith.addf %546, %552 : vector<16x128xf32>
    %c8_i32_485 = arith.constant 8 : i32
    %554 = arith.addi %0, %c8_i32_485 : i32
    %c0_i32_486 = arith.constant 0 : i32
    %555 = arith.addi %554, %c0_i32_486 : i32
    %c0_487 = arith.constant 0 : index
    %556 = arith.index_cast %555 : i32 to index
    %c2_488 = arith.constant 2 : index
    %c0_489 = arith.constant 0 : index
    %557 = vector.load %arg2[%c0_487, %556, %c2_488, %c0_489] : memref<1x18x18x4xbf16, #tpu.memory_space<vmem>>, vector<1x1x16x4xbf16>
    %558 = vector.shape_cast %557 : vector<1x1x16x4xbf16> to vector<16x4xbf16>
    %cst_490 = arith.constant dense<0.000000e+00> : vector<16x128xf32>
    %559 = tpu.matmul %558, %6, %cst_490 {dimension_numbers = #tpu.dot_dimension_numbers<[1], [0], [0], [1], [0, 0, 1, 1], [], []>} : vector<16x4xbf16>, vector<4x128xbf16>, vector<16x128xf32> -> vector<16x128xf32>
    %560 = arith.addf %553, %559 : vector<16x128xf32>
    %c8_i32_491 = arith.constant 8 : i32
    %561 = arith.addi %0, %c8_i32_491 : i32
    %c1_i32_492 = arith.constant 1 : i32
    %562 = arith.addi %561, %c1_i32_492 : i32
    %c0_493 = arith.constant 0 : index
    %563 = arith.index_cast %562 : i32 to index
    %c0_494 = arith.constant 0 : index
    %c0_495 = arith.constant 0 : index
    %564 = vector.load %arg2[%c0_493, %563, %c0_494, %c0_495] : memref<1x18x18x4xbf16, #tpu.memory_space<vmem>>, vector<1x1x16x4xbf16>
    %565 = vector.shape_cast %564 : vector<1x1x16x4xbf16> to vector<16x4xbf16>
    %cst_496 = arith.constant dense<0.000000e+00> : vector<16x128xf32>
    %566 = tpu.matmul %565, %8, %cst_496 {dimension_numbers = #tpu.dot_dimension_numbers<[1], [0], [0], [1], [0, 0, 1, 1], [], []>} : vector<16x4xbf16>, vector<4x128xbf16>, vector<16x128xf32> -> vector<16x128xf32>
    %567 = arith.addf %560, %566 : vector<16x128xf32>
    %c8_i32_497 = arith.constant 8 : i32
    %568 = arith.addi %0, %c8_i32_497 : i32
    %c1_i32_498 = arith.constant 1 : i32
    %569 = arith.addi %568, %c1_i32_498 : i32
    %c0_499 = arith.constant 0 : index
    %570 = arith.index_cast %569 : i32 to index
    %c1_500 = arith.constant 1 : index
    %c0_501 = arith.constant 0 : index
    %571 = vector.load %arg2[%c0_499, %570, %c1_500, %c0_501] : memref<1x18x18x4xbf16, #tpu.memory_space<vmem>>, vector<1x1x16x4xbf16>
    %572 = vector.shape_cast %571 : vector<1x1x16x4xbf16> to vector<16x4xbf16>
    %cst_502 = arith.constant dense<0.000000e+00> : vector<16x128xf32>
    %573 = tpu.matmul %572, %10, %cst_502 {dimension_numbers = #tpu.dot_dimension_numbers<[1], [0], [0], [1], [0, 0, 1, 1], [], []>} : vector<16x4xbf16>, vector<4x128xbf16>, vector<16x128xf32> -> vector<16x128xf32>
    %574 = arith.addf %567, %573 : vector<16x128xf32>
    %c8_i32_503 = arith.constant 8 : i32
    %575 = arith.addi %0, %c8_i32_503 : i32
    %c1_i32_504 = arith.constant 1 : i32
    %576 = arith.addi %575, %c1_i32_504 : i32
    %c0_505 = arith.constant 0 : index
    %577 = arith.index_cast %576 : i32 to index
    %c2_506 = arith.constant 2 : index
    %c0_507 = arith.constant 0 : index
    %578 = vector.load %arg2[%c0_505, %577, %c2_506, %c0_507] : memref<1x18x18x4xbf16, #tpu.memory_space<vmem>>, vector<1x1x16x4xbf16>
    %579 = vector.shape_cast %578 : vector<1x1x16x4xbf16> to vector<16x4xbf16>
    %cst_508 = arith.constant dense<0.000000e+00> : vector<16x128xf32>
    %580 = tpu.matmul %579, %12, %cst_508 {dimension_numbers = #tpu.dot_dimension_numbers<[1], [0], [0], [1], [0, 0, 1, 1], [], []>} : vector<16x4xbf16>, vector<4x128xbf16>, vector<16x128xf32> -> vector<16x128xf32>
    %581 = arith.addf %574, %580 : vector<16x128xf32>
    %c8_i32_509 = arith.constant 8 : i32
    %582 = arith.addi %0, %c8_i32_509 : i32
    %c2_i32_510 = arith.constant 2 : i32
    %583 = arith.addi %582, %c2_i32_510 : i32
    %c0_511 = arith.constant 0 : index
    %584 = arith.index_cast %583 : i32 to index
    %c0_512 = arith.constant 0 : index
    %c0_513 = arith.constant 0 : index
    %585 = vector.load %arg2[%c0_511, %584, %c0_512, %c0_513] : memref<1x18x18x4xbf16, #tpu.memory_space<vmem>>, vector<1x1x16x4xbf16>
    %586 = vector.shape_cast %585 : vector<1x1x16x4xbf16> to vector<16x4xbf16>
    %cst_514 = arith.constant dense<0.000000e+00> : vector<16x128xf32>
    %587 = tpu.matmul %586, %14, %cst_514 {dimension_numbers = #tpu.dot_dimension_numbers<[1], [0], [0], [1], [0, 0, 1, 1], [], []>} : vector<16x4xbf16>, vector<4x128xbf16>, vector<16x128xf32> -> vector<16x128xf32>
    %588 = arith.addf %581, %587 : vector<16x128xf32>
    %c8_i32_515 = arith.constant 8 : i32
    %589 = arith.addi %0, %c8_i32_515 : i32
    %c2_i32_516 = arith.constant 2 : i32
    %590 = arith.addi %589, %c2_i32_516 : i32
    %c0_517 = arith.constant 0 : index
    %591 = arith.index_cast %590 : i32 to index
    %c1_518 = arith.constant 1 : index
    %c0_519 = arith.constant 0 : index
    %592 = vector.load %arg2[%c0_517, %591, %c1_518, %c0_519] : memref<1x18x18x4xbf16, #tpu.memory_space<vmem>>, vector<1x1x16x4xbf16>
    %593 = vector.shape_cast %592 : vector<1x1x16x4xbf16> to vector<16x4xbf16>
    %cst_520 = arith.constant dense<0.000000e+00> : vector<16x128xf32>
    %594 = tpu.matmul %593, %16, %cst_520 {dimension_numbers = #tpu.dot_dimension_numbers<[1], [0], [0], [1], [0, 0, 1, 1], [], []>} : vector<16x4xbf16>, vector<4x128xbf16>, vector<16x128xf32> -> vector<16x128xf32>
    %595 = arith.addf %588, %594 : vector<16x128xf32>
    %c8_i32_521 = arith.constant 8 : i32
    %596 = arith.addi %0, %c8_i32_521 : i32
    %c2_i32_522 = arith.constant 2 : i32
    %597 = arith.addi %596, %c2_i32_522 : i32
    %c0_523 = arith.constant 0 : index
    %598 = arith.index_cast %597 : i32 to index
    %c2_524 = arith.constant 2 : index
    %c0_525 = arith.constant 0 : index
    %599 = vector.load %arg2[%c0_523, %598, %c2_524, %c0_525] : memref<1x18x18x4xbf16, #tpu.memory_space<vmem>>, vector<1x1x16x4xbf16>
    %600 = vector.shape_cast %599 : vector<1x1x16x4xbf16> to vector<16x4xbf16>
    %cst_526 = arith.constant dense<0.000000e+00> : vector<16x128xf32>
    %601 = tpu.matmul %600, %18, %cst_526 {dimension_numbers = #tpu.dot_dimension_numbers<[1], [0], [0], [1], [0, 0, 1, 1], [], []>} : vector<16x4xbf16>, vector<4x128xbf16>, vector<16x128xf32> -> vector<16x128xf32>
    %602 = arith.addf %595, %601 : vector<16x128xf32>
    %c128 = arith.constant 128 : index
    %c0_527 = arith.constant 0 : index
    %603 = vector.load %arg4[%c128, %c0_527] : memref<256x128xf32, #tpu.memory_space<vmem>>, vector<16x128xf32>
    tpu.vector_store %arg4[%c128, %c0_527], %602 {strides = array<i32>} : memref<256x128xf32, #tpu.memory_space<vmem>>, vector<16x128xf32>,
    %cst_528 = arith.constant 0.000000e+00 : f32
    %604 = vector.broadcast %cst_528 : f32 to vector<16x128xf32>
    %c9_i32 = arith.constant 9 : i32
    %605 = arith.addi %0, %c9_i32 : i32
    %c0_i32_529 = arith.constant 0 : i32
    %606 = arith.addi %605, %c0_i32_529 : i32
    %c0_530 = arith.constant 0 : index
    %607 = arith.index_cast %606 : i32 to index
    %c0_531 = arith.constant 0 : index
    %c0_532 = arith.constant 0 : index
    %608 = vector.load %arg2[%c0_530, %607, %c0_531, %c0_532] : memref<1x18x18x4xbf16, #tpu.memory_space<vmem>>, vector<1x1x16x4xbf16>
    %609 = vector.shape_cast %608 : vector<1x1x16x4xbf16> to vector<16x4xbf16>
    %cst_533 = arith.constant dense<0.000000e+00> : vector<16x128xf32>
    %610 = tpu.matmul %609, %2, %cst_533 {dimension_numbers = #tpu.dot_dimension_numbers<[1], [0], [0], [1], [0, 0, 1, 1], [], []>} : vector<16x4xbf16>, vector<4x128xbf16>, vector<16x128xf32> -> vector<16x128xf32>
    %611 = arith.addf %604, %610 : vector<16x128xf32>
    %c9_i32_534 = arith.constant 9 : i32
    %612 = arith.addi %0, %c9_i32_534 : i32
    %c0_i32_535 = arith.constant 0 : i32
    %613 = arith.addi %612, %c0_i32_535 : i32
    %c0_536 = arith.constant 0 : index
    %614 = arith.index_cast %613 : i32 to index
    %c1_537 = arith.constant 1 : index
    %c0_538 = arith.constant 0 : index
    %615 = vector.load %arg2[%c0_536, %614, %c1_537, %c0_538] : memref<1x18x18x4xbf16, #tpu.memory_space<vmem>>, vector<1x1x16x4xbf16>
    %616 = vector.shape_cast %615 : vector<1x1x16x4xbf16> to vector<16x4xbf16>
    %cst_539 = arith.constant dense<0.000000e+00> : vector<16x128xf32>
    %617 = tpu.matmul %616, %4, %cst_539 {dimension_numbers = #tpu.dot_dimension_numbers<[1], [0], [0], [1], [0, 0, 1, 1], [], []>} : vector<16x4xbf16>, vector<4x128xbf16>, vector<16x128xf32> -> vector<16x128xf32>
    %618 = arith.addf %611, %617 : vector<16x128xf32>
    %c9_i32_540 = arith.constant 9 : i32
    %619 = arith.addi %0, %c9_i32_540 : i32
    %c0_i32_541 = arith.constant 0 : i32
    %620 = arith.addi %619, %c0_i32_541 : i32
    %c0_542 = arith.constant 0 : index
    %621 = arith.index_cast %620 : i32 to index
    %c2_543 = arith.constant 2 : index
    %c0_544 = arith.constant 0 : index
    %622 = vector.load %arg2[%c0_542, %621, %c2_543, %c0_544] : memref<1x18x18x4xbf16, #tpu.memory_space<vmem>>, vector<1x1x16x4xbf16>
    %623 = vector.shape_cast %622 : vector<1x1x16x4xbf16> to vector<16x4xbf16>
    %cst_545 = arith.constant dense<0.000000e+00> : vector<16x128xf32>
    %624 = tpu.matmul %623, %6, %cst_545 {dimension_numbers = #tpu.dot_dimension_numbers<[1], [0], [0], [1], [0, 0, 1, 1], [], []>} : vector<16x4xbf16>, vector<4x128xbf16>, vector<16x128xf32> -> vector<16x128xf32>
    %625 = arith.addf %618, %624 : vector<16x128xf32>
    %c9_i32_546 = arith.constant 9 : i32
    %626 = arith.addi %0, %c9_i32_546 : i32
    %c1_i32_547 = arith.constant 1 : i32
    %627 = arith.addi %626, %c1_i32_547 : i32
    %c0_548 = arith.constant 0 : index
    %628 = arith.index_cast %627 : i32 to index
    %c0_549 = arith.constant 0 : index
    %c0_550 = arith.constant 0 : index
    %629 = vector.load %arg2[%c0_548, %628, %c0_549, %c0_550] : memref<1x18x18x4xbf16, #tpu.memory_space<vmem>>, vector<1x1x16x4xbf16>
    %630 = vector.shape_cast %629 : vector<1x1x16x4xbf16> to vector<16x4xbf16>
    %cst_551 = arith.constant dense<0.000000e+00> : vector<16x128xf32>
    %631 = tpu.matmul %630, %8, %cst_551 {dimension_numbers = #tpu.dot_dimension_numbers<[1], [0], [0], [1], [0, 0, 1, 1], [], []>} : vector<16x4xbf16>, vector<4x128xbf16>, vector<16x128xf32> -> vector<16x128xf32>
    %632 = arith.addf %625, %631 : vector<16x128xf32>
    %c9_i32_552 = arith.constant 9 : i32
    %633 = arith.addi %0, %c9_i32_552 : i32
    %c1_i32_553 = arith.constant 1 : i32
    %634 = arith.addi %633, %c1_i32_553 : i32
    %c0_554 = arith.constant 0 : index
    %635 = arith.index_cast %634 : i32 to index
    %c1_555 = arith.constant 1 : index
    %c0_556 = arith.constant 0 : index
    %636 = vector.load %arg2[%c0_554, %635, %c1_555, %c0_556] : memref<1x18x18x4xbf16, #tpu.memory_space<vmem>>, vector<1x1x16x4xbf16>
    %637 = vector.shape_cast %636 : vector<1x1x16x4xbf16> to vector<16x4xbf16>
    %cst_557 = arith.constant dense<0.000000e+00> : vector<16x128xf32>
    %638 = tpu.matmul %637, %10, %cst_557 {dimension_numbers = #tpu.dot_dimension_numbers<[1], [0], [0], [1], [0, 0, 1, 1], [], []>} : vector<16x4xbf16>, vector<4x128xbf16>, vector<16x128xf32> -> vector<16x128xf32>
    %639 = arith.addf %632, %638 : vector<16x128xf32>
    %c9_i32_558 = arith.constant 9 : i32
    %640 = arith.addi %0, %c9_i32_558 : i32
    %c1_i32_559 = arith.constant 1 : i32
    %641 = arith.addi %640, %c1_i32_559 : i32
    %c0_560 = arith.constant 0 : index
    %642 = arith.index_cast %641 : i32 to index
    %c2_561 = arith.constant 2 : index
    %c0_562 = arith.constant 0 : index
    %643 = vector.load %arg2[%c0_560, %642, %c2_561, %c0_562] : memref<1x18x18x4xbf16, #tpu.memory_space<vmem>>, vector<1x1x16x4xbf16>
    %644 = vector.shape_cast %643 : vector<1x1x16x4xbf16> to vector<16x4xbf16>
    %cst_563 = arith.constant dense<0.000000e+00> : vector<16x128xf32>
    %645 = tpu.matmul %644, %12, %cst_563 {dimension_numbers = #tpu.dot_dimension_numbers<[1], [0], [0], [1], [0, 0, 1, 1], [], []>} : vector<16x4xbf16>, vector<4x128xbf16>, vector<16x128xf32> -> vector<16x128xf32>
    %646 = arith.addf %639, %645 : vector<16x128xf32>
    %c9_i32_564 = arith.constant 9 : i32
    %647 = arith.addi %0, %c9_i32_564 : i32
    %c2_i32_565 = arith.constant 2 : i32
    %648 = arith.addi %647, %c2_i32_565 : i32
    %c0_566 = arith.constant 0 : index
    %649 = arith.index_cast %648 : i32 to index
    %c0_567 = arith.constant 0 : index
    %c0_568 = arith.constant 0 : index
    %650 = vector.load %arg2[%c0_566, %649, %c0_567, %c0_568] : memref<1x18x18x4xbf16, #tpu.memory_space<vmem>>, vector<1x1x16x4xbf16>
    %651 = vector.shape_cast %650 : vector<1x1x16x4xbf16> to vector<16x4xbf16>
    %cst_569 = arith.constant dense<0.000000e+00> : vector<16x128xf32>
    %652 = tpu.matmul %651, %14, %cst_569 {dimension_numbers = #tpu.dot_dimension_numbers<[1], [0], [0], [1], [0, 0, 1, 1], [], []>} : vector<16x4xbf16>, vector<4x128xbf16>, vector<16x128xf32> -> vector<16x128xf32>
    %653 = arith.addf %646, %652 : vector<16x128xf32>
    %c9_i32_570 = arith.constant 9 : i32
    %654 = arith.addi %0, %c9_i32_570 : i32
    %c2_i32_571 = arith.constant 2 : i32
    %655 = arith.addi %654, %c2_i32_571 : i32
    %c0_572 = arith.constant 0 : index
    %656 = arith.index_cast %655 : i32 to index
    %c1_573 = arith.constant 1 : index
    %c0_574 = arith.constant 0 : index
    %657 = vector.load %arg2[%c0_572, %656, %c1_573, %c0_574] : memref<1x18x18x4xbf16, #tpu.memory_space<vmem>>, vector<1x1x16x4xbf16>
    %658 = vector.shape_cast %657 : vector<1x1x16x4xbf16> to vector<16x4xbf16>
    %cst_575 = arith.constant dense<0.000000e+00> : vector<16x128xf32>
    %659 = tpu.matmul %658, %16, %cst_575 {dimension_numbers = #tpu.dot_dimension_numbers<[1], [0], [0], [1], [0, 0, 1, 1], [], []>} : vector<16x4xbf16>, vector<4x128xbf16>, vector<16x128xf32> -> vector<16x128xf32>
    %660 = arith.addf %653, %659 : vector<16x128xf32>
    %c9_i32_576 = arith.constant 9 : i32
    %661 = arith.addi %0, %c9_i32_576 : i32
    %c2_i32_577 = arith.constant 2 : i32
    %662 = arith.addi %661, %c2_i32_577 : i32
    %c0_578 = arith.constant 0 : index
    %663 = arith.index_cast %662 : i32 to index
    %c2_579 = arith.constant 2 : index
    %c0_580 = arith.constant 0 : index
    %664 = vector.load %arg2[%c0_578, %663, %c2_579, %c0_580] : memref<1x18x18x4xbf16, #tpu.memory_space<vmem>>, vector<1x1x16x4xbf16>
    %665 = vector.shape_cast %664 : vector<1x1x16x4xbf16> to vector<16x4xbf16>
    %cst_581 = arith.constant dense<0.000000e+00> : vector<16x128xf32>
    %666 = tpu.matmul %665, %18, %cst_581 {dimension_numbers = #tpu.dot_dimension_numbers<[1], [0], [0], [1], [0, 0, 1, 1], [], []>} : vector<16x4xbf16>, vector<4x128xbf16>, vector<16x128xf32> -> vector<16x128xf32>
    %667 = arith.addf %660, %666 : vector<16x128xf32>
    %c144 = arith.constant 144 : index
    %c0_582 = arith.constant 0 : index
    %668 = vector.load %arg4[%c144, %c0_582] : memref<256x128xf32, #tpu.memory_space<vmem>>, vector<16x128xf32>
    tpu.vector_store %arg4[%c144, %c0_582], %667 {strides = array<i32>} : memref<256x128xf32, #tpu.memory_space<vmem>>, vector<16x128xf32>,
    %cst_583 = arith.constant 0.000000e+00 : f32
    %669 = vector.broadcast %cst_583 : f32 to vector<16x128xf32>
    %c10_i32 = arith.constant 10 : i32
    %670 = arith.addi %0, %c10_i32 : i32
    %c0_i32_584 = arith.constant 0 : i32
    %671 = arith.addi %670, %c0_i32_584 : i32
    %c0_585 = arith.constant 0 : index
    %672 = arith.index_cast %671 : i32 to index
    %c0_586 = arith.constant 0 : index
    %c0_587 = arith.constant 0 : index
    %673 = vector.load %arg2[%c0_585, %672, %c0_586, %c0_587] : memref<1x18x18x4xbf16, #tpu.memory_space<vmem>>, vector<1x1x16x4xbf16>
    %674 = vector.shape_cast %673 : vector<1x1x16x4xbf16> to vector<16x4xbf16>
    %cst_588 = arith.constant dense<0.000000e+00> : vector<16x128xf32>
    %675 = tpu.matmul %674, %2, %cst_588 {dimension_numbers = #tpu.dot_dimension_numbers<[1], [0], [0], [1], [0, 0, 1, 1], [], []>} : vector<16x4xbf16>, vector<4x128xbf16>, vector<16x128xf32> -> vector<16x128xf32>
    %676 = arith.addf %669, %675 : vector<16x128xf32>
    %c10_i32_589 = arith.constant 10 : i32
    %677 = arith.addi %0, %c10_i32_589 : i32
    %c0_i32_590 = arith.constant 0 : i32
    %678 = arith.addi %677, %c0_i32_590 : i32
    %c0_591 = arith.constant 0 : index
    %679 = arith.index_cast %678 : i32 to index
    %c1_592 = arith.constant 1 : index
    %c0_593 = arith.constant 0 : index
    %680 = vector.load %arg2[%c0_591, %679, %c1_592, %c0_593] : memref<1x18x18x4xbf16, #tpu.memory_space<vmem>>, vector<1x1x16x4xbf16>
    %681 = vector.shape_cast %680 : vector<1x1x16x4xbf16> to vector<16x4xbf16>
    %cst_594 = arith.constant dense<0.000000e+00> : vector<16x128xf32>
    %682 = tpu.matmul %681, %4, %cst_594 {dimension_numbers = #tpu.dot_dimension_numbers<[1], [0], [0], [1], [0, 0, 1, 1], [], []>} : vector<16x4xbf16>, vector<4x128xbf16>, vector<16x128xf32> -> vector<16x128xf32>
    %683 = arith.addf %676, %682 : vector<16x128xf32>
    %c10_i32_595 = arith.constant 10 : i32
    %684 = arith.addi %0, %c10_i32_595 : i32
    %c0_i32_596 = arith.constant 0 : i32
    %685 = arith.addi %684, %c0_i32_596 : i32
    %c0_597 = arith.constant 0 : index
    %686 = arith.index_cast %685 : i32 to index
    %c2_598 = arith.constant 2 : index
    %c0_599 = arith.constant 0 : index
    %687 = vector.load %arg2[%c0_597, %686, %c2_598, %c0_599] : memref<1x18x18x4xbf16, #tpu.memory_space<vmem>>, vector<1x1x16x4xbf16>
    %688 = vector.shape_cast %687 : vector<1x1x16x4xbf16> to vector<16x4xbf16>
    %cst_600 = arith.constant dense<0.000000e+00> : vector<16x128xf32>
    %689 = tpu.matmul %688, %6, %cst_600 {dimension_numbers = #tpu.dot_dimension_numbers<[1], [0], [0], [1], [0, 0, 1, 1], [], []>} : vector<16x4xbf16>, vector<4x128xbf16>, vector<16x128xf32> -> vector<16x128xf32>
    %690 = arith.addf %683, %689 : vector<16x128xf32>
    %c10_i32_601 = arith.constant 10 : i32
    %691 = arith.addi %0, %c10_i32_601 : i32
    %c1_i32_602 = arith.constant 1 : i32
    %692 = arith.addi %691, %c1_i32_602 : i32
    %c0_603 = arith.constant 0 : index
    %693 = arith.index_cast %692 : i32 to index
    %c0_604 = arith.constant 0 : index
    %c0_605 = arith.constant 0 : index
    %694 = vector.load %arg2[%c0_603, %693, %c0_604, %c0_605] : memref<1x18x18x4xbf16, #tpu.memory_space<vmem>>, vector<1x1x16x4xbf16>
    %695 = vector.shape_cast %694 : vector<1x1x16x4xbf16> to vector<16x4xbf16>
    %cst_606 = arith.constant dense<0.000000e+00> : vector<16x128xf32>
    %696 = tpu.matmul %695, %8, %cst_606 {dimension_numbers = #tpu.dot_dimension_numbers<[1], [0], [0], [1], [0, 0, 1, 1], [], []>} : vector<16x4xbf16>, vector<4x128xbf16>, vector<16x128xf32> -> vector<16x128xf32>
    %697 = arith.addf %690, %696 : vector<16x128xf32>
    %c10_i32_607 = arith.constant 10 : i32
    %698 = arith.addi %0, %c10_i32_607 : i32
    %c1_i32_608 = arith.constant 1 : i32
    %699 = arith.addi %698, %c1_i32_608 : i32
    %c0_609 = arith.constant 0 : index
    %700 = arith.index_cast %699 : i32 to index
    %c1_610 = arith.constant 1 : index
    %c0_611 = arith.constant 0 : index
    %701 = vector.load %arg2[%c0_609, %700, %c1_610, %c0_611] : memref<1x18x18x4xbf16, #tpu.memory_space<vmem>>, vector<1x1x16x4xbf16>
    %702 = vector.shape_cast %701 : vector<1x1x16x4xbf16> to vector<16x4xbf16>
    %cst_612 = arith.constant dense<0.000000e+00> : vector<16x128xf32>
    %703 = tpu.matmul %702, %10, %cst_612 {dimension_numbers = #tpu.dot_dimension_numbers<[1], [0], [0], [1], [0, 0, 1, 1], [], []>} : vector<16x4xbf16>, vector<4x128xbf16>, vector<16x128xf32> -> vector<16x128xf32>
    %704 = arith.addf %697, %703 : vector<16x128xf32>
    %c10_i32_613 = arith.constant 10 : i32
    %705 = arith.addi %0, %c10_i32_613 : i32
    %c1_i32_614 = arith.constant 1 : i32
    %706 = arith.addi %705, %c1_i32_614 : i32
    %c0_615 = arith.constant 0 : index
    %707 = arith.index_cast %706 : i32 to index
    %c2_616 = arith.constant 2 : index
    %c0_617 = arith.constant 0 : index
    %708 = vector.load %arg2[%c0_615, %707, %c2_616, %c0_617] : memref<1x18x18x4xbf16, #tpu.memory_space<vmem>>, vector<1x1x16x4xbf16>
    %709 = vector.shape_cast %708 : vector<1x1x16x4xbf16> to vector<16x4xbf16>
    %cst_618 = arith.constant dense<0.000000e+00> : vector<16x128xf32>
    %710 = tpu.matmul %709, %12, %cst_618 {dimension_numbers = #tpu.dot_dimension_numbers<[1], [0], [0], [1], [0, 0, 1, 1], [], []>} : vector<16x4xbf16>, vector<4x128xbf16>, vector<16x128xf32> -> vector<16x128xf32>
    %711 = arith.addf %704, %710 : vector<16x128xf32>
    %c10_i32_619 = arith.constant 10 : i32
    %712 = arith.addi %0, %c10_i32_619 : i32
    %c2_i32_620 = arith.constant 2 : i32
    %713 = arith.addi %712, %c2_i32_620 : i32
    %c0_621 = arith.constant 0 : index
    %714 = arith.index_cast %713 : i32 to index
    %c0_622 = arith.constant 0 : index
    %c0_623 = arith.constant 0 : index
    %715 = vector.load %arg2[%c0_621, %714, %c0_622, %c0_623] : memref<1x18x18x4xbf16, #tpu.memory_space<vmem>>, vector<1x1x16x4xbf16>
    %716 = vector.shape_cast %715 : vector<1x1x16x4xbf16> to vector<16x4xbf16>
    %cst_624 = arith.constant dense<0.000000e+00> : vector<16x128xf32>
    %717 = tpu.matmul %716, %14, %cst_624 {dimension_numbers = #tpu.dot_dimension_numbers<[1], [0], [0], [1], [0, 0, 1, 1], [], []>} : vector<16x4xbf16>, vector<4x128xbf16>, vector<16x128xf32> -> vector<16x128xf32>
    %718 = arith.addf %711, %717 : vector<16x128xf32>
    %c10_i32_625 = arith.constant 10 : i32
    %719 = arith.addi %0, %c10_i32_625 : i32
    %c2_i32_626 = arith.constant 2 : i32
    %720 = arith.addi %719, %c2_i32_626 : i32
    %c0_627 = arith.constant 0 : index
    %721 = arith.index_cast %720 : i32 to index
    %c1_628 = arith.constant 1 : index
    %c0_629 = arith.constant 0 : index
    %722 = vector.load %arg2[%c0_627, %721, %c1_628, %c0_629] : memref<1x18x18x4xbf16, #tpu.memory_space<vmem>>, vector<1x1x16x4xbf16>
    %723 = vector.shape_cast %722 : vector<1x1x16x4xbf16> to vector<16x4xbf16>
    %cst_630 = arith.constant dense<0.000000e+00> : vector<16x128xf32>
    %724 = tpu.matmul %723, %16, %cst_630 {dimension_numbers = #tpu.dot_dimension_numbers<[1], [0], [0], [1], [0, 0, 1, 1], [], []>} : vector<16x4xbf16>, vector<4x128xbf16>, vector<16x128xf32> -> vector<16x128xf32>
    %725 = arith.addf %718, %724 : vector<16x128xf32>
    %c10_i32_631 = arith.constant 10 : i32
    %726 = arith.addi %0, %c10_i32_631 : i32
    %c2_i32_632 = arith.constant 2 : i32
    %727 = arith.addi %726, %c2_i32_632 : i32
    %c0_633 = arith.constant 0 : index
    %728 = arith.index_cast %727 : i32 to index
    %c2_634 = arith.constant 2 : index
    %c0_635 = arith.constant 0 : index
    %729 = vector.load %arg2[%c0_633, %728, %c2_634, %c0_635] : memref<1x18x18x4xbf16, #tpu.memory_space<vmem>>, vector<1x1x16x4xbf16>
    %730 = vector.shape_cast %729 : vector<1x1x16x4xbf16> to vector<16x4xbf16>
    %cst_636 = arith.constant dense<0.000000e+00> : vector<16x128xf32>
    %731 = tpu.matmul %730, %18, %cst_636 {dimension_numbers = #tpu.dot_dimension_numbers<[1], [0], [0], [1], [0, 0, 1, 1], [], []>} : vector<16x4xbf16>, vector<4x128xbf16>, vector<16x128xf32> -> vector<16x128xf32>
    %732 = arith.addf %725, %731 : vector<16x128xf32>
    %c160 = arith.constant 160 : index
    %c0_637 = arith.constant 0 : index
    %733 = vector.load %arg4[%c160, %c0_637] : memref<256x128xf32, #tpu.memory_space<vmem>>, vector<16x128xf32>
    tpu.vector_store %arg4[%c160, %c0_637], %732 {strides = array<i32>} : memref<256x128xf32, #tpu.memory_space<vmem>>, vector<16x128xf32>,
    %cst_638 = arith.constant 0.000000e+00 : f32
    %734 = vector.broadcast %cst_638 : f32 to vector<16x128xf32>
    %c11_i32 = arith.constant 11 : i32
    %735 = arith.addi %0, %c11_i32 : i32
    %c0_i32_639 = arith.constant 0 : i32
    %736 = arith.addi %735, %c0_i32_639 : i32
    %c0_640 = arith.constant 0 : index
    %737 = arith.index_cast %736 : i32 to index
    %c0_641 = arith.constant 0 : index
    %c0_642 = arith.constant 0 : index
    %738 = vector.load %arg2[%c0_640, %737, %c0_641, %c0_642] : memref<1x18x18x4xbf16, #tpu.memory_space<vmem>>, vector<1x1x16x4xbf16>
    %739 = vector.shape_cast %738 : vector<1x1x16x4xbf16> to vector<16x4xbf16>
    %cst_643 = arith.constant dense<0.000000e+00> : vector<16x128xf32>
    %740 = tpu.matmul %739, %2, %cst_643 {dimension_numbers = #tpu.dot_dimension_numbers<[1], [0], [0], [1], [0, 0, 1, 1], [], []>} : vector<16x4xbf16>, vector<4x128xbf16>, vector<16x128xf32> -> vector<16x128xf32>
    %741 = arith.addf %734, %740 : vector<16x128xf32>
    %c11_i32_644 = arith.constant 11 : i32
    %742 = arith.addi %0, %c11_i32_644 : i32
    %c0_i32_645 = arith.constant 0 : i32
    %743 = arith.addi %742, %c0_i32_645 : i32
    %c0_646 = arith.constant 0 : index
    %744 = arith.index_cast %743 : i32 to index
    %c1_647 = arith.constant 1 : index
    %c0_648 = arith.constant 0 : index
    %745 = vector.load %arg2[%c0_646, %744, %c1_647, %c0_648] : memref<1x18x18x4xbf16, #tpu.memory_space<vmem>>, vector<1x1x16x4xbf16>
    %746 = vector.shape_cast %745 : vector<1x1x16x4xbf16> to vector<16x4xbf16>
    %cst_649 = arith.constant dense<0.000000e+00> : vector<16x128xf32>
    %747 = tpu.matmul %746, %4, %cst_649 {dimension_numbers = #tpu.dot_dimension_numbers<[1], [0], [0], [1], [0, 0, 1, 1], [], []>} : vector<16x4xbf16>, vector<4x128xbf16>, vector<16x128xf32> -> vector<16x128xf32>
    %748 = arith.addf %741, %747 : vector<16x128xf32>
    %c11_i32_650 = arith.constant 11 : i32
    %749 = arith.addi %0, %c11_i32_650 : i32
    %c0_i32_651 = arith.constant 0 : i32
    %750 = arith.addi %749, %c0_i32_651 : i32
    %c0_652 = arith.constant 0 : index
    %751 = arith.index_cast %750 : i32 to index
    %c2_653 = arith.constant 2 : index
    %c0_654 = arith.constant 0 : index
    %752 = vector.load %arg2[%c0_652, %751, %c2_653, %c0_654] : memref<1x18x18x4xbf16, #tpu.memory_space<vmem>>, vector<1x1x16x4xbf16>
    %753 = vector.shape_cast %752 : vector<1x1x16x4xbf16> to vector<16x4xbf16>
    %cst_655 = arith.constant dense<0.000000e+00> : vector<16x128xf32>
    %754 = tpu.matmul %753, %6, %cst_655 {dimension_numbers = #tpu.dot_dimension_numbers<[1], [0], [0], [1], [0, 0, 1, 1], [], []>} : vector<16x4xbf16>, vector<4x128xbf16>, vector<16x128xf32> -> vector<16x128xf32>
    %755 = arith.addf %748, %754 : vector<16x128xf32>
    %c11_i32_656 = arith.constant 11 : i32
    %756 = arith.addi %0, %c11_i32_656 : i32
    %c1_i32_657 = arith.constant 1 : i32
    %757 = arith.addi %756, %c1_i32_657 : i32
    %c0_658 = arith.constant 0 : index
    %758 = arith.index_cast %757 : i32 to index
    %c0_659 = arith.constant 0 : index
    %c0_660 = arith.constant 0 : index
    %759 = vector.load %arg2[%c0_658, %758, %c0_659, %c0_660] : memref<1x18x18x4xbf16, #tpu.memory_space<vmem>>, vector<1x1x16x4xbf16>
    %760 = vector.shape_cast %759 : vector<1x1x16x4xbf16> to vector<16x4xbf16>
    %cst_661 = arith.constant dense<0.000000e+00> : vector<16x128xf32>
    %761 = tpu.matmul %760, %8, %cst_661 {dimension_numbers = #tpu.dot_dimension_numbers<[1], [0], [0], [1], [0, 0, 1, 1], [], []>} : vector<16x4xbf16>, vector<4x128xbf16>, vector<16x128xf32> -> vector<16x128xf32>
    %762 = arith.addf %755, %761 : vector<16x128xf32>
    %c11_i32_662 = arith.constant 11 : i32
    %763 = arith.addi %0, %c11_i32_662 : i32
    %c1_i32_663 = arith.constant 1 : i32
    %764 = arith.addi %763, %c1_i32_663 : i32
    %c0_664 = arith.constant 0 : index
    %765 = arith.index_cast %764 : i32 to index
    %c1_665 = arith.constant 1 : index
    %c0_666 = arith.constant 0 : index
    %766 = vector.load %arg2[%c0_664, %765, %c1_665, %c0_666] : memref<1x18x18x4xbf16, #tpu.memory_space<vmem>>, vector<1x1x16x4xbf16>
    %767 = vector.shape_cast %766 : vector<1x1x16x4xbf16> to vector<16x4xbf16>
    %cst_667 = arith.constant dense<0.000000e+00> : vector<16x128xf32>
    %768 = tpu.matmul %767, %10, %cst_667 {dimension_numbers = #tpu.dot_dimension_numbers<[1], [0], [0], [1], [0, 0, 1, 1], [], []>} : vector<16x4xbf16>, vector<4x128xbf16>, vector<16x128xf32> -> vector<16x128xf32>
    %769 = arith.addf %762, %768 : vector<16x128xf32>
    %c11_i32_668 = arith.constant 11 : i32
    %770 = arith.addi %0, %c11_i32_668 : i32
    %c1_i32_669 = arith.constant 1 : i32
    %771 = arith.addi %770, %c1_i32_669 : i32
    %c0_670 = arith.constant 0 : index
    %772 = arith.index_cast %771 : i32 to index
    %c2_671 = arith.constant 2 : index
    %c0_672 = arith.constant 0 : index
    %773 = vector.load %arg2[%c0_670, %772, %c2_671, %c0_672] : memref<1x18x18x4xbf16, #tpu.memory_space<vmem>>, vector<1x1x16x4xbf16>
    %774 = vector.shape_cast %773 : vector<1x1x16x4xbf16> to vector<16x4xbf16>
    %cst_673 = arith.constant dense<0.000000e+00> : vector<16x128xf32>
    %775 = tpu.matmul %774, %12, %cst_673 {dimension_numbers = #tpu.dot_dimension_numbers<[1], [0], [0], [1], [0, 0, 1, 1], [], []>} : vector<16x4xbf16>, vector<4x128xbf16>, vector<16x128xf32> -> vector<16x128xf32>
    %776 = arith.addf %769, %775 : vector<16x128xf32>
    %c11_i32_674 = arith.constant 11 : i32
    %777 = arith.addi %0, %c11_i32_674 : i32
    %c2_i32_675 = arith.constant 2 : i32
    %778 = arith.addi %777, %c2_i32_675 : i32
    %c0_676 = arith.constant 0 : index
    %779 = arith.index_cast %778 : i32 to index
    %c0_677 = arith.constant 0 : index
    %c0_678 = arith.constant 0 : index
    %780 = vector.load %arg2[%c0_676, %779, %c0_677, %c0_678] : memref<1x18x18x4xbf16, #tpu.memory_space<vmem>>, vector<1x1x16x4xbf16>
    %781 = vector.shape_cast %780 : vector<1x1x16x4xbf16> to vector<16x4xbf16>
    %cst_679 = arith.constant dense<0.000000e+00> : vector<16x128xf32>
    %782 = tpu.matmul %781, %14, %cst_679 {dimension_numbers = #tpu.dot_dimension_numbers<[1], [0], [0], [1], [0, 0, 1, 1], [], []>} : vector<16x4xbf16>, vector<4x128xbf16>, vector<16x128xf32> -> vector<16x128xf32>
    %783 = arith.addf %776, %782 : vector<16x128xf32>
    %c11_i32_680 = arith.constant 11 : i32
    %784 = arith.addi %0, %c11_i32_680 : i32
    %c2_i32_681 = arith.constant 2 : i32
    %785 = arith.addi %784, %c2_i32_681 : i32
    %c0_682 = arith.constant 0 : index
    %786 = arith.index_cast %785 : i32 to index
    %c1_683 = arith.constant 1 : index
    %c0_684 = arith.constant 0 : index
    %787 = vector.load %arg2[%c0_682, %786, %c1_683, %c0_684] : memref<1x18x18x4xbf16, #tpu.memory_space<vmem>>, vector<1x1x16x4xbf16>
    %788 = vector.shape_cast %787 : vector<1x1x16x4xbf16> to vector<16x4xbf16>
    %cst_685 = arith.constant dense<0.000000e+00> : vector<16x128xf32>
    %789 = tpu.matmul %788, %16, %cst_685 {dimension_numbers = #tpu.dot_dimension_numbers<[1], [0], [0], [1], [0, 0, 1, 1], [], []>} : vector<16x4xbf16>, vector<4x128xbf16>, vector<16x128xf32> -> vector<16x128xf32>
    %790 = arith.addf %783, %789 : vector<16x128xf32>
    %c11_i32_686 = arith.constant 11 : i32
    %791 = arith.addi %0, %c11_i32_686 : i32
    %c2_i32_687 = arith.constant 2 : i32
    %792 = arith.addi %791, %c2_i32_687 : i32
    %c0_688 = arith.constant 0 : index
    %793 = arith.index_cast %792 : i32 to index
    %c2_689 = arith.constant 2 : index
    %c0_690 = arith.constant 0 : index
    %794 = vector.load %arg2[%c0_688, %793, %c2_689, %c0_690] : memref<1x18x18x4xbf16, #tpu.memory_space<vmem>>, vector<1x1x16x4xbf16>
    %795 = vector.shape_cast %794 : vector<1x1x16x4xbf16> to vector<16x4xbf16>
    %cst_691 = arith.constant dense<0.000000e+00> : vector<16x128xf32>
    %796 = tpu.matmul %795, %18, %cst_691 {dimension_numbers = #tpu.dot_dimension_numbers<[1], [0], [0], [1], [0, 0, 1, 1], [], []>} : vector<16x4xbf16>, vector<4x128xbf16>, vector<16x128xf32> -> vector<16x128xf32>
    %797 = arith.addf %790, %796 : vector<16x128xf32>
    %c176 = arith.constant 176 : index
    %c0_692 = arith.constant 0 : index
    %798 = vector.load %arg4[%c176, %c0_692] : memref<256x128xf32, #tpu.memory_space<vmem>>, vector<16x128xf32>
    tpu.vector_store %arg4[%c176, %c0_692], %797 {strides = array<i32>} : memref<256x128xf32, #tpu.memory_space<vmem>>, vector<16x128xf32>,
    %cst_693 = arith.constant 0.000000e+00 : f32
    %799 = vector.broadcast %cst_693 : f32 to vector<16x128xf32>
    %c12_i32 = arith.constant 12 : i32
    %800 = arith.addi %0, %c12_i32 : i32
    %c0_i32_694 = arith.constant 0 : i32
    %801 = arith.addi %800, %c0_i32_694 : i32
    %c0_695 = arith.constant 0 : index
    %802 = arith.index_cast %801 : i32 to index
    %c0_696 = arith.constant 0 : index
    %c0_697 = arith.constant 0 : index
    %803 = vector.load %arg2[%c0_695, %802, %c0_696, %c0_697] : memref<1x18x18x4xbf16, #tpu.memory_space<vmem>>, vector<1x1x16x4xbf16>
    %804 = vector.shape_cast %803 : vector<1x1x16x4xbf16> to vector<16x4xbf16>
    %cst_698 = arith.constant dense<0.000000e+00> : vector<16x128xf32>
    %805 = tpu.matmul %804, %2, %cst_698 {dimension_numbers = #tpu.dot_dimension_numbers<[1], [0], [0], [1], [0, 0, 1, 1], [], []>} : vector<16x4xbf16>, vector<4x128xbf16>, vector<16x128xf32> -> vector<16x128xf32>
    %806 = arith.addf %799, %805 : vector<16x128xf32>
    %c12_i32_699 = arith.constant 12 : i32
    %807 = arith.addi %0, %c12_i32_699 : i32
    %c0_i32_700 = arith.constant 0 : i32
    %808 = arith.addi %807, %c0_i32_700 : i32
    %c0_701 = arith.constant 0 : index
    %809 = arith.index_cast %808 : i32 to index
    %c1_702 = arith.constant 1 : index
    %c0_703 = arith.constant 0 : index
    %810 = vector.load %arg2[%c0_701, %809, %c1_702, %c0_703] : memref<1x18x18x4xbf16, #tpu.memory_space<vmem>>, vector<1x1x16x4xbf16>
    %811 = vector.shape_cast %810 : vector<1x1x16x4xbf16> to vector<16x4xbf16>
    %cst_704 = arith.constant dense<0.000000e+00> : vector<16x128xf32>
    %812 = tpu.matmul %811, %4, %cst_704 {dimension_numbers = #tpu.dot_dimension_numbers<[1], [0], [0], [1], [0, 0, 1, 1], [], []>} : vector<16x4xbf16>, vector<4x128xbf16>, vector<16x128xf32> -> vector<16x128xf32>
    %813 = arith.addf %806, %812 : vector<16x128xf32>
    %c12_i32_705 = arith.constant 12 : i32
    %814 = arith.addi %0, %c12_i32_705 : i32
    %c0_i32_706 = arith.constant 0 : i32
    %815 = arith.addi %814, %c0_i32_706 : i32
    %c0_707 = arith.constant 0 : index
    %816 = arith.index_cast %815 : i32 to index
    %c2_708 = arith.constant 2 : index
    %c0_709 = arith.constant 0 : index
    %817 = vector.load %arg2[%c0_707, %816, %c2_708, %c0_709] : memref<1x18x18x4xbf16, #tpu.memory_space<vmem>>, vector<1x1x16x4xbf16>
    %818 = vector.shape_cast %817 : vector<1x1x16x4xbf16> to vector<16x4xbf16>
    %cst_710 = arith.constant dense<0.000000e+00> : vector<16x128xf32>
    %819 = tpu.matmul %818, %6, %cst_710 {dimension_numbers = #tpu.dot_dimension_numbers<[1], [0], [0], [1], [0, 0, 1, 1], [], []>} : vector<16x4xbf16>, vector<4x128xbf16>, vector<16x128xf32> -> vector<16x128xf32>
    %820 = arith.addf %813, %819 : vector<16x128xf32>
    %c12_i32_711 = arith.constant 12 : i32
    %821 = arith.addi %0, %c12_i32_711 : i32
    %c1_i32_712 = arith.constant 1 : i32
    %822 = arith.addi %821, %c1_i32_712 : i32
    %c0_713 = arith.constant 0 : index
    %823 = arith.index_cast %822 : i32 to index
    %c0_714 = arith.constant 0 : index
    %c0_715 = arith.constant 0 : index
    %824 = vector.load %arg2[%c0_713, %823, %c0_714, %c0_715] : memref<1x18x18x4xbf16, #tpu.memory_space<vmem>>, vector<1x1x16x4xbf16>
    %825 = vector.shape_cast %824 : vector<1x1x16x4xbf16> to vector<16x4xbf16>
    %cst_716 = arith.constant dense<0.000000e+00> : vector<16x128xf32>
    %826 = tpu.matmul %825, %8, %cst_716 {dimension_numbers = #tpu.dot_dimension_numbers<[1], [0], [0], [1], [0, 0, 1, 1], [], []>} : vector<16x4xbf16>, vector<4x128xbf16>, vector<16x128xf32> -> vector<16x128xf32>
    %827 = arith.addf %820, %826 : vector<16x128xf32>
    %c12_i32_717 = arith.constant 12 : i32
    %828 = arith.addi %0, %c12_i32_717 : i32
    %c1_i32_718 = arith.constant 1 : i32
    %829 = arith.addi %828, %c1_i32_718 : i32
    %c0_719 = arith.constant 0 : index
    %830 = arith.index_cast %829 : i32 to index
    %c1_720 = arith.constant 1 : index
    %c0_721 = arith.constant 0 : index
    %831 = vector.load %arg2[%c0_719, %830, %c1_720, %c0_721] : memref<1x18x18x4xbf16, #tpu.memory_space<vmem>>, vector<1x1x16x4xbf16>
    %832 = vector.shape_cast %831 : vector<1x1x16x4xbf16> to vector<16x4xbf16>
    %cst_722 = arith.constant dense<0.000000e+00> : vector<16x128xf32>
    %833 = tpu.matmul %832, %10, %cst_722 {dimension_numbers = #tpu.dot_dimension_numbers<[1], [0], [0], [1], [0, 0, 1, 1], [], []>} : vector<16x4xbf16>, vector<4x128xbf16>, vector<16x128xf32> -> vector<16x128xf32>
    %834 = arith.addf %827, %833 : vector<16x128xf32>
    %c12_i32_723 = arith.constant 12 : i32
    %835 = arith.addi %0, %c12_i32_723 : i32
    %c1_i32_724 = arith.constant 1 : i32
    %836 = arith.addi %835, %c1_i32_724 : i32
    %c0_725 = arith.constant 0 : index
    %837 = arith.index_cast %836 : i32 to index
    %c2_726 = arith.constant 2 : index
    %c0_727 = arith.constant 0 : index
    %838 = vector.load %arg2[%c0_725, %837, %c2_726, %c0_727] : memref<1x18x18x4xbf16, #tpu.memory_space<vmem>>, vector<1x1x16x4xbf16>
    %839 = vector.shape_cast %838 : vector<1x1x16x4xbf16> to vector<16x4xbf16>
    %cst_728 = arith.constant dense<0.000000e+00> : vector<16x128xf32>
    %840 = tpu.matmul %839, %12, %cst_728 {dimension_numbers = #tpu.dot_dimension_numbers<[1], [0], [0], [1], [0, 0, 1, 1], [], []>} : vector<16x4xbf16>, vector<4x128xbf16>, vector<16x128xf32> -> vector<16x128xf32>
    %841 = arith.addf %834, %840 : vector<16x128xf32>
    %c12_i32_729 = arith.constant 12 : i32
    %842 = arith.addi %0, %c12_i32_729 : i32
    %c2_i32_730 = arith.constant 2 : i32
    %843 = arith.addi %842, %c2_i32_730 : i32
    %c0_731 = arith.constant 0 : index
    %844 = arith.index_cast %843 : i32 to index
    %c0_732 = arith.constant 0 : index
    %c0_733 = arith.constant 0 : index
    %845 = vector.load %arg2[%c0_731, %844, %c0_732, %c0_733] : memref<1x18x18x4xbf16, #tpu.memory_space<vmem>>, vector<1x1x16x4xbf16>
    %846 = vector.shape_cast %845 : vector<1x1x16x4xbf16> to vector<16x4xbf16>
    %cst_734 = arith.constant dense<0.000000e+00> : vector<16x128xf32>
    %847 = tpu.matmul %846, %14, %cst_734 {dimension_numbers = #tpu.dot_dimension_numbers<[1], [0], [0], [1], [0, 0, 1, 1], [], []>} : vector<16x4xbf16>, vector<4x128xbf16>, vector<16x128xf32> -> vector<16x128xf32>
    %848 = arith.addf %841, %847 : vector<16x128xf32>
    %c12_i32_735 = arith.constant 12 : i32
    %849 = arith.addi %0, %c12_i32_735 : i32
    %c2_i32_736 = arith.constant 2 : i32
    %850 = arith.addi %849, %c2_i32_736 : i32
    %c0_737 = arith.constant 0 : index
    %851 = arith.index_cast %850 : i32 to index
    %c1_738 = arith.constant 1 : index
    %c0_739 = arith.constant 0 : index
    %852 = vector.load %arg2[%c0_737, %851, %c1_738, %c0_739] : memref<1x18x18x4xbf16, #tpu.memory_space<vmem>>, vector<1x1x16x4xbf16>
    %853 = vector.shape_cast %852 : vector<1x1x16x4xbf16> to vector<16x4xbf16>
    %cst_740 = arith.constant dense<0.000000e+00> : vector<16x128xf32>
    %854 = tpu.matmul %853, %16, %cst_740 {dimension_numbers = #tpu.dot_dimension_numbers<[1], [0], [0], [1], [0, 0, 1, 1], [], []>} : vector<16x4xbf16>, vector<4x128xbf16>, vector<16x128xf32> -> vector<16x128xf32>
    %855 = arith.addf %848, %854 : vector<16x128xf32>
    %c12_i32_741 = arith.constant 12 : i32
    %856 = arith.addi %0, %c12_i32_741 : i32
    %c2_i32_742 = arith.constant 2 : i32
    %857 = arith.addi %856, %c2_i32_742 : i32
    %c0_743 = arith.constant 0 : index
    %858 = arith.index_cast %857 : i32 to index
    %c2_744 = arith.constant 2 : index
    %c0_745 = arith.constant 0 : index
    %859 = vector.load %arg2[%c0_743, %858, %c2_744, %c0_745] : memref<1x18x18x4xbf16, #tpu.memory_space<vmem>>, vector<1x1x16x4xbf16>
    %860 = vector.shape_cast %859 : vector<1x1x16x4xbf16> to vector<16x4xbf16>
    %cst_746 = arith.constant dense<0.000000e+00> : vector<16x128xf32>
    %861 = tpu.matmul %860, %18, %cst_746 {dimension_numbers = #tpu.dot_dimension_numbers<[1], [0], [0], [1], [0, 0, 1, 1], [], []>} : vector<16x4xbf16>, vector<4x128xbf16>, vector<16x128xf32> -> vector<16x128xf32>
    %862 = arith.addf %855, %861 : vector<16x128xf32>
    %c192 = arith.constant 192 : index
    %c0_747 = arith.constant 0 : index
    %863 = vector.load %arg4[%c192, %c0_747] : memref<256x128xf32, #tpu.memory_space<vmem>>, vector<16x128xf32>
    tpu.vector_store %arg4[%c192, %c0_747], %862 {strides = array<i32>} : memref<256x128xf32, #tpu.memory_space<vmem>>, vector<16x128xf32>,
    %cst_748 = arith.constant 0.000000e+00 : f32
    %864 = vector.broadcast %cst_748 : f32 to vector<16x128xf32>
    %c13_i32 = arith.constant 13 : i32
    %865 = arith.addi %0, %c13_i32 : i32
    %c0_i32_749 = arith.constant 0 : i32
    %866 = arith.addi %865, %c0_i32_749 : i32
    %c0_750 = arith.constant 0 : index
    %867 = arith.index_cast %866 : i32 to index
    %c0_751 = arith.constant 0 : index
    %c0_752 = arith.constant 0 : index
    %868 = vector.load %arg2[%c0_750, %867, %c0_751, %c0_752] : memref<1x18x18x4xbf16, #tpu.memory_space<vmem>>, vector<1x1x16x4xbf16>
    %869 = vector.shape_cast %868 : vector<1x1x16x4xbf16> to vector<16x4xbf16>
    %cst_753 = arith.constant dense<0.000000e+00> : vector<16x128xf32>
    %870 = tpu.matmul %869, %2, %cst_753 {dimension_numbers = #tpu.dot_dimension_numbers<[1], [0], [0], [1], [0, 0, 1, 1], [], []>} : vector<16x4xbf16>, vector<4x128xbf16>, vector<16x128xf32> -> vector<16x128xf32>
    %871 = arith.addf %864, %870 : vector<16x128xf32>
    %c13_i32_754 = arith.constant 13 : i32
    %872 = arith.addi %0, %c13_i32_754 : i32
    %c0_i32_755 = arith.constant 0 : i32
    %873 = arith.addi %872, %c0_i32_755 : i32
    %c0_756 = arith.constant 0 : index
    %874 = arith.index_cast %873 : i32 to index
    %c1_757 = arith.constant 1 : index
    %c0_758 = arith.constant 0 : index
    %875 = vector.load %arg2[%c0_756, %874, %c1_757, %c0_758] : memref<1x18x18x4xbf16, #tpu.memory_space<vmem>>, vector<1x1x16x4xbf16>
    %876 = vector.shape_cast %875 : vector<1x1x16x4xbf16> to vector<16x4xbf16>
    %cst_759 = arith.constant dense<0.000000e+00> : vector<16x128xf32>
    %877 = tpu.matmul %876, %4, %cst_759 {dimension_numbers = #tpu.dot_dimension_numbers<[1], [0], [0], [1], [0, 0, 1, 1], [], []>} : vector<16x4xbf16>, vector<4x128xbf16>, vector<16x128xf32> -> vector<16x128xf32>
    %878 = arith.addf %871, %877 : vector<16x128xf32>
    %c13_i32_760 = arith.constant 13 : i32
    %879 = arith.addi %0, %c13_i32_760 : i32
    %c0_i32_761 = arith.constant 0 : i32
    %880 = arith.addi %879, %c0_i32_761 : i32
    %c0_762 = arith.constant 0 : index
    %881 = arith.index_cast %880 : i32 to index
    %c2_763 = arith.constant 2 : index
    %c0_764 = arith.constant 0 : index
    %882 = vector.load %arg2[%c0_762, %881, %c2_763, %c0_764] : memref<1x18x18x4xbf16, #tpu.memory_space<vmem>>, vector<1x1x16x4xbf16>
    %883 = vector.shape_cast %882 : vector<1x1x16x4xbf16> to vector<16x4xbf16>
    %cst_765 = arith.constant dense<0.000000e+00> : vector<16x128xf32>
    %884 = tpu.matmul %883, %6, %cst_765 {dimension_numbers = #tpu.dot_dimension_numbers<[1], [0], [0], [1], [0, 0, 1, 1], [], []>} : vector<16x4xbf16>, vector<4x128xbf16>, vector<16x128xf32> -> vector<16x128xf32>
    %885 = arith.addf %878, %884 : vector<16x128xf32>
    %c13_i32_766 = arith.constant 13 : i32
    %886 = arith.addi %0, %c13_i32_766 : i32
    %c1_i32_767 = arith.constant 1 : i32
    %887 = arith.addi %886, %c1_i32_767 : i32
    %c0_768 = arith.constant 0 : index
    %888 = arith.index_cast %887 : i32 to index
    %c0_769 = arith.constant 0 : index
    %c0_770 = arith.constant 0 : index
    %889 = vector.load %arg2[%c0_768, %888, %c0_769, %c0_770] : memref<1x18x18x4xbf16, #tpu.memory_space<vmem>>, vector<1x1x16x4xbf16>
    %890 = vector.shape_cast %889 : vector<1x1x16x4xbf16> to vector<16x4xbf16>
    %cst_771 = arith.constant dense<0.000000e+00> : vector<16x128xf32>
    %891 = tpu.matmul %890, %8, %cst_771 {dimension_numbers = #tpu.dot_dimension_numbers<[1], [0], [0], [1], [0, 0, 1, 1], [], []>} : vector<16x4xbf16>, vector<4x128xbf16>, vector<16x128xf32> -> vector<16x128xf32>
    %892 = arith.addf %885, %891 : vector<16x128xf32>
    %c13_i32_772 = arith.constant 13 : i32
    %893 = arith.addi %0, %c13_i32_772 : i32
    %c1_i32_773 = arith.constant 1 : i32
    %894 = arith.addi %893, %c1_i32_773 : i32
    %c0_774 = arith.constant 0 : index
    %895 = arith.index_cast %894 : i32 to index
    %c1_775 = arith.constant 1 : index
    %c0_776 = arith.constant 0 : index
    %896 = vector.load %arg2[%c0_774, %895, %c1_775, %c0_776] : memref<1x18x18x4xbf16, #tpu.memory_space<vmem>>, vector<1x1x16x4xbf16>
    %897 = vector.shape_cast %896 : vector<1x1x16x4xbf16> to vector<16x4xbf16>
    %cst_777 = arith.constant dense<0.000000e+00> : vector<16x128xf32>
    %898 = tpu.matmul %897, %10, %cst_777 {dimension_numbers = #tpu.dot_dimension_numbers<[1], [0], [0], [1], [0, 0, 1, 1], [], []>} : vector<16x4xbf16>, vector<4x128xbf16>, vector<16x128xf32> -> vector<16x128xf32>
    %899 = arith.addf %892, %898 : vector<16x128xf32>
    %c13_i32_778 = arith.constant 13 : i32
    %900 = arith.addi %0, %c13_i32_778 : i32
    %c1_i32_779 = arith.constant 1 : i32
    %901 = arith.addi %900, %c1_i32_779 : i32
    %c0_780 = arith.constant 0 : index
    %902 = arith.index_cast %901 : i32 to index
    %c2_781 = arith.constant 2 : index
    %c0_782 = arith.constant 0 : index
    %903 = vector.load %arg2[%c0_780, %902, %c2_781, %c0_782] : memref<1x18x18x4xbf16, #tpu.memory_space<vmem>>, vector<1x1x16x4xbf16>
    %904 = vector.shape_cast %903 : vector<1x1x16x4xbf16> to vector<16x4xbf16>
    %cst_783 = arith.constant dense<0.000000e+00> : vector<16x128xf32>
    %905 = tpu.matmul %904, %12, %cst_783 {dimension_numbers = #tpu.dot_dimension_numbers<[1], [0], [0], [1], [0, 0, 1, 1], [], []>} : vector<16x4xbf16>, vector<4x128xbf16>, vector<16x128xf32> -> vector<16x128xf32>
    %906 = arith.addf %899, %905 : vector<16x128xf32>
    %c13_i32_784 = arith.constant 13 : i32
    %907 = arith.addi %0, %c13_i32_784 : i32
    %c2_i32_785 = arith.constant 2 : i32
    %908 = arith.addi %907, %c2_i32_785 : i32
    %c0_786 = arith.constant 0 : index
    %909 = arith.index_cast %908 : i32 to index
    %c0_787 = arith.constant 0 : index
    %c0_788 = arith.constant 0 : index
    %910 = vector.load %arg2[%c0_786, %909, %c0_787, %c0_788] : memref<1x18x18x4xbf16, #tpu.memory_space<vmem>>, vector<1x1x16x4xbf16>
    %911 = vector.shape_cast %910 : vector<1x1x16x4xbf16> to vector<16x4xbf16>
    %cst_789 = arith.constant dense<0.000000e+00> : vector<16x128xf32>
    %912 = tpu.matmul %911, %14, %cst_789 {dimension_numbers = #tpu.dot_dimension_numbers<[1], [0], [0], [1], [0, 0, 1, 1], [], []>} : vector<16x4xbf16>, vector<4x128xbf16>, vector<16x128xf32> -> vector<16x128xf32>
    %913 = arith.addf %906, %912 : vector<16x128xf32>
    %c13_i32_790 = arith.constant 13 : i32
    %914 = arith.addi %0, %c13_i32_790 : i32
    %c2_i32_791 = arith.constant 2 : i32
    %915 = arith.addi %914, %c2_i32_791 : i32
    %c0_792 = arith.constant 0 : index
    %916 = arith.index_cast %915 : i32 to index
    %c1_793 = arith.constant 1 : index
    %c0_794 = arith.constant 0 : index
    %917 = vector.load %arg2[%c0_792, %916, %c1_793, %c0_794] : memref<1x18x18x4xbf16, #tpu.memory_space<vmem>>, vector<1x1x16x4xbf16>
    %918 = vector.shape_cast %917 : vector<1x1x16x4xbf16> to vector<16x4xbf16>
    %cst_795 = arith.constant dense<0.000000e+00> : vector<16x128xf32>
    %919 = tpu.matmul %918, %16, %cst_795 {dimension_numbers = #tpu.dot_dimension_numbers<[1], [0], [0], [1], [0, 0, 1, 1], [], []>} : vector<16x4xbf16>, vector<4x128xbf16>, vector<16x128xf32> -> vector<16x128xf32>
    %920 = arith.addf %913, %919 : vector<16x128xf32>
    %c13_i32_796 = arith.constant 13 : i32
    %921 = arith.addi %0, %c13_i32_796 : i32
    %c2_i32_797 = arith.constant 2 : i32
    %922 = arith.addi %921, %c2_i32_797 : i32
    %c0_798 = arith.constant 0 : index
    %923 = arith.index_cast %922 : i32 to index
    %c2_799 = arith.constant 2 : index
    %c0_800 = arith.constant 0 : index
    %924 = vector.load %arg2[%c0_798, %923, %c2_799, %c0_800] : memref<1x18x18x4xbf16, #tpu.memory_space<vmem>>, vector<1x1x16x4xbf16>
    %925 = vector.shape_cast %924 : vector<1x1x16x4xbf16> to vector<16x4xbf16>
    %cst_801 = arith.constant dense<0.000000e+00> : vector<16x128xf32>
    %926 = tpu.matmul %925, %18, %cst_801 {dimension_numbers = #tpu.dot_dimension_numbers<[1], [0], [0], [1], [0, 0, 1, 1], [], []>} : vector<16x4xbf16>, vector<4x128xbf16>, vector<16x128xf32> -> vector<16x128xf32>
    %927 = arith.addf %920, %926 : vector<16x128xf32>
    %c208 = arith.constant 208 : index
    %c0_802 = arith.constant 0 : index
    %928 = vector.load %arg4[%c208, %c0_802] : memref<256x128xf32, #tpu.memory_space<vmem>>, vector<16x128xf32>
    tpu.vector_store %arg4[%c208, %c0_802], %927 {strides = array<i32>} : memref<256x128xf32, #tpu.memory_space<vmem>>, vector<16x128xf32>,
    %cst_803 = arith.constant 0.000000e+00 : f32
    %929 = vector.broadcast %cst_803 : f32 to vector<16x128xf32>
    %c14_i32 = arith.constant 14 : i32
    %930 = arith.addi %0, %c14_i32 : i32
    %c0_i32_804 = arith.constant 0 : i32
    %931 = arith.addi %930, %c0_i32_804 : i32
    %c0_805 = arith.constant 0 : index
    %932 = arith.index_cast %931 : i32 to index
    %c0_806 = arith.constant 0 : index
    %c0_807 = arith.constant 0 : index
    %933 = vector.load %arg2[%c0_805, %932, %c0_806, %c0_807] : memref<1x18x18x4xbf16, #tpu.memory_space<vmem>>, vector<1x1x16x4xbf16>
    %934 = vector.shape_cast %933 : vector<1x1x16x4xbf16> to vector<16x4xbf16>
    %cst_808 = arith.constant dense<0.000000e+00> : vector<16x128xf32>
    %935 = tpu.matmul %934, %2, %cst_808 {dimension_numbers = #tpu.dot_dimension_numbers<[1], [0], [0], [1], [0, 0, 1, 1], [], []>} : vector<16x4xbf16>, vector<4x128xbf16>, vector<16x128xf32> -> vector<16x128xf32>
    %936 = arith.addf %929, %935 : vector<16x128xf32>
    %c14_i32_809 = arith.constant 14 : i32
    %937 = arith.addi %0, %c14_i32_809 : i32
    %c0_i32_810 = arith.constant 0 : i32
    %938 = arith.addi %937, %c0_i32_810 : i32
    %c0_811 = arith.constant 0 : index
    %939 = arith.index_cast %938 : i32 to index
    %c1_812 = arith.constant 1 : index
    %c0_813 = arith.constant 0 : index
    %940 = vector.load %arg2[%c0_811, %939, %c1_812, %c0_813] : memref<1x18x18x4xbf16, #tpu.memory_space<vmem>>, vector<1x1x16x4xbf16>
    %941 = vector.shape_cast %940 : vector<1x1x16x4xbf16> to vector<16x4xbf16>
    %cst_814 = arith.constant dense<0.000000e+00> : vector<16x128xf32>
    %942 = tpu.matmul %941, %4, %cst_814 {dimension_numbers = #tpu.dot_dimension_numbers<[1], [0], [0], [1], [0, 0, 1, 1], [], []>} : vector<16x4xbf16>, vector<4x128xbf16>, vector<16x128xf32> -> vector<16x128xf32>
    %943 = arith.addf %936, %942 : vector<16x128xf32>
    %c14_i32_815 = arith.constant 14 : i32
    %944 = arith.addi %0, %c14_i32_815 : i32
    %c0_i32_816 = arith.constant 0 : i32
    %945 = arith.addi %944, %c0_i32_816 : i32
    %c0_817 = arith.constant 0 : index
    %946 = arith.index_cast %945 : i32 to index
    %c2_818 = arith.constant 2 : index
    %c0_819 = arith.constant 0 : index
    %947 = vector.load %arg2[%c0_817, %946, %c2_818, %c0_819] : memref<1x18x18x4xbf16, #tpu.memory_space<vmem>>, vector<1x1x16x4xbf16>
    %948 = vector.shape_cast %947 : vector<1x1x16x4xbf16> to vector<16x4xbf16>
    %cst_820 = arith.constant dense<0.000000e+00> : vector<16x128xf32>
    %949 = tpu.matmul %948, %6, %cst_820 {dimension_numbers = #tpu.dot_dimension_numbers<[1], [0], [0], [1], [0, 0, 1, 1], [], []>} : vector<16x4xbf16>, vector<4x128xbf16>, vector<16x128xf32> -> vector<16x128xf32>
    %950 = arith.addf %943, %949 : vector<16x128xf32>
    %c14_i32_821 = arith.constant 14 : i32
    %951 = arith.addi %0, %c14_i32_821 : i32
    %c1_i32_822 = arith.constant 1 : i32
    %952 = arith.addi %951, %c1_i32_822 : i32
    %c0_823 = arith.constant 0 : index
    %953 = arith.index_cast %952 : i32 to index
    %c0_824 = arith.constant 0 : index
    %c0_825 = arith.constant 0 : index
    %954 = vector.load %arg2[%c0_823, %953, %c0_824, %c0_825] : memref<1x18x18x4xbf16, #tpu.memory_space<vmem>>, vector<1x1x16x4xbf16>
    %955 = vector.shape_cast %954 : vector<1x1x16x4xbf16> to vector<16x4xbf16>
    %cst_826 = arith.constant dense<0.000000e+00> : vector<16x128xf32>
    %956 = tpu.matmul %955, %8, %cst_826 {dimension_numbers = #tpu.dot_dimension_numbers<[1], [0], [0], [1], [0, 0, 1, 1], [], []>} : vector<16x4xbf16>, vector<4x128xbf16>, vector<16x128xf32> -> vector<16x128xf32>
    %957 = arith.addf %950, %956 : vector<16x128xf32>
    %c14_i32_827 = arith.constant 14 : i32
    %958 = arith.addi %0, %c14_i32_827 : i32
    %c1_i32_828 = arith.constant 1 : i32
    %959 = arith.addi %958, %c1_i32_828 : i32
    %c0_829 = arith.constant 0 : index
    %960 = arith.index_cast %959 : i32 to index
    %c1_830 = arith.constant 1 : index
    %c0_831 = arith.constant 0 : index
    %961 = vector.load %arg2[%c0_829, %960, %c1_830, %c0_831] : memref<1x18x18x4xbf16, #tpu.memory_space<vmem>>, vector<1x1x16x4xbf16>
    %962 = vector.shape_cast %961 : vector<1x1x16x4xbf16> to vector<16x4xbf16>
    %cst_832 = arith.constant dense<0.000000e+00> : vector<16x128xf32>
    %963 = tpu.matmul %962, %10, %cst_832 {dimension_numbers = #tpu.dot_dimension_numbers<[1], [0], [0], [1], [0, 0, 1, 1], [], []>} : vector<16x4xbf16>, vector<4x128xbf16>, vector<16x128xf32> -> vector<16x128xf32>
    %964 = arith.addf %957, %963 : vector<16x128xf32>
    %c14_i32_833 = arith.constant 14 : i32
    %965 = arith.addi %0, %c14_i32_833 : i32
    %c1_i32_834 = arith.constant 1 : i32
    %966 = arith.addi %965, %c1_i32_834 : i32
    %c0_835 = arith.constant 0 : index
    %967 = arith.index_cast %966 : i32 to index
    %c2_836 = arith.constant 2 : index
    %c0_837 = arith.constant 0 : index
    %968 = vector.load %arg2[%c0_835, %967, %c2_836, %c0_837] : memref<1x18x18x4xbf16, #tpu.memory_space<vmem>>, vector<1x1x16x4xbf16>
    %969 = vector.shape_cast %968 : vector<1x1x16x4xbf16> to vector<16x4xbf16>
    %cst_838 = arith.constant dense<0.000000e+00> : vector<16x128xf32>
    %970 = tpu.matmul %969, %12, %cst_838 {dimension_numbers = #tpu.dot_dimension_numbers<[1], [0], [0], [1], [0, 0, 1, 1], [], []>} : vector<16x4xbf16>, vector<4x128xbf16>, vector<16x128xf32> -> vector<16x128xf32>
    %971 = arith.addf %964, %970 : vector<16x128xf32>
    %c14_i32_839 = arith.constant 14 : i32
    %972 = arith.addi %0, %c14_i32_839 : i32
    %c2_i32_840 = arith.constant 2 : i32
    %973 = arith.addi %972, %c2_i32_840 : i32
    %c0_841 = arith.constant 0 : index
    %974 = arith.index_cast %973 : i32 to index
    %c0_842 = arith.constant 0 : index
    %c0_843 = arith.constant 0 : index
    %975 = vector.load %arg2[%c0_841, %974, %c0_842, %c0_843] : memref<1x18x18x4xbf16, #tpu.memory_space<vmem>>, vector<1x1x16x4xbf16>
    %976 = vector.shape_cast %975 : vector<1x1x16x4xbf16> to vector<16x4xbf16>
    %cst_844 = arith.constant dense<0.000000e+00> : vector<16x128xf32>
    %977 = tpu.matmul %976, %14, %cst_844 {dimension_numbers = #tpu.dot_dimension_numbers<[1], [0], [0], [1], [0, 0, 1, 1], [], []>} : vector<16x4xbf16>, vector<4x128xbf16>, vector<16x128xf32> -> vector<16x128xf32>
    %978 = arith.addf %971, %977 : vector<16x128xf32>
    %c14_i32_845 = arith.constant 14 : i32
    %979 = arith.addi %0, %c14_i32_845 : i32
    %c2_i32_846 = arith.constant 2 : i32
    %980 = arith.addi %979, %c2_i32_846 : i32
    %c0_847 = arith.constant 0 : index
    %981 = arith.index_cast %980 : i32 to index
    %c1_848 = arith.constant 1 : index
    %c0_849 = arith.constant 0 : index
    %982 = vector.load %arg2[%c0_847, %981, %c1_848, %c0_849] : memref<1x18x18x4xbf16, #tpu.memory_space<vmem>>, vector<1x1x16x4xbf16>
    %983 = vector.shape_cast %982 : vector<1x1x16x4xbf16> to vector<16x4xbf16>
    %cst_850 = arith.constant dense<0.000000e+00> : vector<16x128xf32>
    %984 = tpu.matmul %983, %16, %cst_850 {dimension_numbers = #tpu.dot_dimension_numbers<[1], [0], [0], [1], [0, 0, 1, 1], [], []>} : vector<16x4xbf16>, vector<4x128xbf16>, vector<16x128xf32> -> vector<16x128xf32>
    %985 = arith.addf %978, %984 : vector<16x128xf32>
    %c14_i32_851 = arith.constant 14 : i32
    %986 = arith.addi %0, %c14_i32_851 : i32
    %c2_i32_852 = arith.constant 2 : i32
    %987 = arith.addi %986, %c2_i32_852 : i32
    %c0_853 = arith.constant 0 : index
    %988 = arith.index_cast %987 : i32 to index
    %c2_854 = arith.constant 2 : index
    %c0_855 = arith.constant 0 : index
    %989 = vector.load %arg2[%c0_853, %988, %c2_854, %c0_855] : memref<1x18x18x4xbf16, #tpu.memory_space<vmem>>, vector<1x1x16x4xbf16>
    %990 = vector.shape_cast %989 : vector<1x1x16x4xbf16> to vector<16x4xbf16>
    %cst_856 = arith.constant dense<0.000000e+00> : vector<16x128xf32>
    %991 = tpu.matmul %990, %18, %cst_856 {dimension_numbers = #tpu.dot_dimension_numbers<[1], [0], [0], [1], [0, 0, 1, 1], [], []>} : vector<16x4xbf16>, vector<4x128xbf16>, vector<16x128xf32> -> vector<16x128xf32>
    %992 = arith.addf %985, %991 : vector<16x128xf32>
    %c224 = arith.constant 224 : index
    %c0_857 = arith.constant 0 : index
    %993 = vector.load %arg4[%c224, %c0_857] : memref<256x128xf32, #tpu.memory_space<vmem>>, vector<16x128xf32>
    tpu.vector_store %arg4[%c224, %c0_857], %992 {strides = array<i32>} : memref<256x128xf32, #tpu.memory_space<vmem>>, vector<16x128xf32>,
    %cst_858 = arith.constant 0.000000e+00 : f32
    %994 = vector.broadcast %cst_858 : f32 to vector<16x128xf32>
    %c15_i32 = arith.constant 15 : i32
    %995 = arith.addi %0, %c15_i32 : i32
    %c0_i32_859 = arith.constant 0 : i32
    %996 = arith.addi %995, %c0_i32_859 : i32
    %c0_860 = arith.constant 0 : index
    %997 = arith.index_cast %996 : i32 to index
    %c0_861 = arith.constant 0 : index
    %c0_862 = arith.constant 0 : index
    %998 = vector.load %arg2[%c0_860, %997, %c0_861, %c0_862] : memref<1x18x18x4xbf16, #tpu.memory_space<vmem>>, vector<1x1x16x4xbf16>
    %999 = vector.shape_cast %998 : vector<1x1x16x4xbf16> to vector<16x4xbf16>
    %cst_863 = arith.constant dense<0.000000e+00> : vector<16x128xf32>
    %1000 = tpu.matmul %999, %2, %cst_863 {dimension_numbers = #tpu.dot_dimension_numbers<[1], [0], [0], [1], [0, 0, 1, 1], [], []>} : vector<16x4xbf16>, vector<4x128xbf16>, vector<16x128xf32> -> vector<16x128xf32>
    %1001 = arith.addf %994, %1000 : vector<16x128xf32>
    %c15_i32_864 = arith.constant 15 : i32
    %1002 = arith.addi %0, %c15_i32_864 : i32
    %c0_i32_865 = arith.constant 0 : i32
    %1003 = arith.addi %1002, %c0_i32_865 : i32
    %c0_866 = arith.constant 0 : index
    %1004 = arith.index_cast %1003 : i32 to index
    %c1_867 = arith.constant 1 : index
    %c0_868 = arith.constant 0 : index
    %1005 = vector.load %arg2[%c0_866, %1004, %c1_867, %c0_868] : memref<1x18x18x4xbf16, #tpu.memory_space<vmem>>, vector<1x1x16x4xbf16>
    %1006 = vector.shape_cast %1005 : vector<1x1x16x4xbf16> to vector<16x4xbf16>
    %cst_869 = arith.constant dense<0.000000e+00> : vector<16x128xf32>
    %1007 = tpu.matmul %1006, %4, %cst_869 {dimension_numbers = #tpu.dot_dimension_numbers<[1], [0], [0], [1], [0, 0, 1, 1], [], []>} : vector<16x4xbf16>, vector<4x128xbf16>, vector<16x128xf32> -> vector<16x128xf32>
    %1008 = arith.addf %1001, %1007 : vector<16x128xf32>
    %c15_i32_870 = arith.constant 15 : i32
    %1009 = arith.addi %0, %c15_i32_870 : i32
    %c0_i32_871 = arith.constant 0 : i32
    %1010 = arith.addi %1009, %c0_i32_871 : i32
    %c0_872 = arith.constant 0 : index
    %1011 = arith.index_cast %1010 : i32 to index
    %c2_873 = arith.constant 2 : index
    %c0_874 = arith.constant 0 : index
    %1012 = vector.load %arg2[%c0_872, %1011, %c2_873, %c0_874] : memref<1x18x18x4xbf16, #tpu.memory_space<vmem>>, vector<1x1x16x4xbf16>
    %1013 = vector.shape_cast %1012 : vector<1x1x16x4xbf16> to vector<16x4xbf16>
    %cst_875 = arith.constant dense<0.000000e+00> : vector<16x128xf32>
    %1014 = tpu.matmul %1013, %6, %cst_875 {dimension_numbers = #tpu.dot_dimension_numbers<[1], [0], [0], [1], [0, 0, 1, 1], [], []>} : vector<16x4xbf16>, vector<4x128xbf16>, vector<16x128xf32> -> vector<16x128xf32>
    %1015 = arith.addf %1008, %1014 : vector<16x128xf32>
    %c15_i32_876 = arith.constant 15 : i32
    %1016 = arith.addi %0, %c15_i32_876 : i32
    %c1_i32_877 = arith.constant 1 : i32
    %1017 = arith.addi %1016, %c1_i32_877 : i32
    %c0_878 = arith.constant 0 : index
    %1018 = arith.index_cast %1017 : i32 to index
    %c0_879 = arith.constant 0 : index
    %c0_880 = arith.constant 0 : index
    %1019 = vector.load %arg2[%c0_878, %1018, %c0_879, %c0_880] : memref<1x18x18x4xbf16, #tpu.memory_space<vmem>>, vector<1x1x16x4xbf16>
    %1020 = vector.shape_cast %1019 : vector<1x1x16x4xbf16> to vector<16x4xbf16>
    %cst_881 = arith.constant dense<0.000000e+00> : vector<16x128xf32>
    %1021 = tpu.matmul %1020, %8, %cst_881 {dimension_numbers = #tpu.dot_dimension_numbers<[1], [0], [0], [1], [0, 0, 1, 1], [], []>} : vector<16x4xbf16>, vector<4x128xbf16>, vector<16x128xf32> -> vector<16x128xf32>
    %1022 = arith.addf %1015, %1021 : vector<16x128xf32>
    %c15_i32_882 = arith.constant 15 : i32
    %1023 = arith.addi %0, %c15_i32_882 : i32
    %c1_i32_883 = arith.constant 1 : i32
    %1024 = arith.addi %1023, %c1_i32_883 : i32
    %c0_884 = arith.constant 0 : index
    %1025 = arith.index_cast %1024 : i32 to index
    %c1_885 = arith.constant 1 : index
    %c0_886 = arith.constant 0 : index
    %1026 = vector.load %arg2[%c0_884, %1025, %c1_885, %c0_886] : memref<1x18x18x4xbf16, #tpu.memory_space<vmem>>, vector<1x1x16x4xbf16>
    %1027 = vector.shape_cast %1026 : vector<1x1x16x4xbf16> to vector<16x4xbf16>
    %cst_887 = arith.constant dense<0.000000e+00> : vector<16x128xf32>
    %1028 = tpu.matmul %1027, %10, %cst_887 {dimension_numbers = #tpu.dot_dimension_numbers<[1], [0], [0], [1], [0, 0, 1, 1], [], []>} : vector<16x4xbf16>, vector<4x128xbf16>, vector<16x128xf32> -> vector<16x128xf32>
    %1029 = arith.addf %1022, %1028 : vector<16x128xf32>
    %c15_i32_888 = arith.constant 15 : i32
    %1030 = arith.addi %0, %c15_i32_888 : i32
    %c1_i32_889 = arith.constant 1 : i32
    %1031 = arith.addi %1030, %c1_i32_889 : i32
    %c0_890 = arith.constant 0 : index
    %1032 = arith.index_cast %1031 : i32 to index
    %c2_891 = arith.constant 2 : index
    %c0_892 = arith.constant 0 : index
    %1033 = vector.load %arg2[%c0_890, %1032, %c2_891, %c0_892] : memref<1x18x18x4xbf16, #tpu.memory_space<vmem>>, vector<1x1x16x4xbf16>
    %1034 = vector.shape_cast %1033 : vector<1x1x16x4xbf16> to vector<16x4xbf16>
    %cst_893 = arith.constant dense<0.000000e+00> : vector<16x128xf32>
    %1035 = tpu.matmul %1034, %12, %cst_893 {dimension_numbers = #tpu.dot_dimension_numbers<[1], [0], [0], [1], [0, 0, 1, 1], [], []>} : vector<16x4xbf16>, vector<4x128xbf16>, vector<16x128xf32> -> vector<16x128xf32>
    %1036 = arith.addf %1029, %1035 : vector<16x128xf32>
    %c15_i32_894 = arith.constant 15 : i32
    %1037 = arith.addi %0, %c15_i32_894 : i32
    %c2_i32_895 = arith.constant 2 : i32
    %1038 = arith.addi %1037, %c2_i32_895 : i32
    %c0_896 = arith.constant 0 : index
    %1039 = arith.index_cast %1038 : i32 to index
    %c0_897 = arith.constant 0 : index
    %c0_898 = arith.constant 0 : index
    %1040 = vector.load %arg2[%c0_896, %1039, %c0_897, %c0_898] : memref<1x18x18x4xbf16, #tpu.memory_space<vmem>>, vector<1x1x16x4xbf16>
    %1041 = vector.shape_cast %1040 : vector<1x1x16x4xbf16> to vector<16x4xbf16>
    %cst_899 = arith.constant dense<0.000000e+00> : vector<16x128xf32>
    %1042 = tpu.matmul %1041, %14, %cst_899 {dimension_numbers = #tpu.dot_dimension_numbers<[1], [0], [0], [1], [0, 0, 1, 1], [], []>} : vector<16x4xbf16>, vector<4x128xbf16>, vector<16x128xf32> -> vector<16x128xf32>
    %1043 = arith.addf %1036, %1042 : vector<16x128xf32>
    %c15_i32_900 = arith.constant 15 : i32
    %1044 = arith.addi %0, %c15_i32_900 : i32
    %c2_i32_901 = arith.constant 2 : i32
    %1045 = arith.addi %1044, %c2_i32_901 : i32
    %c0_902 = arith.constant 0 : index
    %1046 = arith.index_cast %1045 : i32 to index
    %c1_903 = arith.constant 1 : index
    %c0_904 = arith.constant 0 : index
    %1047 = vector.load %arg2[%c0_902, %1046, %c1_903, %c0_904] : memref<1x18x18x4xbf16, #tpu.memory_space<vmem>>, vector<1x1x16x4xbf16>
    %1048 = vector.shape_cast %1047 : vector<1x1x16x4xbf16> to vector<16x4xbf16>
    %cst_905 = arith.constant dense<0.000000e+00> : vector<16x128xf32>
    %1049 = tpu.matmul %1048, %16, %cst_905 {dimension_numbers = #tpu.dot_dimension_numbers<[1], [0], [0], [1], [0, 0, 1, 1], [], []>} : vector<16x4xbf16>, vector<4x128xbf16>, vector<16x128xf32> -> vector<16x128xf32>
    %1050 = arith.addf %1043, %1049 : vector<16x128xf32>
    %c15_i32_906 = arith.constant 15 : i32
    %1051 = arith.addi %0, %c15_i32_906 : i32
    %c2_i32_907 = arith.constant 2 : i32
    %1052 = arith.addi %1051, %c2_i32_907 : i32
    %c0_908 = arith.constant 0 : index
    %1053 = arith.index_cast %1052 : i32 to index
    %c2_909 = arith.constant 2 : index
    %c0_910 = arith.constant 0 : index
    %1054 = vector.load %arg2[%c0_908, %1053, %c2_909, %c0_910] : memref<1x18x18x4xbf16, #tpu.memory_space<vmem>>, vector<1x1x16x4xbf16>
    %1055 = vector.shape_cast %1054 : vector<1x1x16x4xbf16> to vector<16x4xbf16>
    %cst_911 = arith.constant dense<0.000000e+00> : vector<16x128xf32>
    %1056 = tpu.matmul %1055, %18, %cst_911 {dimension_numbers = #tpu.dot_dimension_numbers<[1], [0], [0], [1], [0, 0, 1, 1], [], []>} : vector<16x4xbf16>, vector<4x128xbf16>, vector<16x128xf32> -> vector<16x128xf32>
    %1057 = arith.addf %1050, %1056 : vector<16x128xf32>
    %c240 = arith.constant 240 : index
    %c0_912 = arith.constant 0 : index
    %1058 = vector.load %arg4[%c240, %c0_912] : memref<256x128xf32, #tpu.memory_space<vmem>>, vector<16x128xf32>
    tpu.vector_store %arg4[%c240, %c0_912], %1057 {strides = array<i32>} : memref<256x128xf32, #tpu.memory_space<vmem>>, vector<16x128xf32>,
    %c0_913 = arith.constant 0 : index
    %c0_914 = arith.constant 0 : index
    %1059 = vector.load %arg4[%c0_913, %c0_914] : memref<256x128xf32, #tpu.memory_space<vmem>>, vector<256x128xf32>
    %cst_915 = arith.constant dense<0.000000e+00> : vector<128xf32>
    %1060 = vector.multi_reduction <add>, %1059, %cst_915 [0] : vector<256x128xf32> to vector<128xf32>
    %1061 = vector.shape_cast %1060 : vector<128xf32> to vector<1x128xf32>
    %1062 = arith.mulf %1059, %1059 : vector<256x128xf32>
    %cst_916 = arith.constant dense<0.000000e+00> : vector<128xf32>
    %1063 = vector.multi_reduction <add>, %1062, %cst_916 [0] : vector<256x128xf32> to vector<128xf32>
    %1064 = vector.shape_cast %1063 : vector<128xf32> to vector<1x128xf32>
    %1065 = tpu.concatenate %1061, %1064 in 0 : vector<1x128xf32>, vector<1x128xf32> -> vector<2x128xf32>
    %c0_917 = arith.constant 0 : index
    %c0_918 = arith.constant 0 : index
    %c0_919 = arith.constant 0 : index
    %1066 = vector.load %arg5[%c0_917, %c0_918, %c0_919] : memref<1x2x128xf32, #tpu.memory_space<vmem>>, vector<1x2x128xf32>
    %1067 = vector.shape_cast %1066 : vector<1x2x128xf32> to vector<2x128xf32>
    %1068 = vector.shape_cast %1065 : vector<2x128xf32> to vector<1x2x128xf32>
    tpu.vector_store %arg5[%c0_917, %c0_918, %c0_919], %1068 {strides = array<i32>} : memref<1x2x128xf32, #tpu.memory_space<vmem>>, vector<1x2x128xf32>,
    return
  }
  func.func @transform_0(%arg0: i32, %arg1: i32) -> (i32, i32, i32, i32) {
    %c0_i32 = arith.constant 0 : i32
    %c0_i32_0 = arith.constant 0 : i32
    %c0_i32_1 = arith.constant 0 : i32
    %c0_i32_2 = arith.constant 0 : i32
    return %arg0, %c0_i32, %c0_i32_0, %c0_i32_1 : i32, i32, i32, i32
  }
  func.func @transform_1(%arg0: i32, %arg1: i32) -> (i32, i32, i32, i32) {
    %c0_i32 = arith.constant 0 : i32
    %c0_i32_0 = arith.constant 0 : i32
    %c0_i32_1 = arith.constant 0 : i32
    %c0_i32_2 = arith.constant 0 : i32
    %c0_i32_3 = arith.constant 0 : i32
    return %c0_i32, %c0_i32_0, %c0_i32_1, %c0_i32_2 : i32, i32, i32, i32
  }
  func.func @transform_2(%arg0: i32, %arg1: i32) -> (i32, i32) {
    %c1_i32 = arith.constant 1 : i32
    %0 = arith.muli %arg0, %c1_i32 : i32
    %1 = arith.addi %0, %arg1 : i32
    %c0_i32 = arith.constant 0 : i32
    %c0_i32_0 = arith.constant 0 : i32
    return %1, %c0_i32 : i32, i32
  }
  func.func @transform_3(%arg0: i32, %arg1: i32) -> (i32, i32, i32) {
    %c1_i32 = arith.constant 1 : i32
    %0 = arith.muli %arg0, %c1_i32 : i32
    %1 = arith.addi %0, %arg1 : i32
    %c0_i32 = arith.constant 0 : i32
    %c0_i32_0 = arith.constant 0 : i32
    %c0_i32_1 = arith.constant 0 : i32
    return %1, %c0_i32, %c0_i32_0 : i32, i32, i32
  }
}

</mosaic_0001>

<bundles_post_ra>
// kernel: conv_bn_forward.3
= control target key start
LH: loop header
LB: loop body
LE: loop exit
PB: predicated region body
PF: predicated region fallthrough
CT: control target
= control target key end

     0   :  { %s832_s0 = inlined_call_operand.vmem [shape: f32[512,128], index: 0, kind: input, shape index: {}]   ;;  %s833_s1 = inlined_call_operand.vmem [shape: f32[1,128], index: 1, kind: input, shape index: {}]   ;;  %s834_s2 = inlined_call_operand.vmem [shape: f32[1,128], index: 2, kind: input, shape index: {}]   ;;  %s835_s3 = inlined_call_operand.vmem [shape: f32[512,128], index: 3, kind: output, shape index: {}]  }
   0x1   :  { %v14_v0 = vld [vmem:[%s832_s0] sm:$0xff]  ;;  %v15_v4 = vld [vmem:[%s832_s0 + $0x8] sm:$0xff]  ;;  %v16_v5 = vld [vmem:[%s832_s0 + $0x10] sm:$0xff] }
   0x2   :  { %v316_v1 = vld [vmem:[%s833_s1] ss:$0 sm:$0xff]  ;;  %v17_v6 = vld [vmem:[%s832_s0 + $0x18] sm:$0xff]  ;;  %v19_v11 = vld [vmem:[%s832_s0 + $0x28] sm:$0xff] }
   0x3   :  { %v321_v2 = vld [vmem:[%s834_s2] ss:$0 sm:$0xff]  ;;  %v85_v3 = vmul.f32 %v316_v1, %v14_v0  ;;  %v86_v7 = vmul.f32 %v316_v1, %v15_v4  ;;  %v87_v8 = vmul.f32 %v316_v1, %v16_v5  ;;  %v88_v9 = vmul.f32 %v316_v1, %v17_v6  ;;  %v20_v12 = vld [vmem:[%s832_s0 + $0x30] sm:$0xff]  ;;  %v21_v17 = vld [vmem:[%s832_s0 + $0x38] sm:$0xff] }
   0x4   :  { %v18_v10 = vld [vmem:[%s832_s0 + $0x20] sm:$0xff]  ;;  %v90_v15 = vmul.f32 %v316_v1, %v19_v11  ;;  %v91_v16 = vmul.f32 %v316_v1, %v20_v12  ;;  %v23_v19 = vld [vmem:[%s832_s0 + $0x48] sm:$0xff]  ;;  %v92_v23 = vmul.f32 %v316_v1, %v21_v17  ;;  %v24_v24 = vld [vmem:[%s832_s0 + $0x50] sm:$0xff] }
   0x5   :  { %v156_v13 = vadd.f32 %v321_v2, %v85_v3  ;;  %v89_v14 = vmul.f32 %v316_v1, %v18_v10  ;;  %v22_v18 = vld [vmem:[%s832_s0 + $0x40] sm:$0xff]  ;;  %v157_v20 = vadd.f32 %v321_v2, %v86_v7  ;;  %v158_v21 = vadd.f32 %v321_v2, %v87_v8  ;;  %v25_v25 = vld [vmem:[%s832_s0 + $0x58] sm:$0xff]  ;;  %v27_v31 = vld [vmem:[%s832_s0 + $0x68] sm:$0xff] }
   0x6   :  { %v159_v22 = vadd.f32 %v321_v2, %v88_v9  ;;  %v26_v26 = vld [vmem:[%s832_s0 + $0x60] sm:$0xff]  ;;  %v161_v28 = vadd.f32 %v321_v2, %v90_v15  ;;  %v162_v29 = vadd.f32 %v321_v2, %v91_v16  ;;  %v93_v30 = vmul.f32 %v316_v1, %v22_v18  ;;  %v28_v32 = vld [vmem:[%s832_s0 + $0x70] sm:$0xff]  ;;  %v29_v33 = vld [vmem:[%s832_s0 + $0x78] sm:$0xff] }
   0x7   :  { %220 = vst [vmem:[%s835_s3] sm:$0xff] %v156_v13  ;;  %v160_v27 = vadd.f32 %v321_v2, %v89_v14  ;;  %221 = vst [vmem:[%s835_s3 + $0x8] sm:$0xff] %v157_v20  ;;  %v163_v34 = vadd.f32 %v321_v2, %v92_v23  ;;  %v94_v35 = vmul.f32 %v316_v1, %v23_v19  ;;  %v30_v38 = vld [vmem:[%s832_s0 + $0x80] sm:$0xff]  ;;  %v31_v43 = vld [vmem:[%s832_s0 + $0x88] sm:$0xff] }
   0x8   :  { %222 = vst [vmem:[%s835_s3 + $0x10] sm:$0xff] %v158_v21  ;;  %223 = vst [vmem:[%s835_s3 + $0x18] sm:$0xff] %v159_v22  ;;  %v95_v36 = vmul.f32 %v316_v1, %v24_v24  ;;  %v96_v37 = vmul.f32 %v316_v1, %v25_v25  ;;  %v164_v39 = vadd.f32 %v321_v2, %v93_v30  ;;  %v32_v44 = vld [vmem:[%s832_s0 + $0x90] sm:$0xff]  ;;  %v33_v45 = vld [vmem:[%s832_s0 + $0x98] sm:$0xff] }
   0x9   :  { %224 = vst [vmem:[%s835_s3 + $0x20] sm:$0xff] %v160_v27  ;;  %225 = vst [vmem:[%s835_s3 + $0x28] sm:$0xff] %v161_v28  ;;  %v97_v40 = vmul.f32 %v316_v1, %v26_v26  ;;  %v98_v41 = vmul.f32 %v316_v1, %v27_v31  ;;  %v99_v42 = vmul.f32 %v316_v1, %v28_v32  ;;  %v34_v50 = vld [vmem:[%s832_s0 + $0xa0] sm:$0xff]  ;;  %v35_v51 = vld [vmem:[%s832_s0 + $0xa8] sm:$0xff] }
   0xa   :  { %226 = vst [vmem:[%s835_s3 + $0x30] sm:$0xff] %v162_v29  ;;  %227 = vst [vmem:[%s835_s3 + $0x38] sm:$0xff] %v163_v34  ;;  %v165_v46 = vadd.f32 %v321_v2, %v94_v35  ;;  %v166_v47 = vadd.f32 %v321_v2, %v95_v36  ;;  %v167_v48 = vadd.f32 %v321_v2, %v96_v37  ;;  %v36_v52 = vld [vmem:[%s832_s0 + $0xb0] sm:$0xff]  ;;  %v37_v57 = vld [vmem:[%s832_s0 + $0xb8] sm:$0xff] }
   0xb   :  { %v100_v49 = vmul.f32 %v316_v1, %v29_v33  ;;  %228 = vst [vmem:[%s835_s3 + $0x40] sm:$0xff] %v164_v39  ;;  %v168_v53 = vadd.f32 %v321_v2, %v97_v40  ;;  %v169_v54 = vadd.f32 %v321_v2, %v98_v41  ;;  %v170_v55 = vadd.f32 %v321_v2, %v99_v42  ;;  %v38_v62 = vld [vmem:[%s832_s0 + $0xc0] sm:$0xff]  ;;  %v39_v5 = vld [vmem:[%s832_s0 + $0xc8] sm:$0xff]  ;;  %v40_v6 = vld [vmem:[%s832_s0 + $0xd0] sm:$0xff] }
   0xc   :  { %v101_v56 = vmul.f32 %v316_v1, %v30_v38  ;;  %229 = vst [vmem:[%s835_s3 + $0x48] sm:$0xff] %v165_v46  ;;  %230 = vst [vmem:[%s835_s3 + $0x50] sm:$0xff] %v166_v47  ;;  %v102_v59 = vmul.f32 %v316_v1, %v31_v43  ;;  %v103_v60 = vmul.f32 %v316_v1, %v32_v44  ;;  %v41_v7 = vld [vmem:[%s832_s0 + $0xd8] sm:$0xff]  ;;  %v42_v12 = vld [vmem:[%s832_s0 + $0xe0] sm:$0xff] }
   0xd   :  { %231 = vst [vmem:[%s835_s3 + $0x58] sm:$0xff] %v167_v48  ;;  %v171_v58 = vadd.f32 %v321_v2, %v100_v49  ;;  %v104_v61 = vmul.f32 %v316_v1, %v33_v45  ;;  %232 = vst [vmem:[%s835_s3 + $0x60] sm:$0xff] %v168_v53  ;;  %v105_v0 = vmul.f32 %v316_v1, %v34_v50  ;;  %v43_v13 = vld [vmem:[%s832_s0 + $0xe8] sm:$0xff]  ;;  %v44_v14 = vld [vmem:[%s832_s0 + $0xf0] sm:$0xff] }
   0xe   :  { %233 = vst [vmem:[%s835_s3 + $0x68] sm:$0xff] %v169_v54  ;;  %234 = vst [vmem:[%s835_s3 + $0x70] sm:$0xff] %v170_v55  ;;  %v172_v63 = vadd.f32 %v321_v2, %v101_v56  ;;  %v106_v3 = vmul.f32 %v316_v1, %v35_v51  ;;  %v107_v4 = vmul.f32 %v316_v1, %v36_v52  ;;  %v45_v19 = vld [vmem:[%s832_s0 + $0xf8] sm:$0xff]  ;;  %v46_v24 = vld [vmem:[%s832_s0 + $0x100] sm:$0xff] }
   0xf   :  { %235 = vst [vmem:[%s835_s3 + $0x78] sm:$0xff] %v171_v58  ;;  %v173_v8 = vadd.f32 %v321_v2, %v102_v59  ;;  %v174_v9 = vadd.f32 %v321_v2, %v103_v60  ;;  %v175_v10 = vadd.f32 %v321_v2, %v104_v61  ;;  %v108_v11 = vmul.f32 %v316_v1, %v37_v57  ;;  %v47_v29 = vld [vmem:[%s832_s0 + $0x108] sm:$0xff]  ;;  %v48_v30 = vld [vmem:[%s832_s0 + $0x110] sm:$0xff]  ;;  %v49_v31 = vld [vmem:[%s832_s0 + $0x118] sm:$0xff] }
  0x10   :  { %236 = vst [vmem:[%s835_s3 + $0x80] sm:$0xff] %v172_v63  ;;  %v176_v15 = vadd.f32 %v321_v2, %v105_v0  ;;  %v177_v16 = vadd.f32 %v321_v2, %v106_v3  ;;  %v178_v17 = vadd.f32 %v321_v2, %v107_v4  ;;  %v109_v18 = vmul.f32 %v316_v1, %v38_v62  ;;  %v50_v36 = vld [vmem:[%s832_s0 + $0x120] sm:$0xff]  ;;  %v51_v37 = vld [vmem:[%s832_s0 + $0x128] sm:$0xff]  ;;  %v52_v38 = vld [vmem:[%s832_s0 + $0x130] sm:$0xff] }
  0x11   :  { %237 = vst [vmem:[%s835_s3 + $0x88] sm:$0xff] %v173_v8  ;;  %238 = vst [vmem:[%s835_s3 + $0x90] sm:$0xff] %v174_v9  ;;  %v179_v20 = vadd.f32 %v321_v2, %v108_v11  ;;  %v110_v21 = vmul.f32 %v316_v1, %v39_v5  ;;  %v111_v22 = vmul.f32 %v316_v1, %v40_v6  ;;  %v53_v43 = vld [vmem:[%s832_s0 + $0x138] sm:$0xff]  ;;  %v54_v48 = vld [vmem:[%s832_s0 + $0x140] sm:$0xff] }
  0x12   :  { %239 = vst [vmem:[%s835_s3 + $0x98] sm:$0xff] %v175_v10  ;;  %v112_v23 = vmul.f32 %v316_v1, %v41_v7  ;;  %240 = vst [vmem:[%s835_s3 + $0xa0] sm:$0xff] %v176_v15  ;;  %v180_v25 = vadd.f32 %v321_v2, %v109_v18  ;;  %v113_v26 = vmul.f32 %v316_v1, %v42_v12  ;;  %v55_v53 = vld [vmem:[%s832_s0 + $0x148] sm:$0xff]  ;;  %v56_v54 = vld [vmem:[%s832_s0 + $0x150] sm:$0xff] }
  0x13   :  { %241 = vst [vmem:[%s835_s3 + $0xa8] sm:$0xff] %v177_v16  ;;  %242 = vst [vmem:[%s835_s3 + $0xb0] sm:$0xff] %v178_v17  ;;  %v114_v27 = vmul.f32 %v316_v1, %v43_v13  ;;  %v115_v28 = vmul.f32 %v316_v1, %v44_v14  ;;  %v181_v32 = vadd.f32 %v321_v2, %v110_v21  ;;  %v57_v55 = vld [vmem:[%s832_s0 + $0x158] sm:$0xff]  ;;  %v58_v60 = vld [vmem:[%s832_s0 + $0x160] sm:$0xff] }
  0x14   :  { %243 = vst [vmem:[%s835_s3 + $0xb8] sm:$0xff] %v179_v20  ;;  %v182_v33 = vadd.f32 %v321_v2, %v111_v22  ;;  %v183_v34 = vadd.f32 %v321_v2, %v112_v23  ;;  %v116_v35 = vmul.f32 %v316_v1, %v45_v19  ;;  %244 = vst [vmem:[%s835_s3 + $0xc0] sm:$0xff] %v180_v25  ;;  %v59_v61 = vld [vmem:[%s832_s0 + $0x168] sm:$0xff]  ;;  %v60_v62 = vld [vmem:[%s832_s0 + $0x170] sm:$0xff] }
  0x15   :  { %v184_v39 = vadd.f32 %v321_v2, %v113_v26  ;;  %v185_v40 = vadd.f32 %v321_v2, %v114_v27  ;;  %v186_v41 = vadd.f32 %v321_v2, %v115_v28  ;;  %v117_v42 = vmul.f32 %v316_v1, %v46_v24  ;;  %245 = vst [vmem:[%s835_s3 + $0xc8] sm:$0xff] %v181_v32  ;;  %v61_v5 = vld [vmem:[%s832_s0 + $0x178] sm:$0xff]  ;;  %v62_v10 = vld [vmem:[%s832_s0 + $0x180] sm:$0xff]  ;;  %v63_v15 = vld [vmem:[%s832_s0 + $0x188] sm:$0xff] }
  0x16   :  { %246 = vst [vmem:[%s835_s3 + $0xd0] sm:$0xff] %v182_v33  ;;  %247 = vst [vmem:[%s835_s3 + $0xd8] sm:$0xff] %v183_v34  ;;  %v187_v44 = vadd.f32 %v321_v2, %v116_v35  ;;  %v118_v45 = vmul.f32 %v316_v1, %v47_v29  ;;  %v119_v46 = vmul.f32 %v316_v1, %v48_v30  ;;  %v64_v16 = vld [vmem:[%s832_s0 + $0x190] sm:$0xff]  ;;  %v65_v17 = vld [vmem:[%s832_s0 + $0x198] sm:$0xff] }
  0x17   :  { %v120_v47 = vmul.f32 %v316_v1, %v49_v31  ;;  %248 = vst [vmem:[%s835_s3 + $0xe0] sm:$0xff] %v184_v39  ;;  %249 = vst [vmem:[%s835_s3 + $0xe8] sm:$0xff] %v185_v40  ;;  %v188_v49 = vadd.f32 %v321_v2, %v117_v42  ;;  %v121_v50 = vmul.f32 %v316_v1, %v50_v36  ;;  %v66_v22 = vld [vmem:[%s832_s0 + $0x1a0] sm:$0xff]  ;;  %v67_v23 = vld [vmem:[%s832_s0 + $0x1a8] sm:$0xff] }
  0x18   :  { %250 = vst [vmem:[%s835_s3 + $0xf0] sm:$0xff] %v186_v41  ;;  %v122_v51 = vmul.f32 %v316_v1, %v51_v37  ;;  %v123_v52 = vmul.f32 %v316_v1, %v52_v38  ;;  %251 = vst [vmem:[%s835_s3 + $0xf8] sm:$0xff] %v187_v44  ;;  %v189_v56 = vadd.f32 %v321_v2, %v118_v45  ;;  %v68_v24 = vld [vmem:[%s832_s0 + $0x1b0] sm:$0xff]  ;;  %v69_v29 = vld [vmem:[%s832_s0 + $0x1b8] sm:$0xff] }
  0x19   :  { %v190_v57 = vadd.f32 %v321_v2, %v119_v46  ;;  %v191_v58 = vadd.f32 %v321_v2, %v120_v47  ;;  %v124_v59 = vmul.f32 %v316_v1, %v53_v43  ;;  %252 = vst [vmem:[%s835_s3 + $0x100] sm:$0xff] %v188_v49  ;;  %v192_v63 = vadd.f32 %v321_v2, %v121_v50  ;;  %v70_v34 = vld [vmem:[%s832_s0 + $0x1c0] sm:$0xff]  ;;  %v71_v39 = vld [vmem:[%s832_s0 + $0x1c8] sm:$0xff]  ;;  %v72_v40 = vld [vmem:[%s832_s0 + $0x1d0] sm:$0xff] }
  0x1a   :  { %v193_v0 = vadd.f32 %v321_v2, %v122_v51  ;;  %v194_v3 = vadd.f32 %v321_v2, %v123_v52  ;;  %v125_v4 = vmul.f32 %v316_v1, %v54_v48  ;;  %253 = vst [vmem:[%s835_s3 + $0x108] sm:$0xff] %v189_v56  ;;  %v126_v7 = vmul.f32 %v316_v1, %v55_v53  ;;  %v73_v41 = vld [vmem:[%s832_s0 + $0x1d8] sm:$0xff]  ;;  %v74_v46 = vld [vmem:[%s832_s0 + $0x1e0] sm:$0xff]  ;;  %v75_v47 = vld [vmem:[%s832_s0 + $0x1e8] sm:$0xff] }
  0x1b   :  { %254 = vst [vmem:[%s835_s3 + $0x110] sm:$0xff] %v190_v57  ;;  %255 = vst [vmem:[%s835_s3 + $0x118] sm:$0xff] %v191_v58  ;;  %v195_v6 = vadd.f32 %v321_v2, %v124_v59  ;;  %v127_v8 = vmul.f32 %v316_v1, %v56_v54  ;;  %v128_v9 = vmul.f32 %v316_v1, %v57_v55  ;;  %v76_v48 = vld [vmem:[%s832_s0 + $0x1f0] sm:$0xff]  ;;  %v77_v53 = vld [vmem:[%s832_s0 + $0x1f8] sm:$0xff] }
  0x1c   :  { %256 = vst [vmem:[%s835_s3 + $0x120] sm:$0xff] %v192_v63  ;;  %257 = vst [vmem:[%s835_s3 + $0x128] sm:$0xff] %v193_v0  ;;  %v196_v11 = vadd.f32 %v321_v2, %v125_v4  ;;  %v129_v12 = vmul.f32 %v316_v1, %v58_v60  ;;  %v130_v13 = vmul.f32 %v316_v1, %v59_v61 }
  0x1d   :  { %258 = vst [vmem:[%s835_s3 + $0x130] sm:$0xff] %v194_v3  ;;  %v131_v14 = vmul.f32 %v316_v1, %v60_v62  ;;  %259 = vst [vmem:[%s835_s3 + $0x138] sm:$0xff] %v195_v6  ;;  %v197_v18 = vadd.f32 %v321_v2, %v126_v7  ;;  %v198_v19 = vadd.f32 %v321_v2, %v127_v8 }
  0x1e   :  { %v199_v20 = vadd.f32 %v321_v2, %v128_v9  ;;  %v132_v21 = vmul.f32 %v316_v1, %v61_v5  ;;  %260 = vst [vmem:[%s835_s3 + $0x140] sm:$0xff] %v196_v11  ;;  %v200_v25 = vadd.f32 %v321_v2, %v129_v12  ;;  %v201_v26 = vadd.f32 %v321_v2, %v130_v13 }
  0x1f   :  { %v202_v27 = vadd.f32 %v321_v2, %v131_v14  ;;  %v133_v28 = vmul.f32 %v316_v1, %v62_v10  ;;  %261 = vst [vmem:[%s835_s3 + $0x148] sm:$0xff] %v197_v18  ;;  %262 = vst [vmem:[%s835_s3 + $0x150] sm:$0xff] %v198_v19  ;;  %v134_v31 = vmul.f32 %v316_v1, %v63_v15 }
  0x20   :  { %263 = vst [vmem:[%s835_s3 + $0x158] sm:$0xff] %v199_v20  ;;  %v203_v30 = vadd.f32 %v321_v2, %v132_v21  ;;  %v135_v32 = vmul.f32 %v316_v1, %v64_v16  ;;  %v136_v33 = vmul.f32 %v316_v1, %v65_v17  ;;  %264 = vst [vmem:[%s835_s3 + $0x160] sm:$0xff] %v200_v25 }
  0x21   :  { %265 = vst [vmem:[%s835_s3 + $0x168] sm:$0xff] %v201_v26  ;;  %266 = vst [vmem:[%s835_s3 + $0x170] sm:$0xff] %v202_v27  ;;  %v204_v35 = vadd.f32 %v321_v2, %v133_v28  ;;  %v137_v36 = vmul.f32 %v316_v1, %v66_v22  ;;  %v138_v37 = vmul.f32 %v316_v1, %v67_v23 }
  0x22   :  { %v139_v38 = vmul.f32 %v316_v1, %v68_v24  ;;  %267 = vst [vmem:[%s835_s3 + $0x178] sm:$0xff] %v203_v30  ;;  %v205_v42 = vadd.f32 %v321_v2, %v134_v31  ;;  %v206_v43 = vadd.f32 %v321_v2, %v135_v32  ;;  %v207_v44 = vadd.f32 %v321_v2, %v136_v33 }
  0x23   :  { %v140_v45 = vmul.f32 %v316_v1, %v69_v29  ;;  %268 = vst [vmem:[%s835_s3 + $0x180] sm:$0xff] %v204_v35  ;;  %v208_v49 = vadd.f32 %v321_v2, %v137_v36  ;;  %v209_v50 = vadd.f32 %v321_v2, %v138_v37  ;;  %v141_v52 = vmul.f32 %v316_v1, %v70_v34 }
  0x24   :  { %v210_v51 = vadd.f32 %v321_v2, %v139_v38  ;;  %269 = vst [vmem:[%s835_s3 + $0x188] sm:$0xff] %v205_v42  ;;  %270 = vst [vmem:[%s835_s3 + $0x190] sm:$0xff] %v206_v43  ;;  %v142_v55 = vmul.f32 %v316_v1, %v71_v39  ;;  %v143_v56 = vmul.f32 %v316_v1, %v72_v40 }
  0x25   :  { %271 = vst [vmem:[%s835_s3 + $0x198] sm:$0xff] %v207_v44  ;;  %v211_v54 = vadd.f32 %v321_v2, %v140_v45  ;;  %v144_v57 = vmul.f32 %v316_v1, %v73_v41  ;;  %272 = vst [vmem:[%s835_s3 + $0x1a0] sm:$0xff] %v208_v49  ;;  %v212_v58 = vadd.f32 %v321_v2, %v141_v52 }
  0x26   :  { %273 = vst [vmem:[%s835_s3 + $0x1a8] sm:$0xff] %v209_v50  ;;  %274 = vst [vmem:[%s835_s3 + $0x1b0] sm:$0xff] %v210_v51  ;;  %v145_v59 = vmul.f32 %v316_v1, %v74_v46  ;;  %v146_v60 = vmul.f32 %v316_v1, %v75_v47  ;;  %v147_v61 = vmul.f32 %v316_v1, %v76_v48 }
  0x27   :  { %275 = vst [vmem:[%s835_s3 + $0x1b8] sm:$0xff] %v211_v54  ;;  %v213_v62 = vadd.f32 %v321_v2, %v142_v55  ;;  %v214_v63 = vadd.f32 %v321_v2, %v143_v56  ;;  %v215_v0 = vadd.f32 %v321_v2, %v144_v57  ;;  %v148_v3 = vmul.f32 %v316_v1, %v77_v53 }
  0x28   :  { %276 = vst [vmem:[%s835_s3 + $0x1c0] sm:$0xff] %v212_v58  ;;  %v216_v4 = vadd.f32 %v321_v2, %v145_v59  ;;  %v217_v5 = vadd.f32 %v321_v2, %v146_v60  ;;  %v218_v6 = vadd.f32 %v321_v2, %v147_v61 }
  0x29   :  { %277 = vst [vmem:[%s835_s3 + $0x1c8] sm:$0xff] %v213_v62  ;;  %278 = vst [vmem:[%s835_s3 + $0x1d0] sm:$0xff] %v214_v63  ;;  %v219_v1 = vadd.f32 %v321_v2, %v148_v3 }
  0x2a   :  { %279 = vst [vmem:[%s835_s3 + $0x1d8] sm:$0xff] %v215_v0  ;;  %280 = vst [vmem:[%s835_s3 + $0x1e0] sm:$0xff] %v216_v4 }
  0x2b   :  { %281 = vst [vmem:[%s835_s3 + $0x1e8] sm:$0xff] %v217_v5  ;;  %282 = vst [vmem:[%s835_s3 + $0x1f0] sm:$0xff] %v218_v6 }
  0x2c   :  { %283 = vst [vmem:[%s835_s3 + $0x1f8] sm:$0xff] %v219_v1 }

// kernel: conv_bn_forward.2
= control target key start
LH: loop header
LB: loop body
LE: loop exit
PB: predicated region body
PF: predicated region fallthrough
CT: control target
= control target key end

     0   :  { %s11383_s12 = smov 0   ;;  %s11385_s13 = smov 0   ;;  %s12734_s0 = inlined_call_operand.vmem [shape: bf16[2,18,18,4], index: 0, kind: input, shape index: {}]   ;;  %s12735_s1 = inlined_call_operand.vmem [shape: bf16[3,3,4,128], index: 1, kind: input, shape index: {}]   ;;  %s12736_s2 = inlined_call_operand.vmem [shape: f32[512,128], index: 2, kind: output, shape index: {0}]   ;;  %s12737_s3 = inlined_call_operand.vmem [shape: f32[2,2,128], index: 3, kind: output, shape index: {1}]  }
   0x1   :  { %s11387_s14 = smov 0  }
   0x2 LB: > { %s26_s15 = sadd.s32 1, %s11355_s13  ;;  %p8883_p0 = scmp.ge.s32.totalorder %s11359_s14, 1  ;;  %s11359_s14 = sphi %s11387_s14, %s14_s14   ;;  %s11355_s13 = sphi %s11385_s13, %s12739_s13   ;;  %s11351_s12 = sphi %s11383_s12, %s12738_s12  }
   0x3   : > { %p28_p1 = scmp.ge.s32.totalorder %s26_s15, 2  ;;  %p156_p2 = scmp.lt.s32.totalorder %s11359_s14, 3 }
   0x5   : > { %s12741_s15 = smov (%p28_p1, %s26_s15), 0  ;;  %p157_p3 = pnand %p8883_p0, %p156_p2 }
   0x6   : > { %v8888_v0 = vld [vmem:[%s12735_s1 + $0x2] sm:$0x3] (!%p157_p3)  ;;  %vm255_vm0 = vcmask (!%p157_p3), 1041408   ;;  %p186_p4 = scmp.lt.s32.totalorder (!%p157_p3), %s11351_s12, 1  ;;  %v11361_v1 = vmov (!%p157_p3), 0.0   ;;  %vm11362_vm1 = vmmov (!%p157_p3), 0  }
   0x7   : > { %160 = sbr.rel (%p157_p3) target bundleno = 1089 (0x441), region = 28  ;;  %9758 = vmatprep.subr.bf16.mxu0 (!%p157_p3), %v11361_v1  ;;  %v11409_v2 = vsel (!%p157_p3), %vm255_vm0, %v8888_v0, 0  ;;  %9812 = vmatprep.subr.bf16.mxu1 (!%p157_p3), %v11361_v1  ;;  %v207_v14 = vld [vmem:[%s12735_s1] sm:$0x3] (!%p157_p3)  ;;  %vm238_vm2 = vsmask.f32 (!%p157_p3), 7424 }
   0x8   : > { %9759 = vmatpush3.bf16.msra.mxu0 (!%p157_p3), %v11409_v2  ;;  %9813 = vmatpush3.bf16.msra.mxu1 (!%p157_p3), %v11409_v2  ;;  %vm251_vm3 = vcmask (!%p157_p3), 31744   ;;  %v11439_v22 = vsel (!%p157_p3), %vm255_vm0, %v207_v14, 0  ;;  %v8889_v27 = vld [vmem:[%s12735_s1 + $0x4] sm:$0x3] (!%p157_p3)  ;;  %vm350_vm4 = vcmask (!%p157_p3), 1046528   ;;  %s8885_s16 = sshll.u32 (!%p157_p3), %s11351_s12, 5 }
   0x9   : > { %9760 = vmatprep.mubr.msk.bf16.mxu0 (!%p157_p3), %vm11362_vm1, %v11361_v1  ;;  %9764 = vmatprep.subr.bf16.mxu0 (!%p157_p3), %v11361_v1  ;;  %v11457_v28 = vsel (!%p157_p3), %vm255_vm0, %v8889_v27, 0  ;;  %v8890_v35 = vld [vmem:[%s12735_s1 + $0x6] sm:$0x3] (!%p157_p3)  ;;  %v8891_v44 = vld [vmem:[%s12735_s1 + $0x8] sm:$0x3] (!%p157_p3)  ;;  %p193_p5 = scmp.lt.s32.totalorder (!%p157_p3), %s8885_s16, 63 }
   0xa   : > { %9814 = vmatprep.mubr.msk.bf16.mxu1 (!%p157_p3), %vm11362_vm1, %v11361_v1  ;;  %9818 = vmatprep.subr.bf16.mxu1 (!%p157_p3), %v11361_v1  ;;  %v11478_v41 = vsel (!%p157_p3), %vm255_vm0, %v8890_v35, 0  ;;  %v8892_v46 = vld [vmem:[%s12735_s1 + $0xa] sm:$0x3] (!%p157_p3)  ;;  %v11500_v50 = vsel (!%p157_p3), %vm255_vm0, %v8891_v44, 0  ;;  %v8895_v44 = vld [vmem:[%s12735_s1 + $0x10] sm:$0x3] (!%p157_p3) }
   0xb   : > { %v11505_v53 = vsel (!%p157_p3), %vm255_vm0, %v8892_v46, 0  ;;  %vm8704_vm5 = vcmask (!%p157_p3), 1040384  }
   0xe   : > { %s11415_s18 = scalar_select %p186_p4, %s11351_s12, 1 }
   0xf   : > { %s12743_s16 = smov (!%p193_p5, %s8885_s16), 63 }
  0x10   : > { %s11134_s19 = smul.u32 216, %s11415_s18  ;;  %s8886_s12 = sshll.u32 %s12743_s16, 3 }
  0x11   : > { %s11905_s20 = scalar_lea.vmem %s12736_s2, %s8886_s12  ;;  %s8887_s21 = sshll.u32 %s11415_s18, 1 }
  0x12   : > { %s11427_s22 = scalar_lea.vmem %s12734_s0, %s11134_s19  ;;  %s203_s24 = scalar_lea.vmem %s12737_s3, %s8887_s21 }
  0x13   : > { %v227_v3 = vld [vmem:[%s11427_s22] sm:$0xf]  ;;  %v228_v4 = vld [vmem:[%s11427_s22 + $0x4] sm:$0xf]  ;;  %v8928_v7 = vld [vmem:[%s11427_s22 + $0xc] sm:$0xf] }
  0x14   : > { %v8896_v5 = vcombine.low %v227_v3, %v228_v4  ;;  %v11162_v6 = vld [vmem:[%s11427_s22 + $0x8] ss:$0 sps:$4 sm:$0x11]   ;;  %v8929_v8 = vld [vmem:[%s11427_s22 + $0x10] sm:$0xf]  ;;  %v11168_v58 = vld [vmem:[%s11427_s22 + $0x18] sm:$0xff]  }
  0x15   : > { %v247_v11 = vshll.u32 %v11162_v6, 16  ;;  %v8931_v12 = vcombine.low %v8928_v7, %v8929_v8  ;;  %v11164_v13 = vld [vmem:[%s11427_s22 + $0x14] ss:$0 sps:$4 sm:$0x11]   ;;  %v346_v29 = vld [vmem:[%s11427_s22] sm:$0xe] }
  0x16   : > { %v240_v9 = vshrl.u32 %v8896_v5, 16  ;;  %v242_v10 = vshll.u32 %v8896_v5, 16  ;;  %v800_v19 = vshll.u32 %v11164_v13, 16  ;;  %v8935_v30 = vld [vmem:[%s11427_s22 + $0xc] sm:$0xe]  ;;  %v8900_v31 = vcombine.low %v346_v29, %v228_v4  ;;  %v11175_v27 = vld [vmem:[%s11427_s22 + $0x18] sm:$0xff]  }
  0x17   : > { %v249_v16 = vrot.slane %v247_v11, 1  ;;  %v793_v17 = vshrl.u32 %v8931_v12, 16  ;;  %v795_v18 = vshll.u32 %v8931_v12, 16  ;;  %v8936_v32 = vcombine.low %v8935_v30, %v8929_v8  ;;  %v8906_v36 = vld [vmem:[%s11427_s22 + $0xc] sm:$0xf] }
  0x18   : > { %v244_v15 = vrot.slane %v242_v10, 1  ;;  %v802_v23 = vrot.slane %v800_v19, 1  ;;  %v351_v33 = vrot.slane %v8900_v31, 1  ;;  %v352_v34 = vrot.slane %v11162_v6, 1  ;;  %v8907_v39 = vld [vmem:[%s11427_s22 + $0x10] sm:$0xf] }
  0x19   : > { %v797_v21 = vrot.slane %v795_v18, 1  ;;  %v895_v37 = vrot.slane %v8936_v32, 1  ;;  %v896_v38 = vrot.slane %v11164_v13, 1  ;;  %v8909_v42 = vcombine.low %v8906_v36, %v8907_v39  ;;  %v11170_v45 = vld [vmem:[%s11427_s22 + $0x14] ss:$0 sps:$4 sm:$0x11]  }
  0x1a   : > { %v245_v20 = vor.u32 %v244_v15, %v240_v9  ;;  %v353_v40 = vsel %vm350_vm4, %v351_v33, %v352_v34  ;;  %v8942_v48 = vld [vmem:[%s11427_s22 + $0x18] sm:$0xf]  ;;  %v8943_v49 = vld [vmem:[%s11427_s22 + $0x1c] sm:$0xf]  ;;  %v482_v52 = vshll.u32 %v11170_v45, 16  ;;  %v11167_v54 = vld [vmem:[%s11427_s22 + $0xc] sm:$0xff]  }
  0x1b   : > { %v798_v25 = vor.u32 %v797_v21, %v793_v17  ;;  %v897_v43 = vsel %vm350_vm4, %v895_v37, %v896_v38  ;;  %v477_v47 = vshll.u32 %v8909_v42, 16  ;;  %v11172_v51 = vld [vmem:[%s11427_s22 + $0x20] ss:$0 sps:$4 sm:$0x11]   ;;  %v475_v55 = vshrl.u32 %v8909_v42, 16  ;;  %v11176_v32 = vld [vmem:[%s11427_s22 + $0x24] sm:$0xff]  }
  0x1c   : > { %v250_v24 = vsel %vm238_vm2, %v245_v20, %v249_v16  ;;  %v8945_v57 = vcombine.low %v8942_v48, %v8943_v49  ;;  %v484_v59 = vrot.slane %v482_v52, 1  ;;  %v1016_v60 = vshll.u32 %v11172_v51, 16  ;;  %v8948_v8 = vld [vmem:[%s11427_s22 + $0x18] sm:$0xe]  ;;  %v8893_v13 = vld [vmem:[%s12735_s1 + $0xc] sm:$0x3] }
  0x1d   : > { %9761 = vmatmul.mubr.msk.bf16.vlgmr.msra.gmra.mrb[0].mxu0 %vm251_vm3, %v250_v24  ;;  %v803_v26 = vsel %vm238_vm2, %v798_v25, %v802_v23  ;;  %v479_v56 = vrot.slane %v477_v47, 1  ;;  %v8949_v10 = vcombine.low %v8948_v8, %v8943_v49  ;;  %v1071_v15 = vrot.slane %v11172_v51, 1  ;;  %v8919_v19 = vld [vmem:[%s11427_s22 + $0x18] sm:$0xf]  ;;  %v8920_v20 = vld [vmem:[%s11427_s22 + $0x1c] sm:$0xf] }
  0x1e   : > { %9765 = vmatpush3.bf16.msra.mxu0 %v11439_v22  ;;  %9766 = vmatprep.mubr.msk.bf16.mxu0 %vm11362_vm1, %v11361_v1  ;;  %v1009_v61 = vshrl.u32 %v8945_v57, 16  ;;  %v1011_v62 = vshll.u32 %v8945_v57, 16  ;;  %v1018_v0 = vrot.slane %v1016_v60, 1  ;;  %v11538_v17 = vsel %vm255_vm0, %v8893_v13, 0  ;;  %v8955_v21 = vld [vmem:[%s11427_s22 + $0x24] sm:$0xf] }
  0x1f   : > { %9815 = vmatmul.mubr.msk.bf16.vlgmr.msra.gmra.mrb[0].mxu1 %vm251_vm3, %v803_v26  ;;  %9770 = vmatprep.subr.bf16.mxu0 %v11361_v1  ;;  %v480_v3 = vor.u32 %v479_v56, %v475_v55  ;;  %v1070_v14 = vrot.slane %v8949_v10, 1  ;;  %v8956_v23 = vld [vmem:[%s11427_s22 + $0x28] sm:$0xf]  ;;  %v8922_v24 = vcombine.low %v8919_v19, %v8920_v20  ;;  %v8894_v25 = vld [vmem:[%s12735_s1 + $0xe] sm:$0x3]  ;;  %v11580_v48 = vsel %vm255_vm0, %v8895_v44, 0 }
  0x20   : > { %9819 = vmatpush3.bf16.msra.mxu1 %v11439_v22  ;;  %9820 = vmatprep.mubr.msk.bf16.mxu1 %vm11362_vm1, %v11361_v1  ;;  %v1013_v63 = vrot.slane %v1011_v62, 1  ;;  %v8958_v26 = vcombine.low %v8955_v21, %v8956_v23  ;;  %v11178_v29 = vld [vmem:[%s11427_s22 + $0x20] ss:$0 sps:$4 sm:$0x11]   ;;  %v11561_v31 = vsel %vm255_vm0, %v8894_v25, 0 }
  0x21   : > { %9824 = vmatprep.subr.bf16.mxu1 %v11361_v1  ;;  %v485_v6 = vsel %vm238_vm2, %v480_v3, %v484_v59  ;;  %v1072_v18 = vsel %vm350_vm4, %v1070_v14, %v1071_v15  ;;  %v665_v30 = vshll.u32 %v8922_v24, 16  ;;  %v11180_v33 = vld [vmem:[%s11427_s22 + $0x2c] ss:$0 sps:$4 sm:$0x11]   ;;  %v663_v35 = vshrl.u32 %v8922_v24, 16 }
  0x22   : > { %v1014_v4 = vor.u32 %v1013_v63, %v1009_v61  ;;  %v1190_v34 = vshll.u32 %v8958_v26, 16  ;;  %v670_v37 = vshll.u32 %v11178_v29, 16  ;;  %v1188_v38 = vshrl.u32 %v8958_v26, 16  ;;  %v8925_v49 = vld [vmem:[%s11427_s22 + $0x18] sm:$0xe] }
  0x23   : > { %v667_v36 = vrot.slane %v665_v30, 1  ;;  %v8964_v51 = vld [vmem:[%s11427_s22 + $0x18] sm:$0xf]  ;;  %v11585_v52 = vld [vmem:[%s11427_s22 + $0x1c] sm:$0xf]  ;;  %v728_v63 = vrot.slane %v11178_v29, 1 }
  0x24   : > { %v1019_v7 = vsel %vm238_vm2, %v1014_v4, %v1018_v0  ;;  %v8961_v55 = vld [vmem:[%s11427_s22 + $0x24] sm:$0xe]  ;;  %v11592_v57 = vld [vmem:[%s11427_s22 + $0x28] sm:$0xf]  ;;  %v8967_v59 = vcombine.low %v8964_v51, %v11585_v52  ;;  %v8971_v24 = vld [vmem:[%s11427_s22 + $0x18] sm:$0xe] }
  0x25   : > { %v668_v42 = vor.u32 %v667_v36, %v663_v35  ;;  %v9000_v56 = vld [vmem:[%s11427_s22 + $0x24] sm:$0xf]  ;;  %v8962_v60 = vcombine.low %v8961_v55, %v8956_v23  ;;  %v11184_v0 = vld [vmem:[%s11427_s22 + $0x20] ss:$0 sps:$4 sm:$0x11]   ;;  %v8972_v26 = vcombine.low %v8971_v24, %v11585_v52 }
  0x26   : > { %v9003_v61 = vcombine.low %v9000_v56, %v11592_v57  ;;  %v1314_v3 = vshll.u32 %v8967_v59, 16  ;;  %v9007_v25 = vld [vmem:[%s11427_s22 + $0x24] sm:$0xe]  ;;  %v1415_v30 = vrot.slane %v11184_v0, 1 }
  0x27   : > { %v1249_v4 = vrot.slane %v8962_v60, 1  ;;  %v1414_v29 = vrot.slane %v8972_v26, 1  ;;  %v8978_v36 = vld [vmem:[%s11427_s22 + $0x24] sm:$0xf] }
  0x28   : > { %v1316_v10 = vrot.slane %v1314_v3, 1  ;;  %v1831_v13 = vshrl.u32 %v9003_v61, 16  ;;  %v11192_v44 = vld [vmem:[%s11427_s22 + $0x2c] ss:$0 sps:$4 sm:$0x11]  }
  0x29   : > { %9767 = vmatmul.mubr.msk.bf16.vlgmr.msra.gmra.mrb[0].mxu0 %vm251_vm3, %v8896_v5  ;;  %v8912_v5 = vld [vmem:[%s11427_s22 + $0xc] sm:$0xe]  ;;  %v9020_v3 = vld [vmem:[%s11427_s22 + $0x30] sm:$0xe] }
  0x2a   : > { %9771 = vmatpush3.bf16.msra.mxu0 %v11457_v28  ;;  %9772 = vmatprep.mubr.msk.bf16.mxu0 %vm11362_vm1, %v11361_v1  ;;  %v8913_v9 = vcombine.low %v8912_v5, %v8907_v39  ;;  %v1192_v39 = vrot.slane %v1190_v34, 1  ;;  %v1250_v5 = vrot.slane %v11180_v33, 1  ;;  %v1416_v34 = vsel %vm350_vm4, %v1414_v29, %v1415_v30  ;;  %v11202_v24 = vld [vmem:[%s11427_s22 + $0x44] ss:$0 sps:$4 sm:$0x11]  }
  0x2b   : > { %9821 = vmatmul.mubr.msk.bf16.vlgmr.msra.gmra.mrb[0].mxu1 %vm251_vm3, %v8931_v12  ;;  %9776 = vmatprep.subr.bf16.mxu0 %v11361_v1  ;;  %v540_v12 = vrot.slane %v11170_v45, 1 }
  0x2c   : > { %9825 = vmatpush3.bf16.msra.mxu1 %v11457_v28  ;;  %9826 = vmatprep.mubr.msk.bf16.mxu1 %vm11362_vm1, %v11361_v1  ;;  %v539_v11 = vrot.slane %v8913_v9, 1  ;;  %v1193_v45 = vor.u32 %v1192_v39, %v1188_v38  ;;  %v1312_v9 = vshrl.u32 %v8967_v59, 16  ;;  %v9014_v38 = vld [vmem:[%s11427_s22 + $0x30] sm:$0xf]  ;;  %v9015_v39 = vld [vmem:[%s11427_s22 + $0x34] sm:$0xf] }
  0x2d   : > { %9830 = vmatprep.subr.bf16.mxu1 %v11361_v1 }
  0x2e   : > { %v541_v16 = vsel %vm350_vm4, %v539_v11, %v540_v12  ;;  %v1319_v11 = vshll.u32 %v11184_v0, 16  ;;  %v1251_v12 = vsel %vm350_vm4, %v1249_v4, %v1250_v5  ;;  %v9021_v5 = vcombine.low %v9020_v3, %v9015_v39 }
  0x35   : > { %9773 = vmatmul.mubr.msk.bf16.vlgmr.msra.gmra.mrb[0].mxu0 %vm251_vm3, %v353_v40  ;;  %v1195_v40 = vshll.u32 %v11180_v33, 16 }
  0x36   : > { %9777 = vmatpush3.bf16.msra.mxu0 %v11478_v41  ;;  %9778 = vmatprep.mubr.msk.bf16.mxu0 %vm11362_vm1, %v11361_v1 }
  0x37   : > { %9827 = vmatmul.mubr.msk.bf16.vlgmr.msra.gmra.mrb[0].mxu1 %vm251_vm3, %v897_v43  ;;  %9782 = vmatprep.subr.bf16.mxu0 %v11361_v1  ;;  %v672_v43 = vrot.slane %v670_v37, 1  ;;  %v1197_v46 = vrot.slane %v1195_v40, 1  ;;  %v8979_v37 = vld [vmem:[%s11427_s22 + $0x28] sm:$0xf] }
  0x38   : > { %9831 = vmatpush3.bf16.msra.mxu1 %v11478_v41  ;;  %9832 = vmatprep.mubr.msk.bf16.mxu1 %vm11362_vm1, %v11361_v1  ;;  %v8981_v40 = vcombine.low %v8978_v36, %v8979_v37 }
  0x39   : > { %9836 = vmatprep.subr.bf16.mxu1 %v11361_v1  ;;  %v673_v47 = vsel %vm238_vm2, %v668_v42, %v672_v43  ;;  %v9017_v42 = vcombine.low %v9014_v38, %v9015_v39  ;;  %v11189_v43 = vld [vmem:[%s11427_s22 + $0x24] sm:$0xff]   ;;  %v8997_v39 = vld [vmem:[%s11427_s22 + $0x30] sm:$0xe] }
  0x3a   : > { %v1528_v51 = vshrl.u32 %v8981_v40, 16 }
  0x3b   : > { %v2047_v55 = vshrl.u32 %v9017_v42, 16 }
  0x41   : > { %9779 = vmatmul.mubr.msk.bf16.vlgmr.msra.gmra.mrb[0].mxu0 %vm251_vm3, %v11167_v54  ;;  %v1198_v54 = vsel %vm238_vm2, %v1193_v45, %v1197_v46  ;;  %v1530_v45 = vshll.u32 %v8981_v40, 16  ;;  %v11190_v46 = vld [vmem:[%s11427_s22 + $0x30] sm:$0xff]  }
  0x42   : > { %9783 = vmatpush3.bf16.msra.mxu0 %v11500_v50  ;;  %9784 = vmatprep.mubr.msk.bf16.mxu0 %vm11362_vm1, %v11361_v1  ;;  %v9036_v40 = vld [vmem:[%s11427_s22 + $0x30] sm:$0xf] }
  0x43   : > { %9833 = vmatmul.mubr.msk.bf16.vlgmr.msra.gmra.mrb[0].mxu1 %vm251_vm3, %v11168_v58  ;;  %9788 = vmatprep.subr.bf16.mxu0 %v11361_v1  ;;  %v8926_v58 = vcombine.low %v8925_v49, %v8920_v20  ;;  %v2049_v49 = vshll.u32 %v9017_v42, 16  ;;  %v1532_v52 = vrot.slane %v1530_v45, 1  ;;  %v11723_v42 = vld [vmem:[%s11427_s22 + $0x34] sm:$0xf]  ;;  %v9072_v45 = vld [vmem:[%s11427_s22 + $0x3c] sm:$0xf] }
  0x44   : > { %9837 = vmatpush3.bf16.msra.mxu1 %v11500_v50  ;;  %9838 = vmatprep.mubr.msk.bf16.mxu1 %vm11362_vm1, %v11361_v1 }
  0x45   : > { %9842 = vmatprep.subr.bf16.mxu1 %v11361_v1  ;;  %v727_v62 = vrot.slane %v8926_v58, 1  ;;  %v2051_v56 = vrot.slane %v2049_v49, 1  ;;  %v1533_v58 = vor.u32 %v1532_v52, %v1528_v51  ;;  %v9039_v49 = vcombine.low %v9036_v40, %v11723_v42 }
  0x47   : > { %v729_v8 = vsel %vm350_vm4, %v727_v62, %v728_v63  ;;  %v2052_v60 = vor.u32 %v2051_v56, %v2047_v55  ;;  %v8984_v63 = vld [vmem:[%s11427_s22 + $0x24] sm:$0xe]  ;;  %v11206_v56 = vld [vmem:[%s11427_s22 + $0x38] ss:$0 sps:$4 sm:$0x11]  }
  0x48   : > { %v8985_v4 = vcombine.low %v8984_v63, %v8979_v37  ;;  %v2350_v63 = vshrl.u32 %v9039_v49, 16  ;;  %v2357_v3 = vshll.u32 %v11206_v56, 16 }
  0x4d   : > { %9785 = vmatmul.mubr.msk.bf16.vlgmr.msra.gmra.mrb[0].mxu0 %vm251_vm3, %v485_v6  ;;  %v11186_v6 = vld [vmem:[%s11427_s22 + $0x2c] ss:$0 sps:$4 sm:$0x11]  }
  0x4e   : > { %9789 = vmatpush3.bf16.msra.mxu0 %v11505_v53  ;;  %9790 = vmatprep.mubr.msk.bf16.mxu0 %vm11362_vm1, %v11361_v1  ;;  %v1838_v15 = vshll.u32 %v11186_v6, 16  ;;  %v1934_v33 = vrot.slane %v11186_v6, 1  ;;  %v1589_v6 = vrot.slane %v8985_v4, 1 }
  0x4f   : > { %9839 = vmatmul.mubr.msk.bf16.vlgmr.msra.gmra.mrb[0].mxu1 %vm251_vm3, %v1019_v7  ;;  %9794 = vmatprep.subr.bf16.mxu0 %v11361_v1  ;;  %v1833_v7 = vshll.u32 %v9003_v61, 16 }
  0x50   : > { %9843 = vmatpush3.bf16.msra.mxu1 %v11505_v53  ;;  %9844 = vmatprep.mubr.msk.bf16.mxu1 %vm11362_vm1, %v11361_v1  ;;  %v1840_v20 = vrot.slane %v1838_v15, 1  ;;  %v9028_v15 = vld [vmem:[%s11427_s22 + $0x40] sm:$0xf] }
  0x51   : > { %9848 = vmatprep.subr.bf16.mxu1 %v11361_v1  ;;  %v1835_v14 = vrot.slane %v1833_v7, 1  ;;  %v1590_v7 = vrot.slane %v11192_v44, 1 }
  0x53   : > { %v1836_v19 = vor.u32 %v1835_v14, %v1831_v13  ;;  %v8992_v13 = vld [vmem:[%s11427_s22 + $0x34] sm:$0xf]  ;;  %v9027_v14 = vld [vmem:[%s11427_s22 + $0x3c] sm:$0xf] }
  0x55   : > { %v1841_v23 = vsel %vm238_vm2, %v1836_v19, %v1840_v20  ;;  %v11197_v19 = vld [vmem:[%s11427_s22 + $0x30] sm:$0xff]   ;;  %v11200_v20 = vld [vmem:[%s11427_s22 + $0x38] ss:$0 sps:$4 sm:$0x11]  }
  0x56   : > { %v1714_v29 = vshll.u32 %v11200_v20, 16  ;;  %v1769_v55 = vrot.slane %v11200_v20, 1  ;;  %v2453_v20 = vrot.slane %v11206_v56, 1 }
  0x59   : > { %9791 = vmatmul.mubr.msk.bf16.vlgmr.msra.gmra.mrb[0].mxu0 %vm251_vm3, %v541_v16  ;;  %v1317_v16 = vor.u32 %v1316_v10, %v1312_v9  ;;  %v1591_v10 = vsel %vm350_vm4, %v1589_v6, %v1590_v7 }
  0x5a   : > { %9795 = vmatpush3.bf16.msra.mxu0 %v11538_v17  ;;  %9796 = vmatprep.mubr.msk.bf16.mxu0 %vm11362_vm1, %v11361_v1 }
  0x5b   : > { %9845 = vmatmul.mubr.msk.bf16.vlgmr.msra.gmra.mrb[0].mxu1 %vm251_vm3, %v1072_v18  ;;  %9800 = vmatprep.subr.bf16.mxu0 %v11361_v1  ;;  %v1321_v18 = vrot.slane %v1319_v11, 1 }
  0x5c   : > { %9849 = vmatpush3.bf16.msra.mxu1 %v11538_v17  ;;  %9850 = vmatprep.mubr.msk.bf16.mxu1 %vm11362_vm1, %v11361_v1 }
  0x5d   : > { %9854 = vmatprep.subr.bf16.mxu1 %v11361_v1  ;;  %v1322_v21 = vsel %vm238_vm2, %v1317_v16, %v1321_v18  ;;  %v9030_v18 = vcombine.low %v9027_v14, %v9028_v15  ;;  %v9043_v14 = vld [vmem:[%s11427_s22 + $0x30] sm:$0xe] }
  0x5f   : > { %v2226_v30 = vshrl.u32 %v9030_v18, 16 }
  0x65   : > { %9797 = vmatmul.mubr.msk.bf16.vlgmr.msra.gmra.mrb[0].mxu0 %vm251_vm3, %v11175_v27  ;;  %v9008_v27 = vcombine.low %v9007_v25, %v11592_v57  ;;  %v2228_v25 = vshll.u32 %v9030_v18, 16 }
  0x66   : > { %9801 = vmatpush3.bf16.msra.mxu0 %v11561_v31  ;;  %9802 = vmatprep.mubr.msk.bf16.mxu0 %vm11362_vm1, %v11361_v1 }
  0x67   : > { %9851 = vmatmul.mubr.msk.bf16.vlgmr.msra.gmra.mrb[0].mxu1 %vm251_vm3, %v11176_v32  ;;  %9806 = vmatprep.subr.bf16.mxu0 %v11361_v1  ;;  %v1933_v32 = vrot.slane %v9008_v27, 1 }
  0x68   : > { %9855 = vmatpush3.bf16.msra.mxu1 %v11561_v31  ;;  %9856 = vmatprep.mubr.msk.bf16.mxu1 %vm11362_vm1, %v11361_v1 }
  0x69   : > { %9860 = vmatprep.subr.bf16.mxu1 %v11361_v1  ;;  %v1935_v35 = vsel %vm350_vm4, %v1933_v32, %v1934_v33  ;;  %v2230_v32 = vrot.slane %v2228_v25, 1  ;;  %v2233_v33 = vshll.u32 %v11202_v24, 16 }
  0x6b   : > { %v2231_v36 = vor.u32 %v2230_v32, %v2226_v30  ;;  %v2235_v37 = vrot.slane %v2233_v33, 1  ;;  %v9087_v30 = vld [vmem:[%s11427_s22 + $0x4c] sm:$0xf] }
  0x71   : > { %9803 = vmatmul.mubr.msk.bf16.vlgmr.msra.gmra.mrb[0].mxu0 %vm251_vm3, %v673_v47  ;;  %v11194_v47 = vld [vmem:[%s11427_s22 + $0x38] ss:$0 sps:$4 sm:$0x11]  }
  0x72   : > { %9807 = vmatpush3.bf16.msra.mxu0 %v11580_v48  ;;  %9808 = vmatprep.mubr.msk.bf16.mxu0 %vm11362_vm1, %v11361_v1  ;;  %v2054_v57 = vshll.u32 %v11194_v47, 16  ;;  %v2109_v9 = vrot.slane %v11194_v47, 1  ;;  %v8998_v47 = vcombine.low %v8997_v39, %v8992_v13 }
  0x73   : > { %9857 = vmatmul.mubr.msk.bf16.vlgmr.msra.gmra.mrb[0].mxu1 %vm251_vm3, %v1198_v54  ;;  %9866 = vmatprep.subr.bf16.mxu0 %v11361_v1  ;;  %v1535_v54 = vshll.u32 %v11192_v44, 16  ;;  %v9033_v44 = vld [vmem:[%s11427_s22 + $0x3c] sm:$0xe] }
  0x74   : > { %9861 = vmatpush3.bf16.msra.mxu1 %v11580_v48  ;;  %9862 = vmatprep.mubr.msk.bf16.mxu1 %vm11362_vm1, %v11361_v1  ;;  %v9034_v51 = vcombine.low %v9033_v44, %v9028_v15  ;;  %v9079_v15 = vld [vmem:[%s11427_s22 + $0x3c] sm:$0xe] }
  0x75   : > { %9920 = vmatprep.subr.bf16.mxu1 %v11361_v1 }
  0x7d   : > { %9809 = vmatmul.mubr.msk.bf16.vlgmr.msra.gmra.mrb[0].mxu0 %vm251_vm3, %v729_v8  ;;  %v2108_v8 = vrot.slane %v9021_v5, 1 }
  0x7e   : > { %9867 = vmatpush3.bf16.msra.mxu0 %v11409_v2  ;;  %9868 = vmatprep.mubr.msk.bf16.mxu0 %vm11362_vm1, %v11361_v1 }
  0x7f   : > { %9863 = vmatmul.mubr.msk.bf16.vlgmr.msra.gmra.mrb[0].mxu1 %vm251_vm3, %v1251_v12  ;;  %9872 = vmatprep.subr.bf16.mxu0 %v11361_v1  ;;  %v2110_v11 = vsel %vm350_vm4, %v2108_v8, %v2109_v9  ;;  %v8991_v12 = vld [vmem:[%s11427_s22 + $0x30] sm:$0xf]  ;;  %v2359_v9 = vrot.slane %v2357_v3, 1 }
  0x80   : > { %9921 = vmatpush3.bf16.msra.mxu1 %v11409_v2  ;;  %9922 = vmatprep.mubr.msk.bf16.mxu1 %vm11362_vm1, %v11361_v1  ;;  %v8994_v16 = vcombine.low %v8991_v12, %v8992_v13 }
  0x81   : > { %9926 = vmatprep.subr.bf16.mxu1 %v11361_v1 }
  0x82   : > { %v1707_v26 = vshrl.u32 %v8994_v16, 16 }
  0x85   : > { %9869 = vmatmul.mubr.msk.bf16.vlgmr.msra.gmra.mrb[4].mxu0 %vm251_vm3, %v1322_v21  ;;  %v1709_v21 = vshll.u32 %v8994_v16, 16  ;;  %v9044_v16 = vcombine.low %v9043_v14, %v11723_v42  ;;  %v11224_v14 = vld [vmem:[%s11427_s22 + $0x5c] ss:$0 sps:$4 sm:$0x11]  }
  0x86   : > { %9873 = vmatpush3.bf16.msra.mxu0 %v11439_v22  ;;  %9874 = vmatprep.mubr.msk.bf16.mxu0 %vm11362_vm1, %v11361_v1 }
  0x87   : > { %9923 = vmatmul.mubr.msk.bf16.vlgmr.msra.gmra.mrb[4].mxu1 %vm251_vm3, %v1841_v23  ;;  %9878 = vmatprep.subr.bf16.mxu0 %v11361_v1  ;;  %v11198_v23 = vld [vmem:[%s11427_s22 + $0x3c] sm:$0xff]   ;;  %v1711_v27 = vrot.slane %v1709_v21, 1 }
  0x88   : > { %9927 = vmatpush3.bf16.msra.mxu1 %v11439_v22  ;;  %9928 = vmatprep.mubr.msk.bf16.mxu1 %vm11362_vm1, %v11361_v1 }
  0x89   : > { %9932 = vmatprep.subr.bf16.mxu1 %v11361_v1 }
  0x91   : > { %9875 = vmatmul.mubr.msk.bf16.vlgmr.msra.gmra.mrb[4].mxu0 %vm251_vm3, %v8967_v59  ;;  %v1537_v59 = vrot.slane %v1535_v54, 1  ;;  %v1768_v54 = vrot.slane %v8998_v47, 1 }
  0x92   : > { %9879 = vmatpush3.bf16.msra.mxu0 %v11457_v28  ;;  %9880 = vmatprep.mubr.msk.bf16.mxu0 %vm11362_vm1, %v11361_v1 }
  0x93   : > { %9929 = vmatmul.mubr.msk.bf16.vlgmr.msra.gmra.mrb[4].mxu1 %vm251_vm3, %v9003_v61  ;;  %9884 = vmatprep.subr.bf16.mxu0 %v11361_v1  ;;  %v2056_v61 = vrot.slane %v2054_v57, 1  ;;  %v1538_v62 = vsel %vm238_vm2, %v1533_v58, %v1537_v59  ;;  %v2352_v57 = vshll.u32 %v9039_v49, 16  ;;  %v2287_v58 = vrot.slane %v9034_v51, 1 }
  0x94   : > { %9933 = vmatpush3.bf16.msra.mxu1 %v11457_v28  ;;  %9934 = vmatprep.mubr.msk.bf16.mxu1 %vm11362_vm1, %v11361_v1  ;;  %v2288_v59 = vrot.slane %v11202_v24, 1 }
  0x95   : > { %9938 = vmatprep.subr.bf16.mxu1 %v11361_v1  ;;  %v2057_v0 = vsel %vm238_vm2, %v2052_v60, %v2056_v61  ;;  %v11208_v60 = vld [vmem:[%s11427_s22 + $0x44] ss:$0 sps:$4 sm:$0x11]  }
  0x96   : > { %v2289_v4 = vsel %vm350_vm4, %v2287_v58, %v2288_v59  ;;  %v2876_v7 = vshll.u32 %v11208_v60, 16 }
  0x9d   : > { %9881 = vmatmul.mubr.msk.bf16.vlgmr.msra.gmra.mrb[4].mxu0 %vm251_vm3, %v1416_v34  ;;  %v1712_v34 = vor.u32 %v1711_v27, %v1707_v26  ;;  %v9050_v26 = vld [vmem:[%s11427_s22 + $0x3c] sm:$0xf]  ;;  %v9051_v27 = vld [vmem:[%s11427_s22 + $0x40] sm:$0xf] }
  0x9e   : > { %9885 = vmatpush3.bf16.msra.mxu0 %v11478_v41  ;;  %9886 = vmatprep.mubr.msk.bf16.mxu0 %vm11362_vm1, %v11361_v1  ;;  %v9053_v32 = vcombine.low %v9050_v26, %v9051_v27 }
  0x9f   : > { %9935 = vmatmul.mubr.msk.bf16.vlgmr.msra.gmra.mrb[4].mxu1 %vm251_vm3, %v1935_v35  ;;  %9890 = vmatprep.subr.bf16.mxu0 %v11361_v1  ;;  %v1716_v35 = vrot.slane %v1714_v29, 1  ;;  %v9086_v29 = vld [vmem:[%s11427_s22 + $0x48] sm:$0xf] }
  0xa0   : > { %9939 = vmatpush3.bf16.msra.mxu1 %v11478_v41  ;;  %9940 = vmatprep.mubr.msk.bf16.mxu1 %vm11362_vm1, %v11361_v1  ;;  %v9089_v33 = vcombine.low %v9086_v29, %v9087_v30  ;;  %v2566_v40 = vshrl.u32 %v9053_v32, 16 }
  0xa1   : > { %9944 = vmatprep.subr.bf16.mxu1 %v11361_v1  ;;  %v1717_v38 = vsel %vm238_vm2, %v1712_v34, %v1716_v35  ;;  %v11211_v34 = vld [vmem:[%s11427_s22 + $0x3c] sm:$0xff]   ;;  %v11214_v35 = vld [vmem:[%s11427_s22 + $0x44] ss:$0 sps:$4 sm:$0x11]  }
  0xa2   : > { %v3087_v39 = vshll.u32 %v9089_v33, 16  ;;  %v3085_v44 = vshrl.u32 %v9089_v33, 16  ;;  %v11861_v33 = vld [vmem:[%s11427_s22 + $0x4c] sm:$0xf] }
  0xa9   : > { %9887 = vmatmul.mubr.msk.bf16.vlgmr.msra.gmra.mrb[4].mxu0 %vm251_vm3, %v11189_v43  ;;  %v2236_v43 = vsel %vm238_vm2, %v2231_v36, %v2235_v37  ;;  %v2568_v36 = vshll.u32 %v9053_v32, 16  ;;  %v11212_v37 = vld [vmem:[%s11427_s22 + $0x48] sm:$0xff]  }
  0xaa   : > { %9891 = vmatpush3.bf16.msra.mxu0 %v11500_v50  ;;  %9892 = vmatprep.mubr.msk.bf16.mxu0 %vm11362_vm1, %v11361_v1  ;;  %v9108_v32 = vld [vmem:[%s11427_s22 + $0x48] sm:$0xf] }
  0xab   : > { %9941 = vmatmul.mubr.msk.bf16.vlgmr.msra.gmra.mrb[4].mxu1 %vm251_vm3, %v11190_v46  ;;  %9896 = vmatprep.subr.bf16.mxu0 %v11361_v1  ;;  %v11730_v46 = vld [vmem:[%s11427_s22 + $0x40] sm:$0xf]  ;;  %v2570_v42 = vrot.slane %v2568_v36, 1  ;;  %v9144_v36 = vld [vmem:[%s11427_s22 + $0x54] sm:$0xf] }
  0xac   : > { %9945 = vmatpush3.bf16.msra.mxu1 %v11500_v50  ;;  %9946 = vmatprep.mubr.msk.bf16.mxu1 %vm11362_vm1, %v11361_v1  ;;  %v9075_v52 = vcombine.low %v9072_v45, %v11730_v46  ;;  %v9080_v18 = vcombine.low %v9079_v15, %v11730_v46  ;;  %v3089_v45 = vrot.slane %v3087_v39, 1  ;;  %v11875_v39 = vcombine.low %v9108_v32, %v11861_v33 }
  0xad   : > { %9950 = vmatprep.subr.bf16.mxu1 %v11361_v1  ;;  %v2571_v47 = vor.u32 %v2570_v42, %v2566_v40 }
  0xae   : > { %v2871_v61 = vshll.u32 %v9075_v52, 16  ;;  %v2869_v5 = vshrl.u32 %v9075_v52, 16  ;;  %v2971_v21 = vrot.slane %v9080_v18, 1  ;;  %v3090_v51 = vor.u32 %v3089_v45, %v3085_v44  ;;  %v11887_v45 = vld [vmem:[%s11427_s22 + $0x50] ss:$0 sps:$4 sm:$0x11]  }
  0xb0   : > { %v2873_v6 = vrot.slane %v2871_v61, 1  ;;  %v2628_v61 = vrot.slane %v11214_v35, 1 }
  0xb5   : > { %9893 = vmatmul.mubr.msk.bf16.vlgmr.msra.gmra.mrb[4].mxu0 %vm251_vm3, %v1538_v62  ;;  %v1770_v62 = vsel %vm350_vm4, %v1768_v54, %v1769_v55  ;;  %v9056_v55 = vld [vmem:[%s11427_s22 + $0x3c] sm:$0xe] }
  0xb6   : > { %9897 = vmatpush3.bf16.msra.mxu0 %v11505_v53  ;;  %9898 = vmatprep.mubr.msk.bf16.mxu0 %vm11362_vm1, %v11361_v1  ;;  %v9057_v58 = vcombine.low %v9056_v55, %v9051_v27  ;;  %v3388_v55 = vshrl.u32 %v11875_v39, 16 }
  0xb7   : > { %9947 = vmatmul.mubr.msk.bf16.vlgmr.msra.gmra.mrb[4].mxu1 %vm251_vm3, %v2057_v0  ;;  %9902 = vmatprep.subr.bf16.mxu0 %v11361_v1  ;;  %v2354_v0 = vrot.slane %v2352_v57, 1  ;;  %v9092_v57 = vld [vmem:[%s11427_s22 + $0x48] sm:$0xe] }
  0xb8   : > { %9951 = vmatpush3.bf16.msra.mxu1 %v11505_v53  ;;  %9952 = vmatprep.mubr.msk.bf16.mxu1 %vm11362_vm1, %v11361_v1  ;;  %v9093_v59 = vcombine.low %v9092_v57, %v9087_v30  ;;  %v9069_v30 = vld [vmem:[%s11427_s22 + $0x48] sm:$0xe]  ;;  %v3395_v57 = vshll.u32 %v11887_v45, 16 }
  0xb9   : > { %9956 = vmatprep.subr.bf16.mxu1 %v11361_v1  ;;  %v2355_v8 = vor.u32 %v2354_v0, %v2350_v63 }
  0xbb   : > { %v2360_v12 = vsel %vm238_vm2, %v2355_v8, %v2359_v9 }
  0xc1   : > { %9899 = vmatmul.mubr.msk.bf16.vlgmr.msra.gmra.mrb[4].mxu0 %vm251_vm3, %v1591_v10  ;;  %v2874_v10 = vor.u32 %v2873_v6, %v2869_v5  ;;  %v9064_v5 = vld [vmem:[%s11427_s22 + $0x4c] sm:$0xf]  ;;  %v9099_v6 = vld [vmem:[%s11427_s22 + $0x54] sm:$0xf] }
  0xc2   : > { %9903 = vmatpush3.bf16.msra.mxu0 %v11538_v17  ;;  %9904 = vmatprep.mubr.msk.bf16.mxu0 %vm11362_vm1, %v11361_v1 }
  0xc3   : > { %9953 = vmatmul.mubr.msk.bf16.vlgmr.msra.gmra.mrb[4].mxu1 %vm251_vm3, %v2110_v11  ;;  %9908 = vmatprep.subr.bf16.mxu0 %v11361_v1  ;;  %v2878_v11 = vrot.slane %v2876_v7, 1  ;;  %v9100_v7 = vld [vmem:[%s11427_s22 + $0x58] sm:$0xf] }
  0xc4   : > { %9957 = vmatpush3.bf16.msra.mxu1 %v11538_v17  ;;  %9958 = vmatprep.mubr.msk.bf16.mxu1 %vm11362_vm1, %v11361_v1  ;;  %v9102_v9 = vcombine.low %v9099_v6, %v9100_v7 }
  0xc5   : > { %9962 = vmatprep.subr.bf16.mxu1 %v11361_v1  ;;  %v2879_v13 = vsel %vm238_vm2, %v2874_v10, %v2878_v11  ;;  %v11219_v10 = vld [vmem:[%s11427_s22 + $0x48] sm:$0xff]   ;;  %v11222_v11 = vld [vmem:[%s11427_s22 + $0x50] ss:$0 sps:$4 sm:$0x11]  }
  0xc6   : > { %v3266_v15 = vshll.u32 %v9102_v9, 16  ;;  %v2807_v44 = vrot.slane %v11222_v11, 1 }
  0xcd   : > { %9905 = vmatmul.mubr.msk.bf16.vlgmr.msra.gmra.mrb[4].mxu0 %vm251_vm3, %v11197_v19  ;;  %v2452_v19 = vrot.slane %v9044_v16, 1 }
  0xce   : > { %9909 = vmatpush3.bf16.msra.mxu0 %v11561_v31  ;;  %9910 = vmatprep.mubr.msk.bf16.mxu0 %vm11362_vm1, %v11361_v1 }
  0xcf   : > { %9959 = vmatmul.mubr.msk.bf16.vlgmr.msra.gmra.mrb[4].mxu1 %vm251_vm3, %v11198_v23  ;;  %9914 = vmatprep.subr.bf16.mxu0 %v11361_v1  ;;  %v2972_v23 = vrot.slane %v11208_v60, 1  ;;  %v2454_v24 = vsel %vm350_vm4, %v2452_v19, %v2453_v20  ;;  %v2627_v60 = vrot.slane %v9057_v58, 1  ;;  %v2752_v19 = vshll.u32 %v11222_v11, 16 }
  0xd0   : > { %9963 = vmatpush3.bf16.msra.mxu1 %v11561_v31  ;;  %9964 = vmatprep.mubr.msk.bf16.mxu1 %vm11362_vm1, %v11361_v1  ;;  %v3264_v20 = vshrl.u32 %v9102_v9, 16 }
  0xd1   : > { %9968 = vmatprep.subr.bf16.mxu1 %v11361_v1  ;;  %v2973_v25 = vsel %vm350_vm4, %v2971_v21, %v2972_v23  ;;  %v2629_v0 = vsel %vm350_vm4, %v2627_v60, %v2628_v61  ;;  %v3268_v21 = vrot.slane %v3266_v15, 1  ;;  %v3271_v23 = vshll.u32 %v11224_v14, 16 }
  0xd3   : > { %v3269_v26 = vor.u32 %v3268_v21, %v3264_v20  ;;  %v3273_v27 = vrot.slane %v3271_v23, 1 }
  0xd9   : > { %9911 = vmatmul.mubr.msk.bf16.vlgmr.msra.gmra.mrb[4].mxu0 %vm251_vm3, %v1717_v38  ;;  %v11216_v38 = vld [vmem:[%s11427_s22 + $0x50] ss:$0 sps:$4 sm:$0x11]  }
  0xda   : > { %9915 = vmatpush3.bf16.msra.mxu0 %v11580_v48  ;;  %9916 = vmatprep.mubr.msk.bf16.mxu0 %vm11362_vm1, %v11361_v1  ;;  %v3092_v46 = vshll.u32 %v11216_v38, 16  ;;  %v3147_v63 = vrot.slane %v11216_v38, 1  ;;  %v9070_v38 = vcombine.low %v9069_v30, %v9064_v5 }
  0xdb   : > { %9965 = vmatmul.mubr.msk.bf16.vlgmr.msra.gmra.mrb[4].mxu1 %vm251_vm3, %v2236_v43  ;;  %9974 = vmatprep.subr.bf16.mxu0 %v11361_v1  ;;  %v2573_v43 = vshll.u32 %v11214_v35, 16  ;;  %v9105_v35 = vld [vmem:[%s11427_s22 + $0x54] sm:$0xe] }
  0xdc   : > { %9969 = vmatpush3.bf16.msra.mxu1 %v11580_v48  ;;  %9970 = vmatprep.mubr.msk.bf16.mxu1 %vm11362_vm1, %v11361_v1  ;;  %v9106_v40 = vcombine.low %v9105_v35, %v9100_v7 }
  0xdd   : > { %10028 = vmatprep.subr.bf16.mxu1 %v11361_v1 }
  0xe5   : > { %9917 = vmatmul.mubr.msk.bf16.vlgmr.msra.gmra.mrb[4].mxu0 %vm251_vm3, %v1770_v62  ;;  %v3146_v62 = vrot.slane %v9093_v59, 1 }
  0xe6   : > { %9975 = vmatpush3.bf16.msra.mxu0 %v11409_v2  ;;  %9976 = vmatprep.mubr.msk.bf16.mxu0 %vm11362_vm1, %v11361_v1 }
  0xe7   : > { %9971 = vmatmul.mubr.msk.bf16.vlgmr.msra.gmra.mrb[4].mxu1 %vm251_vm3, %v2289_v4  ;;  %9980 = vmatprep.subr.bf16.mxu0 %v11361_v1  ;;  %v3148_v3 = vsel %vm350_vm4, %v3146_v62, %v3147_v63  ;;  %v9063_v4 = vld [vmem:[%s11427_s22 + $0x48] sm:$0xf]  ;;  %v3397_v63 = vrot.slane %v3395_v57, 1 }
  0xe8   : > { %10029 = vmatpush3.bf16.msra.mxu1 %v11409_v2  ;;  %10030 = vmatprep.mubr.msk.bf16.mxu1 %vm11362_vm1, %v11361_v1  ;;  %v9066_v8 = vcombine.low %v9063_v4, %v9064_v5 }
  0xe9   : > { %10034 = vmatprep.subr.bf16.mxu1 %v11361_v1 }
  0xea   : > { %v2745_v16 = vshrl.u32 %v9066_v8, 16 }
  0xed   : > { %9977 = vmatmul.mubr.msk.bf16.vlgmr.msra.gmra.mrb[8].mxu0 %vm251_vm3, %v2360_v12  ;;  %v2747_v12 = vshll.u32 %v9066_v8, 16 }
  0xee   : > { %9981 = vmatpush3.bf16.msra.mxu0 %v11439_v22  ;;  %9982 = vmatprep.mubr.msk.bf16.mxu0 %vm11362_vm1, %v11361_v1 }
  0xef   : > { %10031 = vmatmul.mubr.msk.bf16.vlgmr.msra.gmra.mrb[8].mxu1 %vm251_vm3, %v2879_v13  ;;  %9986 = vmatprep.subr.bf16.mxu0 %v11361_v1  ;;  %v11220_v13 = vld [vmem:[%s11427_s22 + $0x54] sm:$0xff]   ;;  %v2749_v18 = vrot.slane %v2747_v12, 1 }
  0xf0   : > { %10035 = vmatpush3.bf16.msra.mxu1 %v11439_v22  ;;  %10036 = vmatprep.mubr.msk.bf16.mxu1 %vm11362_vm1, %v11361_v1 }
  0xf1   : > { %10040 = vmatprep.subr.bf16.mxu1 %v11361_v1 }
  0xf9   : > { %9983 = vmatmul.mubr.msk.bf16.vlgmr.msra.gmra.mrb[8].mxu0 %vm251_vm3, %v9039_v49  ;;  %v2575_v49 = vrot.slane %v2573_v43, 1  ;;  %v2806_v43 = vrot.slane %v9070_v38, 1 }
  0xfa   : > { %9987 = vmatpush3.bf16.msra.mxu0 %v11457_v28  ;;  %9988 = vmatprep.mubr.msk.bf16.mxu0 %vm11362_vm1, %v11361_v1 }
  0xfb   : > { %10037 = vmatmul.mubr.msk.bf16.vlgmr.msra.gmra.mrb[8].mxu1 %vm251_vm3, %v9075_v52  ;;  %9992 = vmatprep.subr.bf16.mxu0 %v11361_v1  ;;  %v3094_v52 = vrot.slane %v3092_v46, 1  ;;  %v2576_v54 = vsel %vm238_vm2, %v2571_v47, %v2575_v49  ;;  %v3390_v46 = vshll.u32 %v11875_v39, 16  ;;  %v3325_v47 = vrot.slane %v9106_v40, 1  ;;  %v9158_v40 = vld [vmem:[%s11427_s22 + $0x60] sm:$0xf] }
  0xfc   : > { %10041 = vmatpush3.bf16.msra.mxu1 %v11457_v28  ;;  %10042 = vmatprep.mubr.msk.bf16.mxu1 %vm11362_vm1, %v11361_v1  ;;  %v3326_v49 = vrot.slane %v11224_v14, 1 }
  0xfd   : > { %10046 = vmatprep.subr.bf16.mxu1 %v11361_v1  ;;  %v3095_v56 = vsel %vm238_vm2, %v3090_v51, %v3094_v52  ;;  %v11891_v51 = vld [vmem:[%s11427_s22 + $0x5c] ss:$0 sps:$4 sm:$0x11]  }
  0xfe   : > { %v3327_v58 = vsel %vm350_vm4, %v3325_v47, %v3326_v49  ;;  %v3914_v61 = vshll.u32 %v11891_v51, 16  ;;  %v4010_v35 = vrot.slane %v11891_v51, 1  ;;  %v11234_v49 = vld [vmem:[%s11427_s22 + $0x60] sm:$0xff]   ;;  %v11238_v51 = vld [vmem:[%s11427_s22 + $0x68] ss:$0 sps:$4 sm:$0x11]  }
 0x100   : > { %v3916_v4 = vrot.slane %v3914_v61, 1 }
 0x105   : > { %9989 = vmatmul.mubr.msk.bf16.vlgmr.msra.gmra.mrb[8].mxu0 %vm251_vm3, %v2454_v24  ;;  %v2750_v24 = vor.u32 %v2749_v18, %v2745_v16 }
 0x106   : > { %9993 = vmatpush3.bf16.msra.mxu0 %v11478_v41  ;;  %9994 = vmatprep.mubr.msk.bf16.mxu0 %vm11362_vm1, %v11361_v1 }
 0x107   : > { %10043 = vmatmul.mubr.msk.bf16.vlgmr.msra.gmra.mrb[8].mxu1 %vm251_vm3, %v2973_v25  ;;  %9998 = vmatprep.subr.bf16.mxu0 %v11361_v1  ;;  %v2754_v25 = vrot.slane %v2752_v19, 1 }
 0x108   : > { %10047 = vmatpush3.bf16.msra.mxu1 %v11478_v41  ;;  %10048 = vmatprep.mubr.msk.bf16.mxu1 %vm11362_vm1, %v11361_v1 }
 0x109   : > { %10052 = vmatprep.subr.bf16.mxu1 %v11361_v1  ;;  %v2755_v29 = vsel %vm238_vm2, %v2750_v24, %v2754_v25 }
 0x111   : > { %9995 = vmatmul.mubr.msk.bf16.vlgmr.msra.gmra.mrb[8].mxu0 %vm251_vm3, %v11211_v34  ;;  %v3274_v34 = vsel %vm238_vm2, %v3269_v26, %v3273_v27  ;;  %v9115_v26 = vld [vmem:[%s11427_s22 + $0x48] sm:$0xe]  ;;  %v9151_v27 = vld [vmem:[%s11427_s22 + $0x54] sm:$0xe] }
 0x112   : > { %9999 = vmatpush3.bf16.msra.mxu0 %v11500_v50  ;;  %10000 = vmatprep.mubr.msk.bf16.mxu0 %vm11362_vm1, %v11361_v1 }
 0x113   : > { %10049 = vmatmul.mubr.msk.bf16.vlgmr.msra.gmra.mrb[8].mxu1 %vm251_vm3, %v11212_v37  ;;  %10004 = vmatprep.subr.bf16.mxu0 %v11361_v1  ;;  %v11869_v37 = vld [vmem:[%s11427_s22 + $0x58] sm:$0xf] }
 0x114   : > { %10053 = vmatpush3.bf16.msra.mxu1 %v11500_v50  ;;  %10054 = vmatprep.mubr.msk.bf16.mxu1 %vm11362_vm1, %v11361_v1  ;;  %v11883_v42 = vcombine.low %v9144_v36, %v11869_v37  ;;  %v9152_v30 = vcombine.low %v9151_v27, %v11869_v37  ;;  %v9122_v37 = vld [vmem:[%s11427_s22 + $0x54] sm:$0xf]  ;;  %v11242_v27 = vld [vmem:[%s11427_s22 + $0x6c] sm:$0xff]  }
 0x115   : > { %10058 = vmatprep.subr.bf16.mxu1 %v11361_v1 }
 0x116   : > { %v3909_v52 = vshll.u32 %v11883_v42, 16  ;;  %v3907_v59 = vshrl.u32 %v11883_v42, 16 }
 0x118   : > { %v3911_v60 = vrot.slane %v3909_v52, 1 }
 0x11d   : > { %10001 = vmatmul.mubr.msk.bf16.vlgmr.msra.gmra.mrb[8].mxu0 %vm251_vm3, %v2576_v54  ;;  %v2808_v54 = vsel %vm350_vm4, %v2806_v43, %v2807_v44 }
 0x11e   : > { %10005 = vmatpush3.bf16.msra.mxu0 %v11505_v53  ;;  %10006 = vmatprep.mubr.msk.bf16.mxu0 %vm11362_vm1, %v11361_v1 }
 0x11f   : > { %10055 = vmatmul.mubr.msk.bf16.vlgmr.msra.gmra.mrb[8].mxu1 %vm251_vm3, %v3095_v56  ;;  %10010 = vmatprep.subr.bf16.mxu0 %v11361_v1  ;;  %v3392_v56 = vrot.slane %v3390_v46, 1  ;;  %v11236_v46 = vld [vmem:[%s11427_s22 + $0x5c] ss:$0 sps:$4 sm:$0x11]  }
 0x120   : > { %10059 = vmatpush3.bf16.msra.mxu1 %v11505_v53  ;;  %10060 = vmatprep.mubr.msk.bf16.mxu1 %vm11362_vm1, %v11361_v1 }
 0x121   : > { %10064 = vmatprep.subr.bf16.mxu1 %v11361_v1  ;;  %v3393_v62 = vor.u32 %v3392_v56, %v3388_v55  ;;  %v3611_v56 = vshll.u32 %v11236_v46, 16 }
 0x123   : > { %v3398_v8 = vsel %vm238_vm2, %v3393_v62, %v3397_v63  ;;  %v3613_v61 = vrot.slane %v3611_v56, 1 }
 0x129   : > { %10007 = vmatmul.mubr.msk.bf16.vlgmr.msra.gmra.mrb[8].mxu0 %vm251_vm3, %v2629_v0 }
 0x12a   : > { %10011 = vmatpush3.bf16.msra.mxu0 %v11538_v17  ;;  %10012 = vmatprep.mubr.msk.bf16.mxu0 %vm11362_vm1, %v11361_v1 }
 0x12b   : > { %10061 = vmatmul.mubr.msk.bf16.vlgmr.msra.gmra.mrb[8].mxu1 %vm251_vm3, %v3148_v3  ;;  %10016 = vmatprep.subr.bf16.mxu0 %v11361_v1  ;;  %v3912_v3 = vor.u32 %v3911_v60, %v3907_v59  ;;  %v4130_v59 = vshll.u32 %v11238_v51, 16 }
 0x12c   : > { %10065 = vmatpush3.bf16.msra.mxu1 %v11538_v17  ;;  %10066 = vmatprep.mubr.msk.bf16.mxu1 %vm11362_vm1, %v11361_v1 }
 0x12d   : > { %10070 = vmatprep.subr.bf16.mxu1 %v11361_v1  ;;  %v3917_v15 = vsel %vm238_vm2, %v3912_v3, %v3916_v4  ;;  %v4132_v63 = vrot.slane %v4130_v59, 1  ;;  %v9128_v3 = vld [vmem:[%s11427_s22 + $0x54] sm:$0xe] }
 0x135   : > { %10013 = vmatmul.mubr.msk.bf16.vlgmr.msra.gmra.mrb[8].mxu0 %vm251_vm3, %v11219_v10 }
 0x136   : > { %10017 = vmatpush3.bf16.msra.mxu0 %v11561_v31  ;;  %10018 = vmatprep.mubr.msk.bf16.mxu0 %vm11362_vm1, %v11361_v1 }
 0x137   : > { %10067 = vmatmul.mubr.msk.bf16.vlgmr.msra.gmra.mrb[8].mxu1 %vm251_vm3, %v11220_v13  ;;  %10022 = vmatprep.subr.bf16.mxu0 %v11361_v1 }
 0x138   : > { %10071 = vmatpush3.bf16.msra.mxu1 %v11561_v31  ;;  %10072 = vmatprep.mubr.msk.bf16.mxu1 %vm11362_vm1, %v11361_v1 }
 0x139   : > { %10076 = vmatprep.subr.bf16.mxu1 %v11361_v1 }
 0x141   : > { %10019 = vmatmul.mubr.msk.bf16.vlgmr.msra.gmra.mrb[8].mxu0 %vm251_vm3, %v2755_v29  ;;  %v9116_v29 = vcombine.low %v9115_v26, %v11861_v33  ;;  %v3491_v33 = vrot.slane %v11887_v45, 1  ;;  %v11233_v45 = vld [vmem:[%s11427_s22 + $0x54] sm:$0xff]  }
 0x142   : > { %10023 = vmatpush3.bf16.msra.mxu0 %v11580_v48  ;;  %10024 = vmatprep.mubr.msk.bf16.mxu0 %vm11362_vm1, %v11361_v1 }
 0x143   : > { %10073 = vmatmul.mubr.msk.bf16.vlgmr.msra.gmra.mrb[8].mxu1 %vm251_vm3, %v3274_v34  ;;  %10082 = vmatprep.subr.bf16.mxu0 %v11361_v1  ;;  %v3490_v32 = vrot.slane %v9116_v29, 1  ;;  %v4009_v34 = vrot.slane %v9152_v30, 1  ;;  %v11246_v29 = vld [vmem:[%s11427_s22 + $0x74] ss:$0 sps:$4 sm:$0x11]  }
 0x144   : > { %10077 = vmatpush3.bf16.msra.mxu1 %v11580_v48  ;;  %10078 = vmatprep.mubr.msk.bf16.mxu1 %vm11362_vm1, %v11361_v1 }
 0x145   : > { %10136 = vmatprep.subr.bf16.mxu1 %v11361_v1  ;;  %v3492_v36 = vsel %vm350_vm4, %v3490_v32, %v3491_v33  ;;  %v4011_v38 = vsel %vm350_vm4, %v4009_v34, %v4010_v35 }
 0x14d   : > { %10025 = vmatmul.mubr.msk.bf16.vlgmr.msra.gmra.mrb[8].mxu0 %vm251_vm3, %v2808_v54 }
 0x14e   : > { %10083 = vmatpush3.bf16.msra.mxu0 %v11409_v2  ;;  %10084 = vmatprep.mubr.msk.bf16.mxu0 %vm11362_vm1, %v11361_v1 }
 0x14f   : > { %10079 = vmatmul.mubr.msk.bf16.vlgmr.msra.gmra.mrb[8].mxu1 %vm251_vm3, %v3327_v58  ;;  %10088 = vmatprep.subr.bf16.mxu0 %v11361_v1 }
 0x150   : > { %v770_v0 = vpop.f32.mrb[0].mxu0  ;;  %10137 = vmatpush3.bf16.msra.mxu1 %v11409_v2  ;;  %10138 = vmatprep.mubr.msk.bf16.mxu1 %vm11362_vm1, %v11361_v1 }
 0x151   : > { %779 = vst [vmem:[%s11905_s20] sm:$0xff] %v770_v0  ;;  %v9810_v5 = vpop.f32.mrb[1].mxu0  ;;  %10142 = vmatprep.subr.bf16.mxu1 %v11361_v1  ;;  %v8635_v9 = vmul.f32 %v770_v0, %v770_v0 }
 0x152   : > { %v1289_v6 = vpop.f32.mrb[0].mxu1  ;;  %v773_v7 = vpop.f32.mrb[2].mxu0  ;;  %v9164_v5 = vld [vmem:[%s11427_s22 + $0x60] sm:$0xe] }
 0x153   : > { %1298 = vst [vmem:[%s11905_s20 + $0x10] sm:$0xff] %v1289_v6  ;;  %v9864_v10 = vpop.f32.mrb[1].mxu1  ;;  %780 = vst [vmem:[%s11905_s20 + $0x8] sm:$0xff] %v773_v7  ;;  %v8598_v11 = vadd.f32 %v773_v7, %v770_v0  ;;  %v8636_v12 = vmul.f32 %v773_v7, %v773_v7  ;;  %v9811_v13 = vpop.f32.mrb[3].mxu0  ;;  %v8637_v16 = vmul.f32 %v1289_v6, %v1289_v6 }
 0x154   : > { %v1292_v14 = vpop.f32.mrb[2].mxu1 }
 0x155   : > { %v8667_v18 = vadd.f32 %v8636_v12, %v8635_v9  ;;  %1299 = vst [vmem:[%s11905_s20 + $0x18] sm:$0xff] %v1292_v14  ;;  %v8599_v19 = vadd.f32 %v8598_v11, %v1289_v6  ;;  %v9865_v20 = vpop.f32.mrb[3].mxu1  ;;  %10085 = vmatmul.mubr.msk.bf16.vlgmr.msra.gmra.mrb[12].mxu0 %vm251_vm3, %v3398_v8  ;;  %v8638_v23 = vmul.f32 %v1292_v14, %v1292_v14  ;;  %v3666_v9 = vrot.slane %v11236_v46, 1  ;;  %v12031_v46 = vld [vmem:[%s11427_s22 + $0x64] sm:$0xf] }
 0x156   : > { %10089 = vmatpush3.bf16.msra.mxu0 %v11439_v22  ;;  %10090 = vmatprep.mubr.msk.bf16.mxu0 %vm11362_vm1, %v11361_v1  ;;  %v4185_v11 = vrot.slane %v11238_v51, 1  ;;  %v9216_v51 = vld [vmem:[%s11427_s22 + $0x6c] sm:$0xf] }
 0x157   : > { %v11925_v21 = vadd.f32 %v8599_v19, %v1292_v14  ;;  %v8668_v24 = vadd.f32 %v8667_v18, %v8637_v16  ;;  %10139 = vmatmul.mubr.msk.bf16.vlgmr.msra.gmra.mrb[12].mxu1 %vm251_vm3, %v3917_v15  ;;  %10094 = vmatprep.subr.bf16.mxu0 %v11361_v1  ;;  %v9135_v14 = vld [vmem:[%s11427_s22 + $0x60] sm:$0xf]  ;;  %v9136_v15 = vld [vmem:[%s11427_s22 + $0x64] sm:$0xf]  ;;  %v9171_v16 = vld [vmem:[%s11427_s22 + $0x6c] sm:$0xf] }
 0x158   : > { %10143 = vmatpush3.bf16.msra.mxu1 %v11439_v22  ;;  %10144 = vmatprep.mubr.msk.bf16.mxu1 %vm11362_vm1, %v11361_v1  ;;  %v9172_v18 = vld [vmem:[%s11427_s22 + $0x70] sm:$0xf]  ;;  %v9138_v19 = vcombine.low %v9135_v14, %v9136_v15 }
 0x159   : > { %v11932_v25 = vadd.f32 %v8668_v24, %v8638_v23  ;;  %10148 = vmatprep.subr.bf16.mxu1 %v11361_v1  ;;  %v9174_v20 = vcombine.low %v9171_v16, %v9172_v18  ;;  %v11241_v23 = vld [vmem:[%s11427_s22 + $0x60] sm:$0xff]   ;;  %v11244_v24 = vld [vmem:[%s11427_s22 + $0x68] ss:$0 sps:$4 sm:$0x11]  }
 0x15a   : > { %v3785_v26 = vshll.u32 %v9138_v19, 16  ;;  %v3783_v32 = vshrl.u32 %v9138_v19, 16  ;;  %v3790_v34 = vshll.u32 %v11244_v24, 16  ;;  %v3845_v59 = vrot.slane %v11244_v24, 1 }
 0x15b   : > { %v4304_v30 = vshll.u32 %v9174_v20, 16  ;;  %v4302_v35 = vshrl.u32 %v9174_v20, 16 }
 0x15c   : > { %v3787_v33 = vrot.slane %v3785_v26, 1 }
 0x161   : > { %10091 = vmatmul.mubr.msk.bf16.vlgmr.msra.gmra.mrb[12].mxu0 %vm251_vm3, %v11875_v39  ;;  %v9123_v39 = vld [vmem:[%s11427_s22 + $0x58] sm:$0xf] }
 0x162   : > { %10095 = vmatpush3.bf16.msra.mxu0 %v11457_v28  ;;  %10096 = vmatprep.mubr.msk.bf16.mxu0 %vm11362_vm1, %v11361_v1  ;;  %v9125_v43 = vcombine.low %v9122_v37, %v9123_v39  ;;  %v9129_v6 = vcombine.low %v9128_v3, %v9123_v39  ;;  %v3788_v37 = vor.u32 %v3787_v33, %v3783_v32  ;;  %v3792_v39 = vrot.slane %v3790_v34, 1 }
 0x163   : > { %10145 = vmatmul.mubr.msk.bf16.vlgmr.msra.gmra.mrb[12].mxu1 %vm251_vm3, %v11883_v42  ;;  %10100 = vmatprep.subr.bf16.mxu0 %v11361_v1  ;;  %v9159_v42 = vld [vmem:[%s11427_s22 + $0x64] sm:$0xf] }
 0x164   : > { %10149 = vmatpush3.bf16.msra.mxu1 %v11457_v28  ;;  %10150 = vmatprep.mubr.msk.bf16.mxu1 %vm11362_vm1, %v11361_v1  ;;  %v9161_v44 = vcombine.low %v9158_v40, %v9159_v42  ;;  %v3606_v47 = vshll.u32 %v9125_v43, 16  ;;  %v3604_v54 = vshrl.u32 %v9125_v43, 16  ;;  %v9165_v7 = vcombine.low %v9164_v5, %v9159_v42 }
 0x165   : > { %10154 = vmatprep.subr.bf16.mxu1 %v11361_v1  ;;  %v3665_v8 = vrot.slane %v9129_v6, 1  ;;  %v3793_v43 = vsel %vm238_vm2, %v3788_v37, %v3792_v39 }
 0x166   : > { %v4125_v52 = vshll.u32 %v9161_v44, 16  ;;  %v3608_v55 = vrot.slane %v3606_v47, 1  ;;  %v4123_v57 = vshrl.u32 %v9161_v44, 16  ;;  %v4184_v10 = vrot.slane %v9165_v7, 1  ;;  %v9141_v44 = vld [vmem:[%s11427_s22 + $0x60] sm:$0xe] }
 0x167   : > { %v3667_v12 = vsel %vm350_vm4, %v3665_v8, %v3666_v9 }
 0x168   : > { %v4127_v58 = vrot.slane %v4125_v52, 1  ;;  %v3609_v60 = vor.u32 %v3608_v55, %v3604_v54  ;;  %v4186_v13 = vsel %vm350_vm4, %v4184_v10, %v4185_v11  ;;  %v12038_v52 = vld [vmem:[%s11427_s22 + $0x70] sm:$0xf]  ;;  %v9142_v54 = vcombine.low %v9141_v44, %v9136_v15  ;;  %v9223_v44 = vld [vmem:[%s11427_s22 + $0x6c] sm:$0xe] }
 0x16a   : > { %v4128_v62 = vor.u32 %v4127_v58, %v4123_v57  ;;  %v3614_v0 = vsel %vm238_vm2, %v3609_v60, %v3613_v61  ;;  %v12052_v57 = vcombine.low %v9216_v51, %v12038_v52  ;;  %v3844_v58 = vrot.slane %v9142_v54, 1  ;;  %v12056_v60 = vld [vmem:[%s11427_s22 + $0x68] ss:$0 sps:$4 sm:$0x11]  }
 0x16b   : > { %v4433_v7 = vshll.u32 %v12056_v60, 16 }
 0x16c   : > { %v4133_v4 = vsel %vm238_vm2, %v4128_v62, %v4132_v63  ;;  %v4364_v63 = vrot.slane %v11246_v29, 1  ;;  %v4947_v3 = vshll.u32 %v12052_v57, 16  ;;  %v4945_v9 = vshrl.u32 %v12052_v57, 16 }
 0x16d   : > { %10097 = vmatmul.mubr.msk.bf16.vlgmr.msra.gmra.mrb[12].mxu0 %vm251_vm3, %v3492_v36  ;;  %v4306_v36 = vrot.slane %v4304_v30, 1 }
 0x16e   : > { %10101 = vmatpush3.bf16.msra.mxu0 %v11478_v41  ;;  %10102 = vmatprep.mubr.msk.bf16.mxu0 %vm11362_vm1, %v11361_v1  ;;  %v4949_v10 = vrot.slane %v4947_v3, 1  ;;  %v11256_v3 = vld [vmem:[%s11427_s22 + $0x78] sm:$0xff]  }
 0x16f   : > { %10151 = vmatmul.mubr.msk.bf16.vlgmr.msra.gmra.mrb[12].mxu1 %vm251_vm3, %v4011_v38  ;;  %10106 = vmatprep.subr.bf16.mxu0 %v11361_v1  ;;  %v4309_v38 = vshll.u32 %v11246_v29, 16  ;;  %v4307_v40 = vor.u32 %v4306_v36, %v4302_v35 }
 0x170   : > { %10155 = vmatpush3.bf16.msra.mxu1 %v11478_v41  ;;  %10156 = vmatprep.mubr.msk.bf16.mxu1 %vm11362_vm1, %v11361_v1  ;;  %v4950_v15 = vor.u32 %v4949_v10, %v4945_v9 }
 0x171   : > { %10160 = vmatprep.subr.bf16.mxu1 %v11361_v1  ;;  %v4311_v42 = vrot.slane %v4309_v38, 1 }
 0x173   : > { %v4312_v47 = vsel %vm238_vm2, %v4307_v40, %v4311_v42 }
 0x179   : > { %10103 = vmatmul.mubr.msk.bf16.vlgmr.msra.gmra.mrb[12].mxu0 %vm251_vm3, %v11233_v45  ;;  %v9180_v45 = vld [vmem:[%s11427_s22 + $0x60] sm:$0xf] }
 0x17a   : > { %10107 = vmatpush3.bf16.msra.mxu0 %v11500_v50  ;;  %10108 = vmatprep.mubr.msk.bf16.mxu0 %vm11362_vm1, %v11361_v1  ;;  %v12044_v55 = vcombine.low %v9180_v45, %v12031_v46 }
 0x17b   : > { %10157 = vmatmul.mubr.msk.bf16.vlgmr.msra.gmra.mrb[12].mxu1 %vm251_vm3, %v11234_v49  ;;  %10112 = vmatprep.subr.bf16.mxu0 %v11361_v1  ;;  %v9177_v49 = vld [vmem:[%s11427_s22 + $0x6c] sm:$0xe] }
 0x17c   : > { %10161 = vmatpush3.bf16.msra.mxu1 %v11500_v50  ;;  %10162 = vmatprep.mubr.msk.bf16.mxu1 %vm11362_vm1, %v11361_v1  ;;  %v9178_v56 = vcombine.low %v9177_v49, %v9172_v18  ;;  %v4428_v61 = vshll.u32 %v12044_v55, 16  ;;  %v4426_v5 = vshrl.u32 %v12044_v55, 16 }
 0x17d   : > { %10166 = vmatprep.subr.bf16.mxu1 %v11361_v1 }
 0x17e   : > { %v4363_v62 = vrot.slane %v9178_v56, 1  ;;  %v4430_v6 = vrot.slane %v4428_v61, 1 }
 0x180   : > { %v4365_v8 = vsel %vm350_vm4, %v4363_v62, %v4364_v63  ;;  %v11255_v62 = vld [vmem:[%s11427_s22 + $0x6c] sm:$0xff]   ;;  %v11258_v63 = vld [vmem:[%s11427_s22 + $0x74] ss:$0 sps:$4 sm:$0x11]  }
 0x185   : > { %10109 = vmatmul.mubr.msk.bf16.vlgmr.msra.gmra.mrb[12].mxu0 %vm251_vm3, %v3614_v0  ;;  %v12060_v0 = vld [vmem:[%s11427_s22 + $0x74] ss:$0 sps:$4 sm:$0x11]  }
 0x186   : > { %10113 = vmatpush3.bf16.msra.mxu0 %v11505_v53  ;;  %10114 = vmatprep.mubr.msk.bf16.mxu0 %vm11362_vm1, %v11361_v1  ;;  %v4952_v11 = vshll.u32 %v12060_v0, 16  ;;  %v5048_v54 = vrot.slane %v12060_v0, 1 }
 0x187   : > { %10163 = vmatmul.mubr.msk.bf16.vlgmr.msra.gmra.mrb[12].mxu1 %vm251_vm3, %v4133_v4  ;;  %10118 = vmatprep.subr.bf16.mxu0 %v11361_v1  ;;  %v3846_v4 = vsel %vm350_vm4, %v3844_v58, %v3845_v59  ;;  %v9230_v58 = vld [vmem:[%s11427_s22 + $0x78] sm:$0xf]  ;;  %v9231_v59 = vld [vmem:[%s11427_s22 + $0x7c] sm:$0xf] }
 0x188   : > { %10167 = vmatpush3.bf16.msra.mxu1 %v11505_v53  ;;  %10168 = vmatprep.mubr.msk.bf16.mxu1 %vm11362_vm1, %v11361_v1  ;;  %v4954_v16 = vrot.slane %v4952_v11, 1  ;;  %v9233_v61 = vcombine.low %v9230_v58, %v9231_v59 }
 0x189   : > { %10172 = vmatprep.subr.bf16.mxu1 %v11361_v1 }
 0x18a   : > { %v5161_v9 = vshrl.u32 %v9233_v61, 16 }
 0x191   : > { %10115 = vmatmul.mubr.msk.bf16.vlgmr.msra.gmra.mrb[12].mxu0 %vm251_vm3, %v3667_v12  ;;  %v4431_v12 = vor.u32 %v4430_v6, %v4426_v5  ;;  %v5163_v5 = vshll.u32 %v9233_v61, 16  ;;  %v9213_v61 = vld [vmem:[%s11427_s22 + $0x78] sm:$0xe] }
 0x192   : > { %10119 = vmatpush3.bf16.msra.mxu0 %v11538_v17  ;;  %10120 = vmatprep.mubr.msk.bf16.mxu0 %vm11362_vm1, %v11361_v1 }
 0x193   : > { %10169 = vmatmul.mubr.msk.bf16.vlgmr.msra.gmra.mrb[12].mxu1 %vm251_vm3, %v4186_v13  ;;  %10124 = vmatprep.subr.bf16.mxu0 %v11361_v1  ;;  %v4435_v13 = vrot.slane %v4433_v7, 1  ;;  %v5165_v10 = vrot.slane %v5163_v5, 1  ;;  %v12204_v5 = vld [vmem:[%s11427_s22 + $0x88] sm:$0xf] }
 0x194   : > { %10173 = vmatpush3.bf16.msra.mxu1 %v11538_v17  ;;  %10174 = vmatprep.mubr.msk.bf16.mxu1 %vm11362_vm1, %v11361_v1 }
 0x195   : > { %10178 = vmatprep.subr.bf16.mxu1 %v11361_v1  ;;  %v4436_v26 = vsel %vm238_vm2, %v4431_v12, %v4435_v13 }
 0x19d   : > { %10121 = vmatmul.mubr.msk.bf16.vlgmr.msra.gmra.mrb[12].mxu0 %vm251_vm3, %v11241_v23 }
 0x19e   : > { %10125 = vmatpush3.bf16.msra.mxu0 %v11561_v31  ;;  %10126 = vmatprep.mubr.msk.bf16.mxu0 %vm11362_vm1, %v11361_v1 }
 0x19f   : > { %10175 = vmatmul.mubr.msk.bf16.vlgmr.msra.gmra.mrb[12].mxu1 %vm251_vm3, %v11242_v27  ;;  %10130 = vmatprep.subr.bf16.mxu0 %v11361_v1 }
 0x1a0   : > { %10179 = vmatpush3.bf16.msra.mxu1 %v11561_v31  ;;  %10180 = vmatprep.mubr.msk.bf16.mxu1 %vm11362_vm1, %v11361_v1 }
 0x1a1   : > { %10184 = vmatprep.subr.bf16.mxu1 %v11361_v1 }
 0x1a9   : > { %10127 = vmatmul.mubr.msk.bf16.vlgmr.msra.gmra.mrb[12].mxu0 %vm251_vm3, %v3793_v43  ;;  %v9187_v43 = vld [vmem:[%s11427_s22 + $0x60] sm:$0xe] }
 0x1aa   : > { %10131 = vmatpush3.bf16.msra.mxu0 %v11580_v48  ;;  %10132 = vmatprep.mubr.msk.bf16.mxu0 %vm11362_vm1, %v11361_v1  ;;  %v9188_v45 = vcombine.low %v9187_v43, %v12031_v46  ;;  %v4529_v46 = vrot.slane %v12056_v60, 1 }
 0x1ab   : > { %10181 = vmatmul.mubr.msk.bf16.vlgmr.msra.gmra.mrb[12].mxu1 %vm251_vm3, %v4312_v47  ;;  %10190 = vmatprep.subr.bf16.mxu0 %v11361_v1  ;;  %v9224_v47 = vcombine.low %v9223_v44, %v12038_v52  ;;  %v9194_v52 = vld [vmem:[%s11427_s22 + $0x6c] sm:$0xf]  ;;  %v11264_v44 = vld [vmem:[%s11427_s22 + $0x84] sm:$0xff]  }
 0x1ac   : > { %10185 = vmatpush3.bf16.msra.mxu1 %v11580_v48  ;;  %10186 = vmatprep.mubr.msk.bf16.mxu1 %vm11362_vm1, %v11361_v1  ;;  %v4528_v49 = vrot.slane %v9188_v45, 1  ;;  %v11268_v45 = vld [vmem:[%s11427_s22 + $0x8c] ss:$0 sps:$4 sm:$0x11]  }
 0x1ad   : > { %10244 = vmatprep.subr.bf16.mxu1 %v11361_v1  ;;  %v5047_v51 = vrot.slane %v9224_v47, 1 }
 0x1af   : > { %v5049_v56 = vsel %vm350_vm4, %v5047_v51, %v5048_v54 }
 0x1b5   : > { %10133 = vmatmul.mubr.msk.bf16.vlgmr.msra.gmra.mrb[12].mxu0 %vm251_vm3, %v3846_v4  ;;  %v11260_v4 = vld [vmem:[%s11427_s22 + $0x80] ss:$0 sps:$4 sm:$0x11]  }
 0x1b6   : > { %10191 = vmatpush3.bf16.msra.mxu0 %v11409_v2  ;;  %10192 = vmatprep.mubr.msk.bf16.mxu0 %vm11362_vm1, %v11361_v1  ;;  %v5168_v11 = vshll.u32 %v11260_v4, 16 }
 0x1b7   : > { %10187 = vmatmul.mubr.msk.bf16.vlgmr.msra.gmra.mrb[12].mxu1 %vm251_vm3, %v4365_v8  ;;  %10196 = vmatprep.subr.bf16.mxu0 %v11361_v1  ;;  %v4649_v8 = vshll.u32 %v11258_v63, 16 }
 0x1b8   : > { %v1808_v14 = vpop.f32.mrb[4].mxu0  ;;  %10245 = vmatpush3.bf16.msra.mxu1 %v11409_v2  ;;  %10246 = vmatprep.mubr.msk.bf16.mxu1 %vm11362_vm1, %v11361_v1 }
 0x1b9   : > { %1817 = vst [vmem:[%s11905_s20 + $0x20] sm:$0xff] %v1808_v14  ;;  %v8601_v18 = vadd.f32 %v11925_v21, %v1808_v14  ;;  %v8639_v19 = vmul.f32 %v1808_v14, %v1808_v14  ;;  %v9918_v20 = vpop.f32.mrb[5].mxu0  ;;  %10250 = vmatprep.subr.bf16.mxu1 %v11361_v1  ;;  %v4955_v21 = vsel %vm238_vm2, %v4950_v15, %v4954_v16  ;;  %v4651_v13 = vrot.slane %v4649_v8, 1 }
 0x1ba   : > { %v2327_v23 = vpop.f32.mrb[4].mxu1  ;;  %v1811_v24 = vpop.f32.mrb[6].mxu0  ;;  %v5166_v14 = vor.u32 %v5165_v10, %v5161_v9  ;;  %v5170_v15 = vrot.slane %v5168_v11, 1  ;;  %v9236_v20 = vld [vmem:[%s11427_s22 + $0x78] sm:$0xe] }
 0x1bb   : > { %v8670_v27 = vadd.f32 %v11932_v25, %v8639_v19  ;;  %2336 = vst [vmem:[%s11905_s20 + $0x30] sm:$0xff] %v2327_v23  ;;  %v9972_v29 = vpop.f32.mrb[5].mxu1  ;;  %1818 = vst [vmem:[%s11905_s20 + $0x28] sm:$0xff] %v1811_v24  ;;  %v8602_v30 = vadd.f32 %v8601_v18, %v1811_v24  ;;  %v8640_v32 = vmul.f32 %v1811_v24, %v1811_v24  ;;  %v9919_v33 = vpop.f32.mrb[7].mxu0  ;;  %v9200_v18 = vld [vmem:[%s11427_s22 + $0x6c] sm:$0xe] }
 0x1bc   : > { %v2330_v34 = vpop.f32.mrb[6].mxu1  ;;  %v8641_v35 = vmul.f32 %v2327_v23, %v2327_v23  ;;  %v5171_v19 = vsel %vm238_vm2, %v5166_v14, %v5170_v15  ;;  %v9237_v24 = vcombine.low %v9236_v20, %v9231_v59  ;;  %v5402_v15 = vrot.slane %v11268_v45, 1 }
 0x1bd   : > { %v8671_v36 = vadd.f32 %v8670_v27, %v8640_v32  ;;  %2337 = vst [vmem:[%s11905_s20 + $0x38] sm:$0xff] %v2330_v34  ;;  %v8603_v38 = vadd.f32 %v8602_v30, %v2327_v23  ;;  %v9973_v37 = vpop.f32.mrb[7].mxu1  ;;  %10193 = vmatmul.mubr.msk.bf16.vlgmr.msra.gmra.mrb[16].mxu0 %vm251_vm3, %v4436_v26  ;;  %v8642_v39 = vmul.f32 %v2330_v34, %v2330_v34  ;;  %v4704_v27 = vrot.slane %v11258_v63, 1  ;;  %v12197_v63 = vld [vmem:[%s11427_s22 + $0x7c] sm:$0xf] }
 0x1be   : > { %10197 = vmatpush3.bf16.msra.mxu0 %v11439_v22  ;;  %10198 = vmatprep.mubr.msk.bf16.mxu0 %vm11362_vm1, %v11361_v1  ;;  %v5222_v29 = vrot.slane %v9237_v24, 1  ;;  %v5223_v30 = vrot.slane %v11260_v4, 1  ;;  %v9288_v4 = vld [vmem:[%s11427_s22 + $0x84] sm:$0xf] }
 0x1bf   : > { %v12091_v25 = vadd.f32 %v8603_v38, %v2330_v34  ;;  %v8672_v40 = vadd.f32 %v8671_v36, %v8641_v35  ;;  %10247 = vmatmul.mubr.msk.bf16.vlgmr.msra.gmra.mrb[16].mxu1 %vm251_vm3, %v4955_v21  ;;  %10202 = vmatprep.subr.bf16.mxu0 %v11361_v1  ;;  %v9207_v34 = vld [vmem:[%s11427_s22 + $0x78] sm:$0xf]  ;;  %v9208_v21 = vld [vmem:[%s11427_s22 + $0x7c] sm:$0xf]  ;;  %v9243_v35 = vld [vmem:[%s11427_s22 + $0x84] sm:$0xf]  ;;  %v12218_v9 = vcombine.low %v9288_v4, %v12204_v5 }
 0x1c0   : > { %10251 = vmatpush3.bf16.msra.mxu1 %v11439_v22  ;;  %10252 = vmatprep.mubr.msk.bf16.mxu1 %vm11362_vm1, %v11361_v1  ;;  %v5224_v33 = vsel %vm350_vm4, %v5222_v29, %v5223_v30  ;;  %v9244_v36 = vld [vmem:[%s11427_s22 + $0x88] sm:$0xf]  ;;  %v9210_v38 = vcombine.low %v9207_v34, %v9208_v21 }
 0x1c1   : > { %v12098_v42 = vadd.f32 %v8672_v40, %v8642_v39  ;;  %10256 = vmatprep.subr.bf16.mxu1 %v11361_v1  ;;  %v9246_v37 = vcombine.low %v9243_v35, %v9244_v36  ;;  %v11263_v39 = vld [vmem:[%s11427_s22 + $0x78] sm:$0xff]   ;;  %v11266_v40 = vld [vmem:[%s11427_s22 + $0x80] ss:$0 sps:$4 sm:$0x11]  }
 0x1c2   : > { %v4823_v43 = vshll.u32 %v9210_v38, 16  ;;  %v4828_v51 = vshll.u32 %v11266_v40, 16  ;;  %v4883_v11 = vrot.slane %v11266_v40, 1 }
 0x1c3   : > { %v5342_v47 = vshll.u32 %v9246_v37, 16  ;;  %v5340_v54 = vshrl.u32 %v9246_v37, 16 }
 0x1c9   : > { %10199 = vmatmul.mubr.msk.bf16.vlgmr.msra.gmra.mrb[16].mxu0 %vm251_vm3, %v12044_v55  ;;  %v4530_v55 = vsel %vm350_vm4, %v4528_v49, %v4529_v46  ;;  %v4821_v49 = vshrl.u32 %v9210_v38, 16  ;;  %v4825_v46 = vrot.slane %v4823_v43, 1 }
 0x1ca   : > { %10203 = vmatpush3.bf16.msra.mxu0 %v11457_v28  ;;  %10204 = vmatprep.mubr.msk.bf16.mxu0 %vm11362_vm1, %v11361_v1 }
 0x1cb   : > { %10253 = vmatmul.mubr.msk.bf16.vlgmr.msra.gmra.mrb[16].mxu1 %vm251_vm3, %v12052_v57  ;;  %10208 = vmatprep.subr.bf16.mxu0 %v11361_v1  ;;  %v9195_v57 = vld [vmem:[%s11427_s22 + $0x70] sm:$0xf] }
 0x1cc   : > { %10257 = vmatpush3.bf16.msra.mxu1 %v11457_v28  ;;  %10258 = vmatprep.mubr.msk.bf16.mxu1 %vm11362_vm1, %v11361_v1  ;;  %v9197_v60 = vcombine.low %v9194_v52, %v9195_v57  ;;  %v9201_v23 = vcombine.low %v9200_v18, %v9195_v57  ;;  %v4826_v52 = vor.u32 %v4825_v46, %v4821_v49  ;;  %v4830_v57 = vrot.slane %v4828_v51, 1 }
 0x1cd   : > { %10262 = vmatprep.subr.bf16.mxu1 %v11361_v1  ;;  %v5985_v18 = vshll.u32 %v12218_v9, 16 }
 0x1ce   : > { %v4644_v0 = vshll.u32 %v9197_v60, 16  ;;  %v4642_v6 = vshrl.u32 %v9197_v60, 16  ;;  %v4703_v26 = vrot.slane %v9201_v23, 1  ;;  %v4831_v60 = vsel %vm238_vm2, %v4826_v52, %v4830_v57 }
 0x1cf   : > { %v5987_v29 = vrot.slane %v5985_v18, 1  ;;  %v11278_v18 = vld [vmem:[%s11427_s22 + $0x90] sm:$0xff]  }
 0x1d0   : > { %v4646_v7 = vrot.slane %v4644_v0, 1  ;;  %v4705_v32 = vsel %vm350_vm4, %v4703_v26, %v4704_v27  ;;  %v5983_v27 = vshrl.u32 %v12218_v9, 16 }
 0x1d2   : > { %v4647_v12 = vor.u32 %v4646_v7, %v4642_v6  ;;  %v9214_v6 = vcombine.low %v9213_v61, %v9208_v21  ;;  %v5988_v21 = vor.u32 %v5987_v29, %v5983_v27  ;;  %v9295_v61 = vld [vmem:[%s11427_s22 + $0x84] sm:$0xe] }
 0x1d4   : > { %v4652_v16 = vsel %vm238_vm2, %v4647_v12, %v4651_v13  ;;  %v4882_v10 = vrot.slane %v9214_v6, 1  ;;  %v12222_v12 = vld [vmem:[%s11427_s22 + $0x80] ss:$0 sps:$4 sm:$0x11]  }
 0x1d5   : > { %10205 = vmatmul.mubr.msk.bf16.vlgmr.msra.gmra.mrb[16].mxu0 %vm251_vm3, %v4530_v55  ;;  %v5344_v55 = vrot.slane %v5342_v47, 1  ;;  %v5471_v24 = vshll.u32 %v12222_v12, 16 }
 0x1d6   : > { %10209 = vmatpush3.bf16.msra.mxu0 %v11478_v41  ;;  %10210 = vmatprep.mubr.msk.bf16.mxu0 %vm11362_vm1, %v11361_v1 }
 0x1d7   : > { %10259 = vmatmul.mubr.msk.bf16.vlgmr.msra.gmra.mrb[16].mxu1 %vm251_vm3, %v5049_v56  ;;  %10214 = vmatprep.subr.bf16.mxu0 %v11361_v1  ;;  %v5347_v56 = vshll.u32 %v11268_v45, 16  ;;  %v5345_v58 = vor.u32 %v5344_v55, %v5340_v54 }
 0x1d8   : > { %10263 = vmatpush3.bf16.msra.mxu1 %v11478_v41  ;;  %10264 = vmatprep.mubr.msk.bf16.mxu1 %vm11362_vm1, %v11361_v1 }
 0x1d9   : > { %10268 = vmatprep.subr.bf16.mxu1 %v11361_v1  ;;  %v5349_v59 = vrot.slane %v5347_v56, 1 }
 0x1db   : > { %v5350_v0 = vsel %vm238_vm2, %v5345_v58, %v5349_v59 }
 0x1e1   : > { %10211 = vmatmul.mubr.msk.bf16.vlgmr.msra.gmra.mrb[16].mxu0 %vm251_vm3, %v11255_v62  ;;  %v9252_v62 = vld [vmem:[%s11427_s22 + $0x78] sm:$0xf] }
 0x1e2   : > { %10215 = vmatpush3.bf16.msra.mxu0 %v11500_v50  ;;  %10216 = vmatprep.mubr.msk.bf16.mxu0 %vm11362_vm1, %v11361_v1  ;;  %v12210_v7 = vcombine.low %v9252_v62, %v12197_v63 }
 0x1e3   : > { %10265 = vmatmul.mubr.msk.bf16.vlgmr.msra.gmra.mrb[16].mxu1 %vm251_vm3, %v11256_v3  ;;  %10220 = vmatprep.subr.bf16.mxu0 %v11361_v1  ;;  %v9249_v3 = vld [vmem:[%s11427_s22 + $0x84] sm:$0xe] }
 0x1e4   : > { %10269 = vmatpush3.bf16.msra.mxu1 %v11500_v50  ;;  %10270 = vmatprep.mubr.msk.bf16.mxu1 %vm11362_vm1, %v11361_v1  ;;  %v9250_v8 = vcombine.low %v9249_v3, %v9244_v36  ;;  %v5466_v13 = vshll.u32 %v12210_v7, 16  ;;  %v5464_v20 = vshrl.u32 %v12210_v7, 16 }
 0x1e5   : > { %10274 = vmatprep.subr.bf16.mxu1 %v11361_v1 }
 0x1e6   : > { %v5401_v14 = vrot.slane %v9250_v8, 1  ;;  %v5468_v23 = vrot.slane %v5466_v13, 1 }
 0x1e8   : > { %v5403_v26 = vsel %vm350_vm4, %v5401_v14, %v5402_v15  ;;  %v11277_v14 = vld [vmem:[%s11427_s22 + $0x84] sm:$0xff]   ;;  %v11280_v15 = vld [vmem:[%s11427_s22 + $0x8c] ss:$0 sps:$4 sm:$0x11]  }
 0x1ed   : > { %10217 = vmatmul.mubr.msk.bf16.vlgmr.msra.gmra.mrb[16].mxu0 %vm251_vm3, %v4652_v16  ;;  %v12226_v16 = vld [vmem:[%s11427_s22 + $0x8c] ss:$0 sps:$4 sm:$0x11]  }
 0x1ee   : > { %10221 = vmatpush3.bf16.msra.mxu0 %v11505_v53  ;;  %10222 = vmatprep.mubr.msk.bf16.mxu0 %vm11362_vm1, %v11361_v1  ;;  %v5990_v30 = vshll.u32 %v12226_v16, 16  ;;  %v6086_v6 = vrot.slane %v12226_v16, 1 }
 0x1ef   : > { %10271 = vmatmul.mubr.msk.bf16.vlgmr.msra.gmra.mrb[16].mxu1 %vm251_vm3, %v5171_v19  ;;  %10226 = vmatprep.subr.bf16.mxu0 %v11361_v1  ;;  %v4884_v19 = vsel %vm350_vm4, %v4882_v10, %v4883_v11  ;;  %v9302_v10 = vld [vmem:[%s11427_s22 + $0x90] sm:$0xf]  ;;  %v9303_v11 = vld [vmem:[%s11427_s22 + $0x94] sm:$0xf] }
 0x1f0   : > { %10275 = vmatpush3.bf16.msra.mxu1 %v11505_v53  ;;  %10276 = vmatprep.mubr.msk.bf16.mxu1 %vm11362_vm1, %v11361_v1  ;;  %v5992_v35 = vrot.slane %v5990_v30, 1  ;;  %v9305_v13 = vcombine.low %v9302_v10, %v9303_v11 }
 0x1f1   : > { %10280 = vmatprep.subr.bf16.mxu1 %v11361_v1 }
 0x1f2   : > { %v6199_v27 = vshrl.u32 %v9305_v13, 16 }
 0x1f9   : > { %10223 = vmatmul.mubr.msk.bf16.vlgmr.msra.gmra.mrb[16].mxu0 %vm251_vm3, %v4705_v32  ;;  %v5469_v32 = vor.u32 %v5468_v23, %v5464_v20  ;;  %v6201_v20 = vshll.u32 %v9305_v13, 16  ;;  %v9285_v13 = vld [vmem:[%s11427_s22 + $0x90] sm:$0xe] }
 0x1fa   : > { %10227 = vmatpush3.bf16.msra.mxu0 %v11538_v17  ;;  %10228 = vmatprep.mubr.msk.bf16.mxu0 %vm11362_vm1, %v11361_v1 }
 0x1fb   : > { %10277 = vmatmul.mubr.msk.bf16.vlgmr.msra.gmra.mrb[16].mxu1 %vm251_vm3, %v5224_v33  ;;  %10232 = vmatprep.subr.bf16.mxu0 %v11361_v1  ;;  %v5473_v33 = vrot.slane %v5471_v24, 1  ;;  %v6203_v29 = vrot.slane %v6201_v20, 1  ;;  %v12370_v20 = vld [vmem:[%s11427_s22 + $0xa0] sm:$0xf] }
 0x1fc   : > { %10281 = vmatpush3.bf16.msra.mxu1 %v11538_v17  ;;  %10282 = vmatprep.mubr.msk.bf16.mxu1 %vm11362_vm1, %v11361_v1 }
 0x1fd   : > { %10286 = vmatprep.subr.bf16.mxu1 %v11361_v1  ;;  %v5474_v43 = vsel %vm238_vm2, %v5469_v32, %v5473_v33 }
 0x205   : > { %10229 = vmatmul.mubr.msk.bf16.vlgmr.msra.gmra.mrb[16].mxu0 %vm251_vm3, %v11263_v39 }
 0x206   : > { %10233 = vmatpush3.bf16.msra.mxu0 %v11561_v31  ;;  %10234 = vmatprep.mubr.msk.bf16.mxu0 %vm11362_vm1, %v11361_v1 }
 0x207   : > { %10283 = vmatmul.mubr.msk.bf16.vlgmr.msra.gmra.mrb[16].mxu1 %vm251_vm3, %v11264_v44  ;;  %10238 = vmatprep.subr.bf16.mxu0 %v11361_v1 }
 0x208   : > { %10287 = vmatpush3.bf16.msra.mxu1 %v11561_v31  ;;  %10288 = vmatprep.mubr.msk.bf16.mxu1 %vm11362_vm1, %v11361_v1 }
 0x209   : > { %10292 = vmatprep.subr.bf16.mxu1 %v11361_v1 }
 0x211   : > { %10235 = vmatmul.mubr.msk.bf16.vlgmr.msra.gmra.mrb[16].mxu0 %vm251_vm3, %v4831_v60  ;;  %v9259_v60 = vld [vmem:[%s11427_s22 + $0x78] sm:$0xe] }
 0x212   : > { %10239 = vmatpush3.bf16.msra.mxu0 %v11580_v48  ;;  %10240 = vmatprep.mubr.msk.bf16.mxu0 %vm11362_vm1, %v11361_v1  ;;  %v9260_v62 = vcombine.low %v9259_v60, %v12197_v63  ;;  %v5567_v63 = vrot.slane %v12222_v12, 1 }
 0x213   : > { %10289 = vmatmul.mubr.msk.bf16.vlgmr.msra.gmra.mrb[16].mxu1 %vm251_vm3, %v5350_v0  ;;  %10298 = vmatprep.subr.bf16.mxu0 %v11361_v1  ;;  %v9296_v0 = vcombine.low %v9295_v61, %v12204_v5  ;;  %v9266_v5 = vld [vmem:[%s11427_s22 + $0x84] sm:$0xf]  ;;  %v11286_v61 = vld [vmem:[%s11427_s22 + $0x9c] sm:$0xff]  }
 0x214   : > { %10293 = vmatpush3.bf16.msra.mxu1 %v11580_v48  ;;  %10294 = vmatprep.mubr.msk.bf16.mxu1 %vm11362_vm1, %v11361_v1  ;;  %v5566_v3 = vrot.slane %v9260_v62, 1  ;;  %v11290_v62 = vld [vmem:[%s11427_s22 + $0xa4] ss:$0 sps:$4 sm:$0x11]  }
 0x215   : > { %10352 = vmatprep.subr.bf16.mxu1 %v11361_v1  ;;  %v6085_v4 = vrot.slane %v9296_v0, 1 }
 0x217   : > { %v6087_v8 = vsel %vm350_vm4, %v6085_v4, %v6086_v6 }
 0x21d   : > { %10241 = vmatmul.mubr.msk.bf16.vlgmr.msra.gmra.mrb[16].mxu0 %vm251_vm3, %v4884_v19  ;;  %v11282_v19 = vld [vmem:[%s11427_s22 + $0x98] ss:$0 sps:$4 sm:$0x11]  }
 0x21e   : > { %10299 = vmatpush3.bf16.msra.mxu0 %v11409_v2  ;;  %10300 = vmatprep.mubr.msk.bf16.mxu0 %vm11362_vm1, %v11361_v1  ;;  %v6206_v30 = vshll.u32 %v11282_v19, 16 }
 0x21f   : > { %10295 = vmatmul.mubr.msk.bf16.vlgmr.msra.gmra.mrb[16].mxu1 %vm251_vm3, %v5403_v26  ;;  %10304 = vmatprep.subr.bf16.mxu0 %v11361_v1  ;;  %v5687_v26 = vshll.u32 %v11280_v15, 16 }
 0x220   : > { %v2846_v34 = vpop.f32.mrb[8].mxu0  ;;  %10353 = vmatpush3.bf16.msra.mxu1 %v11409_v2  ;;  %10354 = vmatprep.mubr.msk.bf16.mxu1 %vm11362_vm1, %v11361_v1 }
 0x221   : > { %2855 = vst [vmem:[%s11905_s20 + $0x40] sm:$0xff] %v2846_v34  ;;  %v8605_v36 = vadd.f32 %v12091_v25, %v2846_v34  ;;  %v8643_v38 = vmul.f32 %v2846_v34, %v2846_v34  ;;  %v10026_v37 = vpop.f32.mrb[9].mxu0  ;;  %10358 = vmatprep.subr.bf16.mxu1 %v11361_v1  ;;  %v5993_v25 = vsel %vm238_vm2, %v5988_v21, %v5992_v35  ;;  %v5689_v33 = vrot.slane %v5687_v26, 1 }
 0x222   : > { %v3365_v39 = vpop.f32.mrb[8].mxu1  ;;  %v2849_v40 = vpop.f32.mrb[10].mxu0  ;;  %v6204_v34 = vor.u32 %v6203_v29, %v6199_v27  ;;  %v6208_v21 = vrot.slane %v6206_v30, 1  ;;  %v9308_v37 = vld [vmem:[%s11427_s22 + $0x90] sm:$0xe] }
 0x223   : > { %v8674_v44 = vadd.f32 %v12098_v42, %v8643_v38  ;;  %3374 = vst [vmem:[%s11905_s20 + $0x50] sm:$0xff] %v3365_v39  ;;  %v10080_v45 = vpop.f32.mrb[9].mxu1  ;;  %2856 = vst [vmem:[%s11905_s20 + $0x48] sm:$0xff] %v2849_v40  ;;  %v8606_v47 = vadd.f32 %v8605_v36, %v2849_v40  ;;  %v8644_v49 = vmul.f32 %v2849_v40, %v2849_v40  ;;  %v10027_v46 = vpop.f32.mrb[11].mxu0  ;;  %v9272_v36 = vld [vmem:[%s11427_s22 + $0x84] sm:$0xe] }
 0x224   : > { %v3368_v51 = vpop.f32.mrb[10].mxu1  ;;  %v8645_v54 = vmul.f32 %v3365_v39, %v3365_v39  ;;  %v6209_v38 = vsel %vm238_vm2, %v6204_v34, %v6208_v21  ;;  %v9309_v40 = vcombine.low %v9308_v37, %v9303_v11  ;;  %v6440_v21 = vrot.slane %v11290_v62, 1 }
 0x225   : > { %v8675_v55 = vadd.f32 %v8674_v44, %v8644_v49  ;;  %3375 = vst [vmem:[%s11905_s20 + $0x58] sm:$0xff] %v3368_v51  ;;  %v8607_v56 = vadd.f32 %v8606_v47, %v3365_v39  ;;  %v10081_v52 = vpop.f32.mrb[11].mxu1  ;;  %10301 = vmatmul.mubr.msk.bf16.vlgmr.msra.gmra.mrb[20].mxu0 %vm251_vm3, %v5474_v43  ;;  %v8646_v57 = vmul.f32 %v3368_v51, %v3368_v51  ;;  %v5742_v44 = vrot.slane %v11280_v15, 1  ;;  %v12363_v15 = vld [vmem:[%s11427_s22 + $0x94] sm:$0xf] }
 0x226   : > { %10305 = vmatpush3.bf16.msra.mxu0 %v11439_v22  ;;  %10306 = vmatprep.mubr.msk.bf16.mxu0 %vm11362_vm1, %v11361_v1  ;;  %v6260_v45 = vrot.slane %v9309_v40, 1  ;;  %v6261_v47 = vrot.slane %v11282_v19, 1  ;;  %v9360_v19 = vld [vmem:[%s11427_s22 + $0x9c] sm:$0xf] }
 0x227   : > { %v12257_v42 = vadd.f32 %v8607_v56, %v3368_v51  ;;  %v8676_v58 = vadd.f32 %v8675_v55, %v8645_v54  ;;  %10355 = vmatmul.mubr.msk.bf16.vlgmr.msra.gmra.mrb[20].mxu1 %vm251_vm3, %v5993_v25  ;;  %10310 = vmatprep.subr.bf16.mxu0 %v11361_v1  ;;  %v9279_v51 = vld [vmem:[%s11427_s22 + $0x90] sm:$0xf]  ;;  %v9280_v25 = vld [vmem:[%s11427_s22 + $0x94] sm:$0xf]  ;;  %v9315_v54 = vld [vmem:[%s11427_s22 + $0x9c] sm:$0xf]  ;;  %v12384_v27 = vcombine.low %v9360_v19, %v12370_v20 }
 0x228   : > { %10359 = vmatpush3.bf16.msra.mxu1 %v11439_v22  ;;  %10360 = vmatprep.mubr.msk.bf16.mxu1 %vm11362_vm1, %v11361_v1  ;;  %v6262_v46 = vsel %vm350_vm4, %v6260_v45, %v6261_v47  ;;  %v9316_v55 = vld [vmem:[%s11427_s22 + $0xa0] sm:$0xf]  ;;  %v9282_v56 = vcombine.low %v9279_v51, %v9280_v25 }
 0x229   : > { %v12264_v59 = vadd.f32 %v8676_v58, %v8646_v57  ;;  %10364 = vmatprep.subr.bf16.mxu1 %v11361_v1  ;;  %v9318_v52 = vcombine.low %v9315_v54, %v9316_v55  ;;  %v11285_v57 = vld [vmem:[%s11427_s22 + $0x90] sm:$0xff]   ;;  %v11288_v58 = vld [vmem:[%s11427_s22 + $0x98] ss:$0 sps:$4 sm:$0x11]  }
 0x22a   : > { %v5861_v60 = vshll.u32 %v9282_v56, 16  ;;  %v5866_v4 = vshll.u32 %v11288_v58, 16  ;;  %v5921_v30 = vrot.slane %v11288_v58, 1 }
 0x22b   : > { %v6380_v0 = vshll.u32 %v9318_v52, 16  ;;  %v6378_v6 = vshrl.u32 %v9318_v52, 16 }
 0x231   : > { %10307 = vmatmul.mubr.msk.bf16.vlgmr.msra.gmra.mrb[20].mxu0 %vm251_vm3, %v12210_v7  ;;  %v5568_v7 = vsel %vm350_vm4, %v5566_v3, %v5567_v63  ;;  %v5859_v3 = vshrl.u32 %v9282_v56, 16  ;;  %v5863_v63 = vrot.slane %v5861_v60, 1 }
 0x232   : > { %10311 = vmatpush3.bf16.msra.mxu0 %v11457_v28  ;;  %10312 = vmatprep.mubr.msk.bf16.mxu0 %vm11362_vm1, %v11361_v1 }
 0x233   : > { %10361 = vmatmul.mubr.msk.bf16.vlgmr.msra.gmra.mrb[20].mxu1 %vm251_vm3, %v12218_v9  ;;  %10316 = vmatprep.subr.bf16.mxu0 %v11361_v1  ;;  %v9267_v9 = vld [vmem:[%s11427_s22 + $0x88] sm:$0xf] }
 0x234   : > { %10365 = vmatpush3.bf16.msra.mxu1 %v11457_v28  ;;  %10366 = vmatprep.mubr.msk.bf16.mxu1 %vm11362_vm1, %v11361_v1  ;;  %v9269_v12 = vcombine.low %v9266_v5, %v9267_v9  ;;  %v9273_v39 = vcombine.low %v9272_v36, %v9267_v9  ;;  %v5864_v5 = vor.u32 %v5863_v63, %v5859_v3  ;;  %v5868_v9 = vrot.slane %v5866_v4, 1 }
 0x235   : > { %10370 = vmatprep.subr.bf16.mxu1 %v11361_v1  ;;  %v7023_v36 = vshll.u32 %v12384_v27, 16 }
 0x236   : > { %v5682_v16 = vshll.u32 %v9269_v12, 16  ;;  %v5680_v23 = vshrl.u32 %v9269_v12, 16  ;;  %v5741_v43 = vrot.slane %v9273_v39, 1  ;;  %v5869_v12 = vsel %vm238_vm2, %v5864_v5, %v5868_v9 }
 0x237   : > { %v7025_v45 = vrot.slane %v7023_v36, 1  ;;  %v11300_v36 = vld [vmem:[%s11427_s22 + $0xa8] sm:$0xff]  }
 0x238   : > { %v5684_v24 = vrot.slane %v5682_v16, 1  ;;  %v5743_v49 = vsel %vm350_vm4, %v5741_v43, %v5742_v44  ;;  %v7021_v44 = vshrl.u32 %v12384_v27, 16 }
 0x23a   : > { %v5685_v32 = vor.u32 %v5684_v24, %v5680_v23  ;;  %v9286_v23 = vcombine.low %v9285_v13, %v9280_v25  ;;  %v7026_v25 = vor.u32 %v7025_v45, %v7021_v44  ;;  %v9367_v13 = vld [vmem:[%s11427_s22 + $0x9c] sm:$0xe] }
 0x23c   : > { %v5690_v35 = vsel %vm238_vm2, %v5685_v32, %v5689_v33  ;;  %v5920_v29 = vrot.slane %v9286_v23, 1  ;;  %v12388_v32 = vld [vmem:[%s11427_s22 + $0x98] ss:$0 sps:$4 sm:$0x11]  }
 0x23d   : > { %10313 = vmatmul.mubr.msk.bf16.vlgmr.msra.gmra.mrb[20].mxu0 %vm251_vm3, %v5568_v7  ;;  %v6382_v7 = vrot.slane %v6380_v0, 1  ;;  %v6509_v40 = vshll.u32 %v12388_v32, 16 }
 0x23e   : > { %10317 = vmatpush3.bf16.msra.mxu0 %v11478_v41  ;;  %10318 = vmatprep.mubr.msk.bf16.mxu0 %vm11362_vm1, %v11361_v1 }
 0x23f   : > { %10367 = vmatmul.mubr.msk.bf16.vlgmr.msra.gmra.mrb[20].mxu1 %vm251_vm3, %v6087_v8  ;;  %10322 = vmatprep.subr.bf16.mxu0 %v11361_v1  ;;  %v6385_v8 = vshll.u32 %v11290_v62, 16  ;;  %v6383_v10 = vor.u32 %v6382_v7, %v6378_v6 }
 0x240   : > { %10371 = vmatpush3.bf16.msra.mxu1 %v11478_v41  ;;  %10372 = vmatprep.mubr.msk.bf16.mxu1 %vm11362_vm1, %v11361_v1 }
 0x241   : > { %10376 = vmatprep.subr.bf16.mxu1 %v11361_v1  ;;  %v6387_v11 = vrot.slane %v6385_v8, 1 }
 0x243   : > { %v6388_v16 = vsel %vm238_vm2, %v6383_v10, %v6387_v11 }
 0x249   : > { %10319 = vmatmul.mubr.msk.bf16.vlgmr.msra.gmra.mrb[20].mxu0 %vm251_vm3, %v11277_v14  ;;  %v9324_v14 = vld [vmem:[%s11427_s22 + $0x90] sm:$0xf] }
 0x24a   : > { %10323 = vmatpush3.bf16.msra.mxu0 %v11500_v50  ;;  %10324 = vmatprep.mubr.msk.bf16.mxu0 %vm11362_vm1, %v11361_v1  ;;  %v12376_v24 = vcombine.low %v9324_v14, %v12363_v15 }
 0x24b   : > { %10373 = vmatmul.mubr.msk.bf16.vlgmr.msra.gmra.mrb[20].mxu1 %vm251_vm3, %v11278_v18  ;;  %10328 = vmatprep.subr.bf16.mxu0 %v11361_v1  ;;  %v9321_v18 = vld [vmem:[%s11427_s22 + $0x9c] sm:$0xe] }
 0x24c   : > { %10377 = vmatpush3.bf16.msra.mxu1 %v11500_v50  ;;  %10378 = vmatprep.mubr.msk.bf16.mxu1 %vm11362_vm1, %v11361_v1  ;;  %v9322_v26 = vcombine.low %v9321_v18, %v9316_v55  ;;  %v6504_v33 = vshll.u32 %v12376_v24, 16  ;;  %v6502_v37 = vshrl.u32 %v12376_v24, 16 }
 0x24d   : > { %10382 = vmatprep.subr.bf16.mxu1 %v11361_v1 }
 0x24e   : > { %v6439_v34 = vrot.slane %v9322_v26, 1  ;;  %v6506_v39 = vrot.slane %v6504_v33, 1 }
 0x250   : > { %v6441_v43 = vsel %vm350_vm4, %v6439_v34, %v6440_v21  ;;  %v11299_v34 = vld [vmem:[%s11427_s22 + $0x9c] sm:$0xff]   ;;  %v11302_v21 = vld [vmem:[%s11427_s22 + $0xa4] ss:$0 sps:$4 sm:$0x11]  }
 0x255   : > { %10325 = vmatmul.mubr.msk.bf16.vlgmr.msra.gmra.mrb[20].mxu0 %vm251_vm3, %v5690_v35  ;;  %v12392_v35 = vld [vmem:[%s11427_s22 + $0xa4] ss:$0 sps:$4 sm:$0x11]  }
 0x256   : > { %10329 = vmatpush3.bf16.msra.mxu0 %v11505_v53  ;;  %10330 = vmatprep.mubr.msk.bf16.mxu0 %vm11362_vm1, %v11361_v1  ;;  %v7028_v47 = vshll.u32 %v12392_v35, 16  ;;  %v7124_v23 = vrot.slane %v12392_v35, 1 }
 0x257   : > { %10379 = vmatmul.mubr.msk.bf16.vlgmr.msra.gmra.mrb[20].mxu1 %vm251_vm3, %v6209_v38  ;;  %10334 = vmatprep.subr.bf16.mxu0 %v11361_v1  ;;  %v5922_v38 = vsel %vm350_vm4, %v5920_v29, %v5921_v30  ;;  %v9374_v29 = vld [vmem:[%s11427_s22 + $0xa8] sm:$0xf]  ;;  %v9375_v30 = vld [vmem:[%s11427_s22 + $0xac] sm:$0xf] }
 0x258   : > { %10383 = vmatpush3.bf16.msra.mxu1 %v11505_v53  ;;  %10384 = vmatprep.mubr.msk.bf16.mxu1 %vm11362_vm1, %v11361_v1  ;;  %v7030_v54 = vrot.slane %v7028_v47, 1  ;;  %v9377_v33 = vcombine.low %v9374_v29, %v9375_v30 }
 0x259   : > { %10388 = vmatprep.subr.bf16.mxu1 %v11361_v1 }
 0x25a   : > { %v7237_v44 = vshrl.u32 %v9377_v33, 16 }
 0x261   : > { %10331 = vmatmul.mubr.msk.bf16.vlgmr.msra.gmra.mrb[20].mxu0 %vm251_vm3, %v5743_v49  ;;  %v6507_v49 = vor.u32 %v6506_v39, %v6502_v37  ;;  %v7239_v37 = vshll.u32 %v9377_v33, 16  ;;  %v9357_v33 = vld [vmem:[%s11427_s22 + $0xa8] sm:$0xe] }
 0x262   : > { %10335 = vmatpush3.bf16.msra.mxu0 %v11538_v17  ;;  %10336 = vmatprep.mubr.msk.bf16.mxu0 %vm11362_vm1, %v11361_v1 }
 0x263   : > { %10385 = vmatmul.mubr.msk.bf16.vlgmr.msra.gmra.mrb[20].mxu1 %vm251_vm3, %v6262_v46  ;;  %10340 = vmatprep.subr.bf16.mxu0 %v11361_v1  ;;  %v6511_v46 = vrot.slane %v6509_v40, 1  ;;  %v7241_v45 = vrot.slane %v7239_v37, 1  ;;  %v12536_v37 = vld [vmem:[%s11427_s22 + $0xb8] sm:$0xf] }
 0x264   : > { %10389 = vmatpush3.bf16.msra.mxu1 %v11538_v17  ;;  %10390 = vmatprep.mubr.msk.bf16.mxu1 %vm11362_vm1, %v11361_v1 }
 0x265   : > { %10394 = vmatprep.subr.bf16.mxu1 %v11361_v1  ;;  %v6512_v60 = vsel %vm238_vm2, %v6507_v49, %v6511_v46 }
 0x26d   : > { %10337 = vmatmul.mubr.msk.bf16.vlgmr.msra.gmra.mrb[20].mxu0 %vm251_vm3, %v11285_v57 }
 0x26e   : > { %10341 = vmatpush3.bf16.msra.mxu0 %v11561_v31  ;;  %10342 = vmatprep.mubr.msk.bf16.mxu0 %vm11362_vm1, %v11361_v1 }
 0x26f   : > { %10391 = vmatmul.mubr.msk.bf16.vlgmr.msra.gmra.mrb[20].mxu1 %vm251_vm3, %v11286_v61  ;;  %10346 = vmatprep.subr.bf16.mxu0 %v11361_v1 }
 0x270   : > { %10395 = vmatpush3.bf16.msra.mxu1 %v11561_v31  ;;  %10396 = vmatprep.mubr.msk.bf16.mxu1 %vm11362_vm1, %v11361_v1 }
 0x271   : > { %10400 = vmatprep.subr.bf16.mxu1 %v11361_v1 }
 0x279   : > { %10343 = vmatmul.mubr.msk.bf16.vlgmr.msra.gmra.mrb[20].mxu0 %vm251_vm3, %v5869_v12  ;;  %v9331_v12 = vld [vmem:[%s11427_s22 + $0x90] sm:$0xe] }
 0x27a   : > { %10347 = vmatpush3.bf16.msra.mxu0 %v11580_v48  ;;  %10348 = vmatprep.mubr.msk.bf16.mxu0 %vm11362_vm1, %v11361_v1  ;;  %v9332_v14 = vcombine.low %v9331_v12, %v12363_v15  ;;  %v6605_v15 = vrot.slane %v12388_v32, 1 }
 0x27b   : > { %10397 = vmatmul.mubr.msk.bf16.vlgmr.msra.gmra.mrb[20].mxu1 %vm251_vm3, %v6388_v16  ;;  %10406 = vmatprep.subr.bf16.mxu0 %v11361_v1  ;;  %v9368_v16 = vcombine.low %v9367_v13, %v12370_v20  ;;  %v9338_v20 = vld [vmem:[%s11427_s22 + $0x9c] sm:$0xf]  ;;  %v11308_v13 = vld [vmem:[%s11427_s22 + $0xb4] sm:$0xff]  }
 0x27c   : > { %10401 = vmatpush3.bf16.msra.mxu1 %v11580_v48  ;;  %10402 = vmatprep.mubr.msk.bf16.mxu1 %vm11362_vm1, %v11361_v1  ;;  %v6604_v18 = vrot.slane %v9332_v14, 1  ;;  %v11312_v14 = vld [vmem:[%s11427_s22 + $0xbc] ss:$0 sps:$4 sm:$0x11]  }
 0x27d   : > { %10460 = vmatprep.subr.bf16.mxu1 %v11361_v1  ;;  %v7123_v19 = vrot.slane %v9368_v16, 1 }
 0x27f   : > { %v7125_v26 = vsel %vm350_vm4, %v7123_v19, %v7124_v23 }
 0x285   : > { %10349 = vmatmul.mubr.msk.bf16.vlgmr.msra.gmra.mrb[20].mxu0 %vm251_vm3, %v5922_v38  ;;  %v11304_v38 = vld [vmem:[%s11427_s22 + $0xb0] ss:$0 sps:$4 sm:$0x11]  }
 0x286   : > { %10407 = vmatpush3.bf16.msra.mxu0 %v11409_v2  ;;  %10408 = vmatprep.mubr.msk.bf16.mxu0 %vm11362_vm1, %v11361_v1  ;;  %v7244_v47 = vshll.u32 %v11304_v38, 16 }
 0x287   : > { %10403 = vmatmul.mubr.msk.bf16.vlgmr.msra.gmra.mrb[20].mxu1 %vm251_vm3, %v6441_v43  ;;  %10412 = vmatprep.subr.bf16.mxu0 %v11361_v1  ;;  %v6725_v43 = vshll.u32 %v11302_v21, 16 }
 0x288   : > { %v3884_v51 = vpop.f32.mrb[12].mxu0  ;;  %10461 = vmatpush3.bf16.msra.mxu1 %v11409_v2  ;;  %10462 = vmatprep.mubr.msk.bf16.mxu1 %vm11362_vm1, %v11361_v1 }
 0x289   : > { %3893 = vst [vmem:[%s11905_s20 + $0x60] sm:$0xff] %v3884_v51  ;;  %v8609_v55 = vadd.f32 %v12257_v42, %v3884_v51  ;;  %v8647_v56 = vmul.f32 %v3884_v51, %v3884_v51  ;;  %v10134_v52 = vpop.f32.mrb[13].mxu0  ;;  %10466 = vmatprep.subr.bf16.mxu1 %v11361_v1  ;;  %v7031_v42 = vsel %vm238_vm2, %v7026_v25, %v7030_v54  ;;  %v6727_v46 = vrot.slane %v6725_v43, 1 }
 0x28a   : > { %v4403_v57 = vpop.f32.mrb[12].mxu1  ;;  %v3887_v58 = vpop.f32.mrb[14].mxu0  ;;  %v7242_v51 = vor.u32 %v7241_v45, %v7237_v44  ;;  %v7246_v25 = vrot.slane %v7244_v47, 1  ;;  %v9380_v52 = vld [vmem:[%s11427_s22 + $0xa8] sm:$0xe] }
 0x28b   : > { %v8678_v61 = vadd.f32 %v12264_v59, %v8647_v56  ;;  %4412 = vst [vmem:[%s11905_s20 + $0x70] sm:$0xff] %v4403_v57  ;;  %v10188_v62 = vpop.f32.mrb[13].mxu1  ;;  %3894 = vst [vmem:[%s11905_s20 + $0x68] sm:$0xff] %v3887_v58  ;;  %v8610_v0 = vadd.f32 %v8609_v55, %v3887_v58  ;;  %v8648_v3 = vmul.f32 %v3887_v58, %v3887_v58  ;;  %v10135_v63 = vpop.f32.mrb[15].mxu0  ;;  %v9344_v55 = vld [vmem:[%s11427_s22 + $0x9c] sm:$0xe] }
 0x28c   : > { %v4406_v4 = vpop.f32.mrb[14].mxu1  ;;  %v8649_v6 = vmul.f32 %v4403_v57, %v4403_v57  ;;  %v7247_v56 = vsel %vm238_vm2, %v7242_v51, %v7246_v25  ;;  %v9381_v58 = vcombine.low %v9380_v52, %v9375_v30  ;;  %v7478_v25 = vrot.slane %v11312_v14, 1 }
 0x28d   : > { %v8679_v7 = vadd.f32 %v8678_v61, %v8648_v3  ;;  %4413 = vst [vmem:[%s11905_s20 + $0x78] sm:$0xff] %v4406_v4  ;;  %v8611_v8 = vadd.f32 %v8610_v0, %v4403_v57  ;;  %v10189_v5 = vpop.f32.mrb[15].mxu1  ;;  %10409 = vmatmul.mubr.msk.bf16.vlgmr.msra.gmra.mrb[24].mxu0 %vm251_vm3, %v6512_v60  ;;  %v8650_v9 = vmul.f32 %v4406_v4, %v4406_v4  ;;  %v6780_v61 = vrot.slane %v11302_v21, 1  ;;  %v12529_v21 = vld [vmem:[%s11427_s22 + $0xac] sm:$0xf] }
 0x28e   : > { %10413 = vmatpush3.bf16.msra.mxu0 %v11439_v22  ;;  %10414 = vmatprep.mubr.msk.bf16.mxu0 %vm11362_vm1, %v11361_v1  ;;  %v7298_v62 = vrot.slane %v9381_v58, 1  ;;  %v7299_v0 = vrot.slane %v11304_v38, 1  ;;  %v9432_v38 = vld [vmem:[%s11427_s22 + $0xb4] sm:$0xf] }
 0x28f   : > { %v12423_v59 = vadd.f32 %v8611_v8, %v4406_v4  ;;  %v8680_v10 = vadd.f32 %v8679_v7, %v8649_v6  ;;  %10463 = vmatmul.mubr.msk.bf16.vlgmr.msra.gmra.mrb[24].mxu1 %vm251_vm3, %v7031_v42  ;;  %10418 = vmatprep.subr.bf16.mxu0 %v11361_v1  ;;  %v9351_v4 = vld [vmem:[%s11427_s22 + $0xa8] sm:$0xf]  ;;  %v9352_v42 = vld [vmem:[%s11427_s22 + $0xac] sm:$0xf]  ;;  %v9387_v6 = vld [vmem:[%s11427_s22 + $0xb4] sm:$0xf]  ;;  %v12550_v44 = vcombine.low %v9432_v38, %v12536_v37 }
 0x290   : > { %10467 = vmatpush3.bf16.msra.mxu1 %v11439_v22  ;;  %10468 = vmatprep.mubr.msk.bf16.mxu1 %vm11362_vm1, %v11361_v1  ;;  %v7300_v63 = vsel %vm350_vm4, %v7298_v62, %v7299_v0  ;;  %v9388_v7 = vld [vmem:[%s11427_s22 + $0xb8] sm:$0xf]  ;;  %v9354_v8 = vcombine.low %v9351_v4, %v9352_v42 }
 0x291   : > { %v12430_v11 = vadd.f32 %v8680_v10, %v8650_v9  ;;  %10472 = vmatprep.subr.bf16.mxu1 %v11361_v1  ;;  %v9390_v5 = vcombine.low %v9387_v6, %v9388_v7  ;;  %v11307_v9 = vld [vmem:[%s11427_s22 + $0xa8] sm:$0xff]   ;;  %v11310_v10 = vld [vmem:[%s11427_s22 + $0xb0] ss:$0 sps:$4 sm:$0x11]  }
 0x292   : > { %v6899_v12 = vshll.u32 %v9354_v8, 16  ;;  %v6904_v19 = vshll.u32 %v11310_v10, 16  ;;  %v6959_v47 = vrot.slane %v11310_v10, 1 }
 0x293   : > { %v7418_v16 = vshll.u32 %v9390_v5, 16  ;;  %v7416_v23 = vshrl.u32 %v9390_v5, 16 }
 0x299   : > { %10415 = vmatmul.mubr.msk.bf16.vlgmr.msra.gmra.mrb[24].mxu0 %vm251_vm3, %v12376_v24  ;;  %v6606_v24 = vsel %vm350_vm4, %v6604_v18, %v6605_v15  ;;  %v6897_v18 = vshrl.u32 %v9354_v8, 16  ;;  %v6901_v15 = vrot.slane %v6899_v12, 1 }
 0x29a   : > { %10419 = vmatpush3.bf16.msra.mxu0 %v11457_v28  ;;  %10420 = vmatprep.mubr.msk.bf16.mxu0 %vm11362_vm1, %v11361_v1 }
 0x29b   : > { %10469 = vmatmul.mubr.msk.bf16.vlgmr.msra.gmra.mrb[24].mxu1 %vm251_vm3, %v12384_v27  ;;  %10424 = vmatprep.subr.bf16.mxu0 %v11361_v1  ;;  %v9339_v27 = vld [vmem:[%s11427_s22 + $0xa0] sm:$0xf] }
 0x29c   : > { %10473 = vmatpush3.bf16.msra.mxu1 %v11457_v28  ;;  %10474 = vmatprep.mubr.msk.bf16.mxu1 %vm11362_vm1, %v11361_v1  ;;  %v9341_v32 = vcombine.low %v9338_v20, %v9339_v27  ;;  %v9345_v57 = vcombine.low %v9344_v55, %v9339_v27  ;;  %v6902_v20 = vor.u32 %v6901_v15, %v6897_v18  ;;  %v6906_v27 = vrot.slane %v6904_v19, 1 }
 0x29d   : > { %10478 = vmatprep.subr.bf16.mxu1 %v11361_v1  ;;  %v8061_v55 = vshll.u32 %v12550_v44, 16 }
 0x29e   : > { %v6720_v35 = vshll.u32 %v9341_v32, 16  ;;  %v6718_v39 = vshrl.u32 %v9341_v32, 16  ;;  %v6779_v60 = vrot.slane %v9345_v57, 1  ;;  %v6907_v32 = vsel %vm238_vm2, %v6902_v20, %v6906_v27 }
 0x29f   : > { %v8063_v62 = vrot.slane %v8061_v55, 1 }
 0x2a0   : > { %v6722_v40 = vrot.slane %v6720_v35, 1  ;;  %v6781_v3 = vsel %vm350_vm4, %v6779_v60, %v6780_v61  ;;  %v8059_v61 = vshrl.u32 %v12550_v44, 16 }
 0x2a2   : > { %v6723_v49 = vor.u32 %v6722_v40, %v6718_v39  ;;  %v9358_v39 = vcombine.low %v9357_v33, %v9352_v42  ;;  %v8064_v42 = vor.u32 %v8063_v62, %v8059_v61 }
 0x2a4   : > { %v6728_v54 = vsel %vm238_vm2, %v6723_v49, %v6727_v46  ;;  %v6958_v45 = vrot.slane %v9358_v39, 1  ;;  %v12554_v49 = vld [vmem:[%s11427_s22 + $0xb0] ss:$0 sps:$4 sm:$0x11]   ;;  %v9411_v39 = vld [vmem:[%s11427_s22 + $0xb8] sm:$0xf] }
 0x2a5   : > { %10421 = vmatmul.mubr.msk.bf16.vlgmr.msra.gmra.mrb[24].mxu0 %vm251_vm3, %v6606_v24  ;;  %v7420_v24 = vrot.slane %v7418_v16, 1  ;;  %v7547_v58 = vshll.u32 %v12554_v49, 16 }
 0x2a6   : > { %10425 = vmatpush3.bf16.msra.mxu0 %v11478_v41  ;;  %10426 = vmatprep.mubr.msk.bf16.mxu0 %vm11362_vm1, %v11361_v1 }
 0x2a7   : > { %10475 = vmatmul.mubr.msk.bf16.vlgmr.msra.gmra.mrb[24].mxu1 %vm251_vm3, %v7125_v26  ;;  %10430 = vmatprep.subr.bf16.mxu0 %v11361_v1  ;;  %v7423_v26 = vshll.u32 %v11312_v14, 16  ;;  %v7421_v29 = vor.u32 %v7420_v24, %v7416_v23 }
 0x2a8   : > { %10479 = vmatpush3.bf16.msra.mxu1 %v11478_v41  ;;  %10480 = vmatprep.mubr.msk.bf16.mxu1 %vm11362_vm1, %v11361_v1 }
 0x2a9   : > { %10484 = vmatprep.subr.bf16.mxu1 %v11361_v1  ;;  %v7425_v30 = vrot.slane %v7423_v26, 1 }
 0x2ab   : > { %v7426_v35 = vsel %vm238_vm2, %v7421_v29, %v7425_v30  ;;  %v9403_v30 = vld [vmem:[%s11427_s22 + $0xa8] sm:$0xe] }
 0x2ac   : > { %v9404_v33 = vcombine.low %v9403_v30, %v12529_v21 }
 0x2b1   : > { %10427 = vmatmul.mubr.msk.bf16.vlgmr.msra.gmra.mrb[24].mxu0 %vm251_vm3, %v11299_v34  ;;  %v9396_v34 = vld [vmem:[%s11427_s22 + $0xa8] sm:$0xf] }
 0x2b2   : > { %10431 = vmatpush3.bf16.msra.mxu0 %v11500_v50  ;;  %10432 = vmatprep.mubr.msk.bf16.mxu0 %vm11362_vm1, %v11361_v1  ;;  %v12542_v40 = vcombine.low %v9396_v34, %v12529_v21  ;;  %v7642_v34 = vrot.slane %v9404_v33, 1  ;;  %v7643_v21 = vrot.slane %v12554_v49, 1  ;;  %v11324_v49 = vld [vmem:[%s11427_s22 + $0xbc] ss:$0 sps:$4 sm:$0x11]  }
 0x2b3   : > { %10481 = vmatmul.mubr.msk.bf16.vlgmr.msra.gmra.mrb[24].mxu1 %vm251_vm3, %v11300_v36  ;;  %10436 = vmatprep.subr.bf16.mxu0 %v11361_v1  ;;  %v9393_v36 = vld [vmem:[%s11427_s22 + $0xb4] sm:$0xe] }
 0x2b4   : > { %10485 = vmatpush3.bf16.msra.mxu1 %v11500_v50  ;;  %10486 = vmatprep.mubr.msk.bf16.mxu1 %vm11362_vm1, %v11361_v1  ;;  %v9394_v43 = vcombine.low %v9393_v36, %v9388_v7  ;;  %v7542_v46 = vshll.u32 %v12542_v40, 16  ;;  %v7540_v52 = vshrl.u32 %v12542_v40, 16  ;;  %v7644_v38 = vsel %vm350_vm4, %v7642_v34, %v7643_v21 }
 0x2b5   : > { %10490 = vmatprep.subr.bf16.mxu1 %v11361_v1 }
 0x2b6   : > { %v7477_v51 = vrot.slane %v9394_v43, 1  ;;  %v7544_v57 = vrot.slane %v7542_v46, 1  ;;  %v9447_v43 = vld [vmem:[%s11427_s22 + $0xc4] sm:$0xf] }
 0x2b8   : > { %v7479_v60 = vsel %vm350_vm4, %v7477_v51, %v7478_v25  ;;  %v11322_v51 = vld [vmem:[%s11427_s22 + $0xc0] sm:$0xff]   ;;  %v11326_v25 = vld [vmem:[%s11427_s22 + $0xc8] ss:$0 sps:$4 sm:$0x11]  }
 0x2bd   : > { %10433 = vmatmul.mubr.msk.bf16.vlgmr.msra.gmra.mrb[24].mxu0 %vm251_vm3, %v6728_v54  ;;  %v12558_v54 = vld [vmem:[%s11427_s22 + $0xbc] ss:$0 sps:$4 sm:$0x11]  }
 0x2be   : > { %10437 = vmatpush3.bf16.msra.mxu0 %v11505_v53  ;;  %10438 = vmatprep.mubr.msk.bf16.mxu0 %vm11362_vm1, %v11361_v1  ;;  %v8066_v0 = vshll.u32 %v12558_v54, 16  ;;  %v8162_v36 = vrot.slane %v12558_v54, 1 }
 0x2bf   : > { %10487 = vmatmul.mubr.msk.bf16.vlgmr.msra.gmra.mrb[24].mxu1 %vm251_vm3, %v7247_v56  ;;  %10442 = vmatprep.subr.bf16.mxu0 %v11361_v1  ;;  %v6960_v56 = vsel %vm350_vm4, %v6958_v45, %v6959_v47  ;;  %v11321_v47 = vld [vmem:[%s11427_s22 + $0xb4] sm:$0xff]  }
 0x2c0   : > { %10491 = vmatpush3.bf16.msra.mxu1 %v11505_v53  ;;  %10492 = vmatprep.mubr.msk.bf16.mxu1 %vm11362_vm1, %v11361_v1  ;;  %v8068_v6 = vrot.slane %v8066_v0, 1 }
 0x2c1   : > { %10496 = vmatprep.subr.bf16.mxu1 %v11361_v1 }
 0x2c9   : > { %10439 = vmatmul.mubr.msk.bf16.vlgmr.msra.gmra.mrb[24].mxu0 %vm251_vm3, %v6781_v3  ;;  %v7545_v3 = vor.u32 %v7544_v57, %v7540_v52 }
 0x2ca   : > { %10443 = vmatpush3.bf16.msra.mxu0 %v11538_v17  ;;  %10444 = vmatprep.mubr.msk.bf16.mxu0 %vm11362_vm1, %v11361_v1 }
 0x2cb   : > { %10493 = vmatmul.mubr.msk.bf16.vlgmr.msra.gmra.mrb[24].mxu1 %vm251_vm3, %v7300_v63  ;;  %10448 = vmatprep.subr.bf16.mxu0 %v11361_v1  ;;  %v7549_v63 = vrot.slane %v7547_v58, 1  ;;  %v8282_v58 = vshll.u32 %v11326_v25, 16 }
 0x2cc   : > { %10497 = vmatpush3.bf16.msra.mxu1 %v11538_v17  ;;  %10498 = vmatprep.mubr.msk.bf16.mxu1 %vm11362_vm1, %v11361_v1 }
 0x2cd   : > { %10502 = vmatprep.subr.bf16.mxu1 %v11361_v1  ;;  %v7550_v12 = vsel %vm238_vm2, %v7545_v3, %v7549_v63  ;;  %v8284_v0 = vrot.slane %v8282_v58, 1  ;;  %v9416_v63 = vld [vmem:[%s11427_s22 + $0xb4] sm:$0xe] }
 0x2d5   : > { %10445 = vmatmul.mubr.msk.bf16.vlgmr.msra.gmra.mrb[24].mxu0 %vm251_vm3, %v11307_v9 }
 0x2d6   : > { %10449 = vmatpush3.bf16.msra.mxu0 %v11561_v31  ;;  %10450 = vmatprep.mubr.msk.bf16.mxu0 %vm11362_vm1, %v11361_v1 }
 0x2d7   : > { %10499 = vmatmul.mubr.msk.bf16.vlgmr.msra.gmra.mrb[24].mxu1 %vm251_vm3, %v11308_v13  ;;  %10454 = vmatprep.subr.bf16.mxu0 %v11361_v1 }
 0x2d8   : > { %10503 = vmatpush3.bf16.msra.mxu1 %v11561_v31  ;;  %10504 = vmatprep.mubr.msk.bf16.mxu1 %vm11362_vm1, %v11361_v1 }
 0x2d9   : > { %10508 = vmatprep.subr.bf16.mxu1 %v11361_v1 }
 0x2e1   : > { %10451 = vmatmul.mubr.msk.bf16.vlgmr.msra.gmra.mrb[24].mxu0 %vm251_vm3, %v6907_v32  ;;  %v9439_v32 = vld [vmem:[%s11427_s22 + $0xb4] sm:$0xe] }
 0x2e2   : > { %10455 = vmatpush3.bf16.msra.mxu0 %v11580_v48  ;;  %10456 = vmatprep.mubr.msk.bf16.mxu0 %vm11362_vm1, %v11361_v1 }
 0x2e3   : > { %10505 = vmatmul.mubr.msk.bf16.vlgmr.msra.gmra.mrb[24].mxu1 %vm251_vm3, %v7426_v35  ;;  %10514 = vmatprep.subr.bf16.mxu0 %v11361_v1 }
 0x2e4   : > { %10509 = vmatpush3.bf16.msra.mxu1 %v11580_v48  ;;  %10510 = vmatprep.mubr.msk.bf16.mxu1 %vm11362_vm1, %v11361_v1 }
 0x2e5   : > { %10568 = vmatprep.subr.bf16.mxu1 %v11361_v1 }
 0x2ed   : > { %10457 = vmatmul.mubr.msk.bf16.vlgmr.msra.gmra.mrb[24].mxu0 %vm251_vm3, %v6960_v56  ;;  %v7763_v56 = vshll.u32 %v11324_v49, 16 }
 0x2ee   : > { %10515 = vmatpush3.bf16.msra.mxu0 %v11409_v2  ;;  %10516 = vmatprep.mubr.msk.bf16.mxu0 %vm11362_vm1, %v11361_v1 }
 0x2ef   : > { %10511 = vmatmul.mubr.msk.bf16.vlgmr.msra.gmra.mrb[24].mxu1 %vm251_vm3, %v7479_v60  ;;  %10520 = vmatprep.subr.bf16.mxu0 %v11361_v1  ;;  %v7765_v61 = vrot.slane %v7763_v56, 1 }
 0x2f0   : > { %v4922_v4 = vpop.f32.mrb[16].mxu0  ;;  %10569 = vmatpush3.bf16.msra.mxu1 %v11409_v2  ;;  %10570 = vmatprep.mubr.msk.bf16.mxu1 %vm11362_vm1, %v11361_v1 }
 0x2f1   : > { %4931 = vst [vmem:[%s11905_s20 + $0x80] sm:$0xff] %v4922_v4  ;;  %v8613_v7 = vadd.f32 %v12423_v59, %v4922_v4  ;;  %v8651_v8 = vmul.f32 %v4922_v4, %v4922_v4  ;;  %v10242_v5 = vpop.f32.mrb[17].mxu0  ;;  %10574 = vmatprep.subr.bf16.mxu1 %v11361_v1  ;;  %v8069_v59 = vsel %vm238_vm2, %v8064_v42, %v8068_v6 }
 0x2f2   : > { %v5441_v9 = vpop.f32.mrb[16].mxu1  ;;  %v4925_v10 = vpop.f32.mrb[18].mxu0  ;;  %v9417_v42 = vcombine.low %v9416_v63, %v9411_v39 }
 0x2f3   : > { %v8682_v13 = vadd.f32 %v12430_v11, %v8651_v8  ;;  %5450 = vst [vmem:[%s11905_s20 + $0x90] sm:$0xff] %v5441_v9  ;;  %v10296_v2 = vpop.f32.mrb[17].mxu1  ;;  %4932 = vst [vmem:[%s11905_s20 + $0x88] sm:$0xff] %v4925_v10  ;;  %v8614_v14 = vadd.f32 %v8613_v7, %v4925_v10  ;;  %v8652_v16 = vmul.f32 %v4925_v10, %v4925_v10  ;;  %v10243_v18 = vpop.f32.mrb[19].mxu0  ;;  %v7818_v8 = vrot.slane %v11324_v49, 1 }
 0x2f4   : > { %v5444_v15 = vpop.f32.mrb[18].mxu1  ;;  %v8653_v19 = vmul.f32 %v5441_v9, %v5441_v9  ;;  %v7817_v7 = vrot.slane %v9417_v42, 1  ;;  %v9459_v2 = vld [vmem:[%s11427_s22 + $0xcc] sm:$0xf] }
 0x2f5   : > { %v8683_v23 = vadd.f32 %v8682_v13, %v8652_v16  ;;  %5451 = vst [vmem:[%s11905_s20 + $0x98] sm:$0xff] %v5444_v15  ;;  %v8615_v24 = vadd.f32 %v8614_v14, %v5441_v9  ;;  %v10297_v26 = vpop.f32.mrb[19].mxu1  ;;  %10517 = vmatmul.mubr.msk.bf16.vlgmr.msra.gmra.mrb[28].mxu0 %vm251_vm3, %v7550_v12  ;;  %v8654_v20 = vmul.f32 %v5444_v15, %v5444_v15  ;;  %v8337_v9 = vrot.slane %v11326_v25, 1  ;;  %v9424_v13 = vld [vmem:[%s11427_s22 + $0xc4] sm:$0xf] }
 0x2f6   : > { %10521 = vmatpush3.bf16.msra.mxu0 %v11439_v22  ;;  %10522 = vmatprep.mubr.msk.bf16.mxu0 %vm11362_vm1, %v11361_v1  ;;  %v7819_v10 = vsel %vm350_vm4, %v7817_v7, %v7818_v8  ;;  %v9460_v14 = vld [vmem:[%s11427_s22 + $0xd0] sm:$0xf] }
 0x2f7   : > { %v12589_v11 = vadd.f32 %v8615_v24, %v5444_v15  ;;  %v8684_v27 = vadd.f32 %v8683_v23, %v8653_v19  ;;  %10571 = vmatmul.mubr.msk.bf16.vlgmr.msra.gmra.mrb[28].mxu1 %vm251_vm3, %v8069_v59  ;;  %10526 = vmatprep.subr.bf16.mxu0 %v11361_v1  ;;  %v9462_v18 = vcombine.low %v9459_v2, %v9460_v14  ;;  %v11329_v15 = vld [vmem:[%s11427_s22 + $0xc0] sm:$0xff]   ;;  %v11332_v59 = vld [vmem:[%s11427_s22 + $0xc8] ss:$0 sps:$4 sm:$0x11]   ;;  %v11330_v23 = vld [vmem:[%s11427_s22 + $0xcc] sm:$0xff]  }
 0x2f8   : > { %10575 = vmatpush3.bf16.msra.mxu1 %v11439_v22  ;;  %10576 = vmatprep.mubr.msk.bf16.mxu1 %vm11362_vm1, %v11361_v1  ;;  %v9440_v22 = vcombine.low %v9439_v32, %v12536_v37  ;;  %v9410_v37 = vld [vmem:[%s11427_s22 + $0xb4] sm:$0xf] }
 0x2f9   : > { %v12596_v29 = vadd.f32 %v8684_v27, %v8654_v20  ;;  %10580 = vmatprep.subr.bf16.mxu1 %v11361_v1  ;;  %v11334_v24 = vld [vmem:[%s11427_s22 + $0xd4] ss:$0 sps:$4 sm:$0x11]   ;;  %v8456_v26 = vshll.u32 %v9462_v18, 16  ;;  %v7942_v27 = vshll.u32 %v11332_v59, 16  ;;  %v8454_v30 = vshrl.u32 %v9462_v18, 16 }
 0x2fa   : > { %v8161_v35 = vrot.slane %v9440_v22, 1  ;;  %v8461_v33 = vshll.u32 %v11334_v24, 16 }
 0x2fb   : > { %v8458_v32 = vrot.slane %v8456_v26, 1  ;;  %v7944_v34 = vrot.slane %v7942_v27, 1 }
 0x2fd   : > { %v8459_v21 = vor.u32 %v8458_v32, %v8454_v30 }
 0x301   : > { %10523 = vmatmul.mubr.msk.bf16.vlgmr.msra.gmra.mrb[28].mxu0 %vm251_vm3, %v12542_v40  ;;  %v9446_v40 = vld [vmem:[%s11427_s22 + $0xc0] sm:$0xf] }
 0x302   : > { %10527 = vmatpush3.bf16.msra.mxu0 %v11457_v28  ;;  %10528 = vmatprep.mubr.msk.bf16.mxu0 %vm11362_vm1, %v11361_v1  ;;  %v9449_v45 = vcombine.low %v9446_v40, %v9447_v43 }
 0x303   : > { %10577 = vmatmul.mubr.msk.bf16.vlgmr.msra.gmra.mrb[28].mxu1 %vm251_vm3, %v12550_v44  ;;  %10532 = vmatprep.subr.bf16.mxu0 %v11361_v1  ;;  %v9413_v44 = vcombine.low %v9410_v37, %v9411_v39 }
 0x304   : > { %10581 = vmatpush3.bf16.msra.mxu1 %v11457_v28  ;;  %10582 = vmatprep.mubr.msk.bf16.mxu1 %vm11362_vm1, %v11361_v1  ;;  %v8163_v28 = vsel %vm350_vm4, %v8161_v35, %v8162_v36  ;;  %v8277_v54 = vshll.u32 %v9449_v45, 16  ;;  %v8275_v52 = vshrl.u32 %v9449_v45, 16  ;;  %v8463_v35 = vrot.slane %v8461_v33, 1 }
 0x305   : > { %10586 = vmatprep.subr.bf16.mxu1 %v11361_v1  ;;  %v7758_v46 = vshll.u32 %v9413_v44, 16  ;;  %v8516_v45 = vrot.slane %v11334_v24, 1 }
 0x306   : > { %v8279_v57 = vrot.slane %v8277_v54, 1 }
 0x307   : > { %v7760_v55 = vrot.slane %v7758_v46, 1 }
 0x308   : > { %v8280_v62 = vor.u32 %v8279_v57, %v8275_v52 }
 0x30a   : > { %v8285_v4 = vsel %vm238_vm2, %v8280_v62, %v8284_v0 }
 0x30d   : > { %10529 = vmatmul.mubr.msk.bf16.vlgmr.msra.gmra.mrb[28].mxu0 %vm251_vm3, %v7644_v38  ;;  %v9429_v38 = vld [vmem:[%s11427_s22 + $0xc0] sm:$0xe] }
 0x30e   : > { %10533 = vmatpush3.bf16.msra.mxu0 %v11478_v41  ;;  %10534 = vmatprep.mubr.msk.bf16.mxu0 %vm11362_vm1, %v11361_v1  ;;  %v9430_v37 = vcombine.low %v9429_v38, %v9424_v13 }
 0x30f   : > { %10583 = vmatmul.mubr.msk.bf16.vlgmr.msra.gmra.mrb[28].mxu1 %vm251_vm3, %v8163_v28  ;;  %10538 = vmatprep.subr.bf16.mxu0 %v11361_v1  ;;  %v8464_v28 = vsel %vm238_vm2, %v8459_v21, %v8463_v35 }
 0x310   : > { %10587 = vmatpush3.bf16.msra.mxu1 %v11478_v41  ;;  %10588 = vmatprep.mubr.msk.bf16.mxu1 %vm11362_vm1, %v11361_v1  ;;  %v7756_v41 = vshrl.u32 %v9413_v44, 16  ;;  %v7996_v40 = vrot.slane %v9430_v37, 1 }
 0x311   : > { %10592 = vmatprep.subr.bf16.mxu1 %v11361_v1 }
 0x312   : > { %v7761_v60 = vor.u32 %v7760_v55, %v7756_v41 }
 0x314   : > { %v7766_v3 = vsel %vm238_vm2, %v7761_v60, %v7765_v61 }
 0x319   : > { %10535 = vmatmul.mubr.msk.bf16.vlgmr.msra.gmra.mrb[28].mxu0 %vm251_vm3, %v11321_v47 }
 0x31a   : > { %10539 = vmatpush3.bf16.msra.mxu0 %v11500_v50  ;;  %10540 = vmatprep.mubr.msk.bf16.mxu0 %vm11362_vm1, %v11361_v1 }
 0x31b   : > { %10589 = vmatmul.mubr.msk.bf16.vlgmr.msra.gmra.mrb[28].mxu1 %vm251_vm3, %v11322_v51  ;;  %10544 = vmatprep.subr.bf16.mxu0 %v11361_v1 }
 0x31c   : > { %10593 = vmatpush3.bf16.msra.mxu1 %v11500_v50  ;;  %10594 = vmatprep.mubr.msk.bf16.mxu1 %vm11362_vm1, %v11361_v1  ;;  %v9452_v50 = vld [vmem:[%s11427_s22 + $0xc0] sm:$0xe] }
 0x31d   : > { %10598 = vmatprep.subr.bf16.mxu1 %v11361_v1  ;;  %v9453_v6 = vcombine.low %v9452_v50, %v9447_v43  ;;  %v7997_v43 = vrot.slane %v11332_v59, 1 }
 0x31f   : > { %v8336_v5 = vrot.slane %v9453_v6, 1  ;;  %v7998_v47 = vsel %vm350_vm4, %v7996_v40, %v7997_v43 }
 0x321   : > { %v8338_v12 = vsel %vm350_vm4, %v8336_v5, %v8337_v9 }
 0x325   : > { %10541 = vmatmul.mubr.msk.bf16.vlgmr.msra.gmra.mrb[28].mxu0 %vm251_vm3, %v7766_v3 }
 0x326   : > { %10545 = vmatpush3.bf16.msra.mxu0 %v11505_v53  ;;  %10546 = vmatprep.mubr.msk.bf16.mxu0 %vm11362_vm1, %v11361_v1 }
 0x327   : > { %10595 = vmatmul.mubr.msk.bf16.vlgmr.msra.gmra.mrb[28].mxu1 %vm251_vm3, %v8285_v4  ;;  %10550 = vmatprep.subr.bf16.mxu0 %v11361_v1 }
 0x328   : > { %10599 = vmatpush3.bf16.msra.mxu1 %v11505_v53  ;;  %10600 = vmatprep.mubr.msk.bf16.mxu1 %vm11362_vm1, %v11361_v1  ;;  %v9423_v53 = vld [vmem:[%s11427_s22 + $0xc0] sm:$0xf] }
 0x329   : > { %10604 = vmatprep.subr.bf16.mxu1 %v11361_v1  ;;  %v9426_v16 = vcombine.low %v9423_v53, %v9424_v13 }
 0x32b   : > { %v7937_v19 = vshll.u32 %v9426_v16, 16 }
 0x32d   : > { %v7939_v20 = vrot.slane %v7937_v19, 1 }
 0x331   : > { %10547 = vmatmul.mubr.msk.bf16.vlgmr.msra.gmra.mrb[28].mxu0 %vm251_vm3, %v7819_v10 }
 0x332   : > { %10551 = vmatpush3.bf16.msra.mxu0 %v11538_v17  ;;  %10552 = vmatprep.mubr.msk.bf16.mxu0 %vm11362_vm1, %v11361_v1 }
 0x333   : > { %10601 = vmatmul.mubr.msk.bf16.vlgmr.msra.gmra.mrb[28].mxu1 %vm251_vm3, %v8338_v12  ;;  %10556 = vmatprep.subr.bf16.mxu0 %v11361_v1 }
 0x334   : > { %10605 = vmatpush3.bf16.msra.mxu1 %v11538_v17  ;;  %10606 = vmatprep.mubr.msk.bf16.mxu1 %vm11362_vm1, %v11361_v1  ;;  %v7935_v17 = vshrl.u32 %v9426_v16, 16 }
 0x335   : > { %10610 = vmatprep.subr.bf16.mxu1 %v11361_v1 }
 0x336   : > { %v7940_v22 = vor.u32 %v7939_v20, %v7935_v17 }
 0x338   : > { %v7945_v36 = vsel %vm238_vm2, %v7940_v22, %v7944_v34 }
 0x33d   : > { %10553 = vmatmul.mubr.msk.bf16.vlgmr.msra.gmra.mrb[28].mxu0 %vm251_vm3, %v11329_v15 }
 0x33e   : > { %10557 = vmatpush3.bf16.msra.mxu0 %v11561_v31  ;;  %10558 = vmatprep.mubr.msk.bf16.mxu0 %vm11362_vm1, %v11361_v1 }
 0x33f   : > { %10607 = vmatmul.mubr.msk.bf16.vlgmr.msra.gmra.mrb[28].mxu1 %vm251_vm3, %v11330_v23  ;;  %10562 = vmatprep.subr.bf16.mxu0 %v11361_v1 }
 0x340   : > { %10611 = vmatpush3.bf16.msra.mxu1 %v11561_v31  ;;  %10612 = vmatprep.mubr.msk.bf16.mxu1 %vm11362_vm1, %v11361_v1  ;;  %v9465_v31 = vld [vmem:[%s11427_s22 + $0xcc] sm:$0xe] }
 0x341   : > { %10616 = vmatprep.subr.bf16.mxu1 %v11361_v1  ;;  %v9466_v39 = vcombine.low %v9465_v31, %v9460_v14 }
 0x343   : > { %v8515_v44 = vrot.slane %v9466_v39, 1 }
 0x345   : > { %v8517_v49 = vsel %vm350_vm4, %v8515_v44, %v8516_v45 }
 0x349   : > { %10559 = vmatmul.mubr.msk.bf16.vlgmr.msra.gmra.mrb[28].mxu0 %vm251_vm3, %v7945_v36 }
 0x34a   : > { %10563 = vmatpush3.bf16.msra.mxu0 %v11580_v48  ;;  %10564 = vmatprep.mubr.msk.bf16.mxu0 %vm11362_vm1, %v11361_v1 }
 0x34b   : > { %10613 = vmatmul.mubr.msk.bf16.vlgmr.msra.gmra.mrb[28].mxu1 %vm251_vm3, %v8464_v28 }
 0x34c   : > { %10617 = vmatpush3.bf16.msra.mxu1 %v11580_v48  ;;  %10618 = vmatprep.mubr.msk.bf16.mxu1 %vm11362_vm1, %v11361_v1 }
 0x355   : > { %10565 = vmatmul.mubr.msk.bf16.vlgmr.msra.gmra.mrb[28].mxu0 %vm251_vm3, %v7998_v47 }
 0x357   : > { %10619 = vmatmul.mubr.msk.bf16.vlgmr.msra.gmra.mrb[28].mxu1 %vm251_vm3, %v8517_v49 }
 0x358   : > { %v5960_v46 = vpop.f32.mrb[20].mxu0 }
 0x359   : > { %5969 = vst [vmem:[%s11905_s20 + $0xa0] sm:$0xff] %v5960_v46  ;;  %v8617_v1 = vadd.f32 %v12589_v11, %v5960_v46  ;;  %v8655_v48 = vmul.f32 %v5960_v46, %v5960_v46  ;;  %v10350_v51 = vpop.f32.mrb[21].mxu0 }
 0x35a   : > { %v6479_v25 = vpop.f32.mrb[20].mxu1  ;;  %v5963_v54 = vpop.f32.mrb[22].mxu0 }
 0x35b   : > { %v8686_v41 = vadd.f32 %v12596_v29, %v8655_v48  ;;  %6488 = vst [vmem:[%s11905_s20 + $0xb0] sm:$0xff] %v6479_v25  ;;  %v10404_v55 = vpop.f32.mrb[21].mxu1  ;;  %5970 = vst [vmem:[%s11905_s20 + $0xa8] sm:$0xff] %v5963_v54  ;;  %v8618_v56 = vadd.f32 %v8617_v1, %v5963_v54  ;;  %v8656_v52 = vmul.f32 %v5963_v54, %v5963_v54  ;;  %v10351_v57 = vpop.f32.mrb[23].mxu0 }
 0x35c   : > { %v6482_v58 = vpop.f32.mrb[22].mxu1  ;;  %v8657_v60 = vmul.f32 %v6479_v25, %v6479_v25 }
 0x35d   : > { %v8687_v61 = vadd.f32 %v8686_v41, %v8656_v52  ;;  %6489 = vst [vmem:[%s11905_s20 + $0xb8] sm:$0xff] %v6482_v58  ;;  %v8619_v62 = vadd.f32 %v8618_v56, %v6479_v25  ;;  %v10405_v11 = vpop.f32.mrb[23].mxu1  ;;  %v8658_v3 = vmul.f32 %v6482_v58, %v6482_v58 }
 0x35f   : > { %v8620_v0 = vadd.f32 %v8619_v62, %v6482_v58  ;;  %v8688_v63 = vadd.f32 %v8687_v61, %v8657_v60 }
 0x361   : > { %v8689_v4 = vadd.f32 %v8688_v63, %v8658_v3 }
 0x3c0   : > { %v6998_v29 = vpop.f32.mrb[24].mxu0 }
 0x3c1   : > { %7007 = vst [vmem:[%s11905_s20 + $0xc0] sm:$0xff] %v6998_v29  ;;  %v8621_v50 = vadd.f32 %v8620_v0, %v6998_v29  ;;  %v8659_v42 = vmul.f32 %v6998_v29, %v6998_v29  ;;  %v10458_v6 = vpop.f32.mrb[25].mxu0 }
 0x3c2   : > { %v7517_v7 = vpop.f32.mrb[24].mxu1  ;;  %v7001_v8 = vpop.f32.mrb[26].mxu0 }
 0x3c3   : > { %v8690_v5 = vadd.f32 %v8689_v4, %v8659_v42  ;;  %7526 = vst [vmem:[%s11905_s20 + $0xd0] sm:$0xff] %v7517_v7  ;;  %v10512_v9 = vpop.f32.mrb[25].mxu1  ;;  %7008 = vst [vmem:[%s11905_s20 + $0xc8] sm:$0xff] %v7001_v8  ;;  %v8622_v10 = vadd.f32 %v8621_v50, %v7001_v8  ;;  %v8660_v12 = vmul.f32 %v7001_v8, %v7001_v8  ;;  %v10459_v53 = vpop.f32.mrb[27].mxu0 }
 0x3c4   : > { %v7520_v13 = vpop.f32.mrb[26].mxu1  ;;  %v8661_v2 = vmul.f32 %v7517_v7, %v7517_v7 }
 0x3c5   : > { %v8691_v14 = vadd.f32 %v8690_v5, %v8660_v12  ;;  %7527 = vst [vmem:[%s11905_s20 + $0xd8] sm:$0xff] %v7520_v13  ;;  %v8623_v16 = vadd.f32 %v8622_v10, %v7517_v7  ;;  %v10513_v18 = vpop.f32.mrb[27].mxu1  ;;  %v8662_v59 = vmul.f32 %v7520_v13, %v7520_v13 }
 0x3c7   : > { %v8624_v15 = vadd.f32 %v8623_v16, %v7520_v13  ;;  %v8692_v19 = vadd.f32 %v8691_v14, %v8661_v2 }
 0x3c9   : > { %v8693_v23 = vadd.f32 %v8692_v19, %v8662_v59 }
 0x428   : > { %v8036_v24 = vpop.f32.mrb[28].mxu0 }
 0x429   : > { %8045 = vst [vmem:[%s11905_s20 + $0xe0] sm:$0xff] %v8036_v24  ;;  %v8625_v26 = vadd.f32 %v8624_v15, %v8036_v24  ;;  %v8663_v17 = vmul.f32 %v8036_v24, %v8036_v24  ;;  %v10566_v20 = vpop.f32.mrb[29].mxu0 }
 0x42a   : > { %v8555_v27 = vpop.f32.mrb[28].mxu1  ;;  %v8039_v30 = vpop.f32.mrb[30].mxu0 }
 0x42b   : > { %v8694_v32 = vadd.f32 %v8693_v23, %v8663_v17  ;;  %8564 = vst [vmem:[%s11905_s20 + $0xf0] sm:$0xff] %v8555_v27  ;;  %v10620_v33 = vpop.f32.mrb[29].mxu1  ;;  %8046 = vst [vmem:[%s11905_s20 + $0xe8] sm:$0xff] %v8039_v30  ;;  %v8626_v22 = vadd.f32 %v8625_v26, %v8039_v30  ;;  %v8664_v34 = vmul.f32 %v8039_v30, %v8039_v30  ;;  %v10567_v21 = vpop.f32.mrb[31].mxu0 }
 0x42c   : > { %v8558_v35 = vpop.f32.mrb[30].mxu1  ;;  %v8665_v36 = vmul.f32 %v8555_v27, %v8555_v27 }
 0x42d   : > { %v8695_v38 = vadd.f32 %v8694_v32, %v8664_v34  ;;  %8565 = vst [vmem:[%s11905_s20 + $0xf8] sm:$0xff] %v8558_v35  ;;  %v8627_v28 = vadd.f32 %v8626_v22, %v8555_v27  ;;  %v10621_v31 = vpop.f32.mrb[31].mxu1  ;;  %v8666_v39 = vmul.f32 %v8558_v35, %v8558_v35 }
 0x42f   : > { %v8628_v37 = vadd.f32 %v8627_v28, %v8558_v35  ;;  %v8696_v40 = vadd.f32 %v8695_v38, %v8665_v36 }
 0x431   : > { %v8629_v43 = vrot.slane %v8628_v37, 4  ;;  %v8697_v44 = vadd.f32 %v8696_v40, %v8666_v39 }
 0x433   : > { %v8630_v45 = vadd.f32 %v8629_v43, %v8628_v37  ;;  %v8698_v47 = vrot.slane %v8697_v44, 4 }
 0x435   : > { %v8631_v49 = vrot.slane %v8630_v45, 2  ;;  %v8699_v46 = vadd.f32 %v8698_v47, %v8697_v44 }
 0x437   : > { %v8632_v1 = vadd.f32 %v8631_v49, %v8630_v45  ;;  %v8700_v48 = vrot.slane %v8699_v46, 2 }
 0x439   : > { %v8633_v51 = vrot.slane %v8632_v1, 1  ;;  %v8701_v25 = vadd.f32 %v8700_v48, %v8699_v46 }
 0x43b   : > { %v8702_v54 = vrot.slane %v8701_v25, 1  ;;  %v8634_v41 = vadd.f32 %v8633_v51, %v8632_v1 }
 0x43d   : > { %v8703_v55 = vadd.f32 %v8702_v54, %v8701_v25 }
 0x43f   : > { %v8705_v56 = vsel %vm8704_vm5, %v8634_v41, %v8703_v55 }
 0x440   : > { %8706 = vst [vmem:[%s203_s24] sm:$0x3] %v8705_v56 }
 0x441 PF: > { %s14_s14 = sadd.s32 1, %s11359_s14   ;;  %s12738_s12 = smov %s11355_s13 }
 0x442   : > { %p11_p6 = scmp.ge.s32.totalorder %s14_s14, 4   ;;  %s12739_s13 = smov %s12741_s15 }
 0x444   :  { %13 = sbr.rel (!%p11_p6) target bundleno = 2 (0x2), region = 96 }

</bundles_post_ra>
